<compile_context>
chip_gen: v7x
topology: tpu7x:2x2x1
jax: 0.10.0
libtpu: 0.0.40
codegen_flags: <defaults>
</compile_context>

<pallas_src>
import functools

import jax
import jax.numpy as jnp
from jax import lax
from jax.experimental import pallas as pl
from jax.experimental.pallas import tpu as pltpu


# 3x3 tap offsets (dh, dw); tap index t = (dh+1)*3 + (dw+1) = kh*3 + kw.
_TAPS = tuple((dh, dw) for dh in (-1, 0, 1) for dw in (-1, 0, 1))


def _bottleneck_kernel(W, Nb, x_ref, mask_ref, s1_ref, b1_ref, w1_ref,
                       b2_ref, w2_ref, o_ref):
    # x_ref    : (Nb, C, S)    Nb images, channels on sublanes, S = H*W on lanes
    # mask_ref : (9, S)        0/1 boundary-validity mask per 3x3 tap (precomputed)
    # s1/b1    : (C, 1)        folded BN1 scale / bias
    # w1_ref   : (P, C)        1x1 conv weight, BN2 scale already folded in
    # b2_ref   : (P, 1)        folded BN2 bias
    # w2_ref   : (9, G, P)     3x3 conv weight, leading index = tap (kh*3+kw)
    # o_ref    : (Nb, C+G, S)  fused concat output: [x ; new feature maps]
    C = x_ref.shape[1]
    S = x_ref.shape[2]
    P = w1_ref.shape[0]
    G = w2_ref.shape[1]

    s1 = s1_ref[...]
    b1 = b1_ref[...]
    w1 = w1_ref[...]
    b2 = b2_ref[...]
    masks = mask_ref[...]                                      # (9, S)

    outs = []
    for n in range(Nb):                                        # static unroll
        x = x_ref[n]                                           # (C, S)

        # --- BN1 + ReLU (folded affine) ---
        h = jnp.maximum(x * s1 + b1, 0.0)                      # (C, S)

        # --- 1x1 conv (BN2 scale folded into w1) ---
        if C < 32:
            # Tiny contraction: VPU broadcast-FMA beats MXU fill/drain latency.
            y = w1[:, 0:1] * h[0:1, :]                         # (P, S)
            for c in range(1, C):
                y = y + w1[:, c:c + 1] * h[c:c + 1, :]
        else:
            y = jnp.dot(w1, h, preferred_element_type=jnp.float32)   # (P, S)

        # --- BN2 bias + ReLU ---
        z = jnp.maximum(y + b2, 0.0)                           # (P, S)

        # --- 3x3 conv (padding=1): per-tap roll + mask + matmul-accumulate ---
        acc = jnp.zeros((G, S), jnp.float32)
        for t, (dh, dw) in enumerate(_TAPS):
            off = dh * W + dw                                  # flattened spatial shift
            if off == 0:
                shifted = z
            else:
                # pltpu.roll: out[i] = x[(i - shift) % S]; shift = -off => z[s + off].
                shifted = pltpu.roll(z, (-off) % S, axis=1)
            if t != 4:                                         # center tap mask is all ones
                shifted = shifted * masks[t:t + 1]             # zero halo / cross-row leak
            acc = acc + jnp.dot(w2_ref[t], shifted,
                                preferred_element_type=jnp.float32)   # (G, S)

        # --- fused torch.cat((x, out), dim=1) ---
        outs.append(jnp.concatenate([x, acc.astype(o_ref.dtype)], axis=0))  # (C+G, S)

    # Single aligned, lane- and sublane-dense full-block store.
    o_ref[...] = jnp.stack(outs, axis=0)                       # (Nb, C+G, S)


def _tap_masks(H, W):
    """(9, H*W) float32 validity masks for the 3x3 taps with padding=1."""
    hh, ww = jnp.meshgrid(jnp.arange(H), jnp.arange(W), indexing="ij")
    hh = hh.reshape(1, H * W)
    ww = ww.reshape(1, H * W)
    rows = []
    for dh, dw in _TAPS:
        valid = ((hh + dh >= 0) & (hh + dh < H) &
                 (ww + dw >= 0) & (ww + dw < W))
        rows.append(valid.astype(jnp.float32))
    return jnp.concatenate(rows, axis=0)


def bottleneck_pallas(x_nchw, params, *, max_nb=8):
    """x_nchw: (N, C, H, W) float32. Returns (N, C + growthRate, H, W)."""
    s1, b1, w1, b2, w2 = params                  # see fold_params() for shapes
    N, C, H, W = x_nchw.shape
    S = H * W
    P = w1.shape[0]
    G = w2.shape[1]

    # Batch Nb images per grid step (amortize per-step overhead), but keep the
    # grid length >= 2 when N >= 2 so both v7x TensorCores get work.
    nb = max(1, min(max_nb, N // 2)) if N >= 2 else 1
    n_pad = (-N) % nb

    x_flat = x_nchw.reshape(N, C, S)             # free reshape (CHW stays contiguous)
    if n_pad:
        x_flat = jnp.concatenate(
            [x_flat, jnp.zeros((n_pad, C, S), x_flat.dtype)], axis=0)
    Np = N + n_pad
    masks = _tap_masks(H, W)                     # (9, S)

    grid_spec = pltpu.PrefetchScalarGridSpec(
        num_scalar_prefetch=0,
        grid=(Np // nb,),
        in_specs=[
            pl.BlockSpec((nb, C, S),  lambda i: (i, 0, 0)),
            pl.BlockSpec((9, S),      lambda i: (0, 0)),
            pl.BlockSpec((C, 1),      lambda i: (0, 0)),
            pl.BlockSpec((C, 1),      lambda i: (0, 0)),
            pl.BlockSpec((P, C),      lambda i: (0, 0)),
            pl.BlockSpec((P, 1),      lambda i: (0, 0)),
            pl.BlockSpec((9, G, P),   lambda i: (0, 0, 0)),
        ],
        out_specs=pl.BlockSpec((nb, C + G, S), lambda i: (i, 0, 0)),
    )

    out_flat = pl.pallas_call(
        functools.partial(_bottleneck_kernel, W, nb),
        out_shape=jax.ShapeDtypeStruct((Np, C + G, S), x_nchw.dtype),
        grid_spec=grid_spec,
        compiler_params=pltpu.CompilerParams(
            dimension_semantics=("parallel",)),
    )(x_flat, masks, s1, b1, w1, b2, w2)

    return out_flat[:N].reshape(N, C + G, H, W)   # free reshape back to NCHW


def fold_params(bn1, conv1_w, bn2, conv2_w, eps=1e-5):
    """Fold eval-mode BatchNorms into the conv weights / biases and reshape conv
    weights for the channels-on-sublanes / spatial-on-lanes formulation."""
    g1, be1, m1, v1 = bn1
    g2, be2, m2, v2 = bn2
    s1 = g1 / jnp.sqrt(v1 + eps)                  # (C,)
    b1 = be1 - m1 * s1
    s2 = g2 / jnp.sqrt(v2 + eps)                  # (P,)
    b2 = be2 - m2 * s2
    # conv1_w: (P, C, 1, 1) -> (P, C); BN2 scale folded into the output channels.
    w1 = conv1_w[:, :, 0, 0] * s2[:, None]
    # conv2_w: (G, P, 3, 3) -> (3, 3, G, P) -> (9, G, P); leading index = kh*3+kw.
    G, P = conv2_w.shape[0], conv2_w.shape[1]
    w2 = jnp.transpose(conv2_w, (2, 3, 0, 1)).reshape(9, G, P)
    return (s1[:, None], b1[:, None], w1, b2[:, None], w2)


def reference_jax(x_nchw, bn1, conv1_w, bn2, conv2_w, eps=1e-5):
    """Pure-JAX reference (eval-mode BN) for verification."""
    g1, be1, m1, v1 = bn1
    g2, be2, m2, v2 = bn2
    h = (x_nchw - m1[None, :, None, None]) / jnp.sqrt(v1 + eps)[None, :, None, None]
    h = h * g1[None, :, None, None] + be1[None, :, None, None]
    h = jnp.maximum(h, 0.0)
    y = lax.conv_general_dilated(h, conv1_w, (1, 1), "VALID",
                                 dimension_numbers=("NCHW", "OIHW", "NCHW"))
    z = (y - m2[None, :, None, None]) / jnp.sqrt(v2 + eps)[None, :, None, None]
    z = z * g2[None, :, None, None] + be2[None, :, None, None]
    z = jnp.maximum(z, 0.0)
    o = lax.conv_general_dilated(z, conv2_w, (1, 1), ((1, 1), (1, 1)),
                                 dimension_numbers=("NCHW", "OIHW", "NCHW"))
    return jnp.concatenate([x_nchw, o], axis=1)


if __name__ == "__main__":
    # Module hyperparameters (PyTorch defaults, small shapes)
    inplanes, expansion, growthRate = 4, 4, 12
    planes = expansion * growthRate          # 48
    N, H, W = 4, 16, 16                      # N=4 -> Nb=2 images/step, grid=(2,)
    # dropRate = 0 (default) -> dropout is a no-op.
    # TODO(synk): dropout for dropRate > 0 (training mode) is not implemented.

    key = jax.random.PRNGKey(0)
    ks = jax.random.split(key, 11)

    x = jax.random.normal(ks[0], (N, inplanes, H, W), jnp.float32)

    # BatchNorm parameters (deterministic, eval-mode running stats)
    bn1 = (jax.random.normal(ks[1], (inplanes,)) * 0.1 + 1.0,   # gamma
           jax.random.normal(ks[2], (inplanes,)) * 0.1,         # beta
           jax.random.normal(ks[3], (inplanes,)) * 0.1,         # running_mean
           jax.random.uniform(ks[4], (inplanes,), minval=0.5, maxval=1.5))  # running_var
    bn2 = (jax.random.normal(ks[5], (planes,)) * 0.1 + 1.0,
           jax.random.normal(ks[6], (planes,)) * 0.1,
           jax.random.normal(ks[7], (planes,)) * 0.1,
           jax.random.uniform(ks[8], (planes,), minval=0.5, maxval=1.5))

    # Conv weights (deterministic)
    conv1_w = jax.random.normal(ks[9], (planes, inplanes, 1, 1), jnp.float32) * 0.3
    conv2_w = jax.random.normal(ks[10], (growthRate, planes, 3, 3), jnp.float32) * 0.05

    params = fold_params(bn1, conv1_w, bn2, conv2_w)

    out = jax.block_until_ready(bottleneck_pallas(x, params))
    ref = jax.block_until_ready(reference_jax(x, bn1, conv1_w, bn2, conv2_w))

    assert out.shape == (N, inplanes + growthRate, H, W)
    assert jnp.max(jnp.abs(out - ref)) < 1e-4

    print("KERNEL_OK")
</pallas_src>

<mosaic_0001>
module attributes {stable_mosaic.version = 11 : i64} {
  func.func @_bottleneck_kernel(%arg0: i32, %arg1: memref<2x4x256xf32, #tpu.memory_space<vmem>>, %arg2: memref<9x256xf32, #tpu.memory_space<vmem>>, %arg3: memref<4x1xf32, #tpu.memory_space<vmem>>, %arg4: memref<4x1xf32, #tpu.memory_space<vmem>>, %arg5: memref<48x4xf32, #tpu.memory_space<vmem>>, %arg6: memref<48x1xf32, #tpu.memory_space<vmem>>, %arg7: memref<9x12x48xf32, #tpu.memory_space<vmem>>, %arg8: memref<2x16x256xf32, #tpu.memory_space<vmem>>) attributes {dimension_semantics = [#tpu.dimension_semantics<parallel>], iteration_bounds = array<i64: 2>, scalar_prefetch = 0 : i64, scratch_operands = 0 : i64, tpu.core_type = #tpu.core_type<tc>, window_params = [{transform_indices = @transform_0, window_bounds = array<i64: 2, 4, 256>}, {pipeline_mode = #tpu.pipeline_mode<synchronous>, transform_indices = @transform_1, window_bounds = array<i64: 9, 256>}, {pipeline_mode = #tpu.pipeline_mode<synchronous>, transform_indices = @transform_2, window_bounds = array<i64: 4, 1>}, {pipeline_mode = #tpu.pipeline_mode<synchronous>, transform_indices = @transform_3, window_bounds = array<i64: 4, 1>}, {pipeline_mode = #tpu.pipeline_mode<synchronous>, transform_indices = @transform_4, window_bounds = array<i64: 48, 4>}, {pipeline_mode = #tpu.pipeline_mode<synchronous>, transform_indices = @transform_5, window_bounds = array<i64: 48, 1>}, {pipeline_mode = #tpu.pipeline_mode<synchronous>, transform_indices = @transform_6, window_bounds = array<i64: 9, 12, 48>}, {transform_indices = @transform_7, window_bounds = array<i64: 2, 16, 256>}]} {
    %c0 = arith.constant 0 : index
    %c0_0 = arith.constant 0 : index
    %0 = vector.load %arg3[%c0, %c0_0] : memref<4x1xf32, #tpu.memory_space<vmem>>, vector<4x1xf32>
    %c0_1 = arith.constant 0 : index
    %c0_2 = arith.constant 0 : index
    %1 = vector.load %arg4[%c0_1, %c0_2] : memref<4x1xf32, #tpu.memory_space<vmem>>, vector<4x1xf32>
    %c0_3 = arith.constant 0 : index
    %c0_4 = arith.constant 0 : index
    %2 = vector.load %arg5[%c0_3, %c0_4] : memref<48x4xf32, #tpu.memory_space<vmem>>, vector<48x4xf32>
    %c0_5 = arith.constant 0 : index
    %c0_6 = arith.constant 0 : index
    %3 = vector.load %arg6[%c0_5, %c0_6] : memref<48x1xf32, #tpu.memory_space<vmem>>, vector<48x1xf32>
    %c0_7 = arith.constant 0 : index
    %c0_8 = arith.constant 0 : index
    %4 = vector.load %arg2[%c0_7, %c0_8] : memref<9x256xf32, #tpu.memory_space<vmem>>, vector<9x256xf32>
    %c0_9 = arith.constant 0 : index
    %c0_10 = arith.constant 0 : index
    %c0_11 = arith.constant 0 : index
    %5 = vector.load %arg1[%c0_9, %c0_10, %c0_11] : memref<2x4x256xf32, #tpu.memory_space<vmem>>, vector<1x4x256xf32>
    %6 = vector.shape_cast %5 : vector<1x4x256xf32> to vector<4x256xf32>
    %7 = vector.broadcast %0 : vector<4x1xf32> to vector<4x256xf32>
    %8 = arith.mulf %6, %7 : vector<4x256xf32>
    %9 = vector.broadcast %1 : vector<4x1xf32> to vector<4x256xf32>
    %10 = arith.addf %8, %9 : vector<4x256xf32>
    %cst = arith.constant 0.000000e+00 : f32
    %11 = vector.broadcast %cst : f32 to vector<4x256xf32>
    %12 = arith.maximumf %10, %11 : vector<4x256xf32>
    %13 = vector.extract_strided_slice %2 {offsets = [0, 0], sizes = [48, 1], strides = [1, 1]} : vector<48x4xf32> to vector<48x1xf32>
    %14 = vector.extract_strided_slice %12 {offsets = [0, 0], sizes = [1, 256], strides = [1, 1]} : vector<4x256xf32> to vector<1x256xf32>
    %15 = vector.broadcast %13 : vector<48x1xf32> to vector<48x256xf32>
    %16 = vector.broadcast %14 : vector<1x256xf32> to vector<48x256xf32>
    %17 = arith.mulf %15, %16 : vector<48x256xf32>
    %18 = vector.extract_strided_slice %2 {offsets = [0, 1], sizes = [48, 1], strides = [1, 1]} : vector<48x4xf32> to vector<48x1xf32>
    %19 = vector.extract_strided_slice %12 {offsets = [1, 0], sizes = [1, 256], strides = [1, 1]} : vector<4x256xf32> to vector<1x256xf32>
    %20 = vector.broadcast %18 : vector<48x1xf32> to vector<48x256xf32>
    %21 = vector.broadcast %19 : vector<1x256xf32> to vector<48x256xf32>
    %22 = arith.mulf %20, %21 : vector<48x256xf32>
    %23 = arith.addf %17, %22 : vector<48x256xf32>
    %24 = vector.extract_strided_slice %2 {offsets = [0, 2], sizes = [48, 1], strides = [1, 1]} : vector<48x4xf32> to vector<48x1xf32>
    %25 = vector.extract_strided_slice %12 {offsets = [2, 0], sizes = [1, 256], strides = [1, 1]} : vector<4x256xf32> to vector<1x256xf32>
    %26 = vector.broadcast %24 : vector<48x1xf32> to vector<48x256xf32>
    %27 = vector.broadcast %25 : vector<1x256xf32> to vector<48x256xf32>
    %28 = arith.mulf %26, %27 : vector<48x256xf32>
    %29 = arith.addf %23, %28 : vector<48x256xf32>
    %30 = vector.extract_strided_slice %2 {offsets = [0, 3], sizes = [48, 1], strides = [1, 1]} : vector<48x4xf32> to vector<48x1xf32>
    %31 = vector.extract_strided_slice %12 {offsets = [3, 0], sizes = [1, 256], strides = [1, 1]} : vector<4x256xf32> to vector<1x256xf32>
    %32 = vector.broadcast %30 : vector<48x1xf32> to vector<48x256xf32>
    %33 = vector.broadcast %31 : vector<1x256xf32> to vector<48x256xf32>
    %34 = arith.mulf %32, %33 : vector<48x256xf32>
    %35 = arith.addf %29, %34 : vector<48x256xf32>
    %36 = vector.broadcast %3 : vector<48x1xf32> to vector<48x256xf32>
    %37 = arith.addf %35, %36 : vector<48x256xf32>
    %cst_12 = arith.constant 0.000000e+00 : f32
    %38 = vector.broadcast %cst_12 : f32 to vector<48x256xf32>
    %39 = arith.maximumf %37, %38 : vector<48x256xf32>
    %cst_13 = arith.constant 0.000000e+00 : f32
    %40 = vector.broadcast %cst_13 : f32 to vector<12x256xf32>
    %c17_i32 = arith.constant 17 : i32
    %41 = tpu.dynamic_rotate %39 by %c17_i32 dim 1 : vector<48x256xf32>, i32 -> vector<48x256xf32>
    %42 = vector.extract_strided_slice %4 {offsets = [0, 0], sizes = [1, 256], strides = [1, 1]} : vector<9x256xf32> to vector<1x256xf32>
    %43 = vector.broadcast %42 : vector<1x256xf32> to vector<48x256xf32>
    %44 = arith.mulf %41, %43 : vector<48x256xf32>
    %c0_14 = arith.constant 0 : index
    %c0_15 = arith.constant 0 : index
    %c0_16 = arith.constant 0 : index
    %45 = vector.load %arg7[%c0_14, %c0_15, %c0_16] : memref<9x12x48xf32, #tpu.memory_space<vmem>>, vector<1x12x48xf32>
    %46 = vector.shape_cast %45 : vector<1x12x48xf32> to vector<12x48xf32>
    %cst_17 = arith.constant dense<0.000000e+00> : vector<12x256xf32>
    %47 = tpu.matmul %46, %44, %cst_17 {dimension_numbers = #tpu.dot_dimension_numbers<[1], [0], [0], [1], [0, 0, 1, 1], [], []>} : vector<12x48xf32>, vector<48x256xf32>, vector<12x256xf32> -> vector<12x256xf32>
    %48 = arith.addf %40, %47 : vector<12x256xf32>
    %c16_i32 = arith.constant 16 : i32
    %49 = tpu.dynamic_rotate %39 by %c16_i32 dim 1 : vector<48x256xf32>, i32 -> vector<48x256xf32>
    %50 = vector.extract_strided_slice %4 {offsets = [1, 0], sizes = [1, 256], strides = [1, 1]} : vector<9x256xf32> to vector<1x256xf32>
    %51 = vector.broadcast %50 : vector<1x256xf32> to vector<48x256xf32>
    %52 = arith.mulf %49, %51 : vector<48x256xf32>
    %c1 = arith.constant 1 : index
    %c0_18 = arith.constant 0 : index
    %c0_19 = arith.constant 0 : index
    %53 = vector.load %arg7[%c1, %c0_18, %c0_19] : memref<9x12x48xf32, #tpu.memory_space<vmem>>, vector<1x12x48xf32>
    %54 = vector.shape_cast %53 : vector<1x12x48xf32> to vector<12x48xf32>
    %cst_20 = arith.constant dense<0.000000e+00> : vector<12x256xf32>
    %55 = tpu.matmul %54, %52, %cst_20 {dimension_numbers = #tpu.dot_dimension_numbers<[1], [0], [0], [1], [0, 0, 1, 1], [], []>} : vector<12x48xf32>, vector<48x256xf32>, vector<12x256xf32> -> vector<12x256xf32>
    %56 = arith.addf %48, %55 : vector<12x256xf32>
    %c15_i32 = arith.constant 15 : i32
    %57 = tpu.dynamic_rotate %39 by %c15_i32 dim 1 : vector<48x256xf32>, i32 -> vector<48x256xf32>
    %58 = vector.extract_strided_slice %4 {offsets = [2, 0], sizes = [1, 256], strides = [1, 1]} : vector<9x256xf32> to vector<1x256xf32>
    %59 = vector.broadcast %58 : vector<1x256xf32> to vector<48x256xf32>
    %60 = arith.mulf %57, %59 : vector<48x256xf32>
    %c2 = arith.constant 2 : index
    %c0_21 = arith.constant 0 : index
    %c0_22 = arith.constant 0 : index
    %61 = vector.load %arg7[%c2, %c0_21, %c0_22] : memref<9x12x48xf32, #tpu.memory_space<vmem>>, vector<1x12x48xf32>
    %62 = vector.shape_cast %61 : vector<1x12x48xf32> to vector<12x48xf32>
    %cst_23 = arith.constant dense<0.000000e+00> : vector<12x256xf32>
    %63 = tpu.matmul %62, %60, %cst_23 {dimension_numbers = #tpu.dot_dimension_numbers<[1], [0], [0], [1], [0, 0, 1, 1], [], []>} : vector<12x48xf32>, vector<48x256xf32>, vector<12x256xf32> -> vector<12x256xf32>
    %64 = arith.addf %56, %63 : vector<12x256xf32>
    %c1_i32 = arith.constant 1 : i32
    %65 = tpu.dynamic_rotate %39 by %c1_i32 dim 1 : vector<48x256xf32>, i32 -> vector<48x256xf32>
    %66 = vector.extract_strided_slice %4 {offsets = [3, 0], sizes = [1, 256], strides = [1, 1]} : vector<9x256xf32> to vector<1x256xf32>
    %67 = vector.broadcast %66 : vector<1x256xf32> to vector<48x256xf32>
    %68 = arith.mulf %65, %67 : vector<48x256xf32>
    %c3 = arith.constant 3 : index
    %c0_24 = arith.constant 0 : index
    %c0_25 = arith.constant 0 : index
    %69 = vector.load %arg7[%c3, %c0_24, %c0_25] : memref<9x12x48xf32, #tpu.memory_space<vmem>>, vector<1x12x48xf32>
    %70 = vector.shape_cast %69 : vector<1x12x48xf32> to vector<12x48xf32>
    %cst_26 = arith.constant dense<0.000000e+00> : vector<12x256xf32>
    %71 = tpu.matmul %70, %68, %cst_26 {dimension_numbers = #tpu.dot_dimension_numbers<[1], [0], [0], [1], [0, 0, 1, 1], [], []>} : vector<12x48xf32>, vector<48x256xf32>, vector<12x256xf32> -> vector<12x256xf32>
    %72 = arith.addf %64, %71 : vector<12x256xf32>
    %c4 = arith.constant 4 : index
    %c0_27 = arith.constant 0 : index
    %c0_28 = arith.constant 0 : index
    %73 = vector.load %arg7[%c4, %c0_27, %c0_28] : memref<9x12x48xf32, #tpu.memory_space<vmem>>, vector<1x12x48xf32>
    %74 = vector.shape_cast %73 : vector<1x12x48xf32> to vector<12x48xf32>
    %cst_29 = arith.constant dense<0.000000e+00> : vector<12x256xf32>
    %75 = tpu.matmul %74, %39, %cst_29 {dimension_numbers = #tpu.dot_dimension_numbers<[1], [0], [0], [1], [0, 0, 1, 1], [], []>} : vector<12x48xf32>, vector<48x256xf32>, vector<12x256xf32> -> vector<12x256xf32>
    %76 = arith.addf %72, %75 : vector<12x256xf32>
    %c255_i32 = arith.constant 255 : i32
    %77 = tpu.dynamic_rotate %39 by %c255_i32 dim 1 : vector<48x256xf32>, i32 -> vector<48x256xf32>
    %78 = vector.extract_strided_slice %4 {offsets = [5, 0], sizes = [1, 256], strides = [1, 1]} : vector<9x256xf32> to vector<1x256xf32>
    %79 = vector.broadcast %78 : vector<1x256xf32> to vector<48x256xf32>
    %80 = arith.mulf %77, %79 : vector<48x256xf32>
    %c5 = arith.constant 5 : index
    %c0_30 = arith.constant 0 : index
    %c0_31 = arith.constant 0 : index
    %81 = vector.load %arg7[%c5, %c0_30, %c0_31] : memref<9x12x48xf32, #tpu.memory_space<vmem>>, vector<1x12x48xf32>
    %82 = vector.shape_cast %81 : vector<1x12x48xf32> to vector<12x48xf32>
    %cst_32 = arith.constant dense<0.000000e+00> : vector<12x256xf32>
    %83 = tpu.matmul %82, %80, %cst_32 {dimension_numbers = #tpu.dot_dimension_numbers<[1], [0], [0], [1], [0, 0, 1, 1], [], []>} : vector<12x48xf32>, vector<48x256xf32>, vector<12x256xf32> -> vector<12x256xf32>
    %84 = arith.addf %76, %83 : vector<12x256xf32>
    %c241_i32 = arith.constant 241 : i32
    %85 = tpu.dynamic_rotate %39 by %c241_i32 dim 1 : vector<48x256xf32>, i32 -> vector<48x256xf32>
    %86 = vector.extract_strided_slice %4 {offsets = [6, 0], sizes = [1, 256], strides = [1, 1]} : vector<9x256xf32> to vector<1x256xf32>
    %87 = vector.broadcast %86 : vector<1x256xf32> to vector<48x256xf32>
    %88 = arith.mulf %85, %87 : vector<48x256xf32>
    %c6 = arith.constant 6 : index
    %c0_33 = arith.constant 0 : index
    %c0_34 = arith.constant 0 : index
    %89 = vector.load %arg7[%c6, %c0_33, %c0_34] : memref<9x12x48xf32, #tpu.memory_space<vmem>>, vector<1x12x48xf32>
    %90 = vector.shape_cast %89 : vector<1x12x48xf32> to vector<12x48xf32>
    %cst_35 = arith.constant dense<0.000000e+00> : vector<12x256xf32>
    %91 = tpu.matmul %90, %88, %cst_35 {dimension_numbers = #tpu.dot_dimension_numbers<[1], [0], [0], [1], [0, 0, 1, 1], [], []>} : vector<12x48xf32>, vector<48x256xf32>, vector<12x256xf32> -> vector<12x256xf32>
    %92 = arith.addf %84, %91 : vector<12x256xf32>
    %c240_i32 = arith.constant 240 : i32
    %93 = tpu.dynamic_rotate %39 by %c240_i32 dim 1 : vector<48x256xf32>, i32 -> vector<48x256xf32>
    %94 = vector.extract_strided_slice %4 {offsets = [7, 0], sizes = [1, 256], strides = [1, 1]} : vector<9x256xf32> to vector<1x256xf32>
    %95 = vector.broadcast %94 : vector<1x256xf32> to vector<48x256xf32>
    %96 = arith.mulf %93, %95 : vector<48x256xf32>
    %c7 = arith.constant 7 : index
    %c0_36 = arith.constant 0 : index
    %c0_37 = arith.constant 0 : index
    %97 = vector.load %arg7[%c7, %c0_36, %c0_37] : memref<9x12x48xf32, #tpu.memory_space<vmem>>, vector<1x12x48xf32>
    %98 = vector.shape_cast %97 : vector<1x12x48xf32> to vector<12x48xf32>
    %cst_38 = arith.constant dense<0.000000e+00> : vector<12x256xf32>
    %99 = tpu.matmul %98, %96, %cst_38 {dimension_numbers = #tpu.dot_dimension_numbers<[1], [0], [0], [1], [0, 0, 1, 1], [], []>} : vector<12x48xf32>, vector<48x256xf32>, vector<12x256xf32> -> vector<12x256xf32>
    %100 = arith.addf %92, %99 : vector<12x256xf32>
    %c239_i32 = arith.constant 239 : i32
    %101 = tpu.dynamic_rotate %39 by %c239_i32 dim 1 : vector<48x256xf32>, i32 -> vector<48x256xf32>
    %102 = vector.extract_strided_slice %4 {offsets = [8, 0], sizes = [1, 256], strides = [1, 1]} : vector<9x256xf32> to vector<1x256xf32>
    %103 = vector.broadcast %102 : vector<1x256xf32> to vector<48x256xf32>
    %104 = arith.mulf %101, %103 : vector<48x256xf32>
    %c8 = arith.constant 8 : index
    %c0_39 = arith.constant 0 : index
    %c0_40 = arith.constant 0 : index
    %105 = vector.load %arg7[%c8, %c0_39, %c0_40] : memref<9x12x48xf32, #tpu.memory_space<vmem>>, vector<1x12x48xf32>
    %106 = vector.shape_cast %105 : vector<1x12x48xf32> to vector<12x48xf32>
    %cst_41 = arith.constant dense<0.000000e+00> : vector<12x256xf32>
    %107 = tpu.matmul %106, %104, %cst_41 {dimension_numbers = #tpu.dot_dimension_numbers<[1], [0], [0], [1], [0, 0, 1, 1], [], []>} : vector<12x48xf32>, vector<48x256xf32>, vector<12x256xf32> -> vector<12x256xf32>
    %108 = arith.addf %100, %107 : vector<12x256xf32>
    %109 = tpu.concatenate %6, %108 in 0 : vector<4x256xf32>, vector<12x256xf32> -> vector<16x256xf32>
    %c1_42 = arith.constant 1 : index
    %c0_43 = arith.constant 0 : index
    %c0_44 = arith.constant 0 : index
    %110 = vector.load %arg1[%c1_42, %c0_43, %c0_44] : memref<2x4x256xf32, #tpu.memory_space<vmem>>, vector<1x4x256xf32>
    %111 = vector.shape_cast %110 : vector<1x4x256xf32> to vector<4x256xf32>
    %112 = vector.broadcast %0 : vector<4x1xf32> to vector<4x256xf32>
    %113 = arith.mulf %111, %112 : vector<4x256xf32>
    %114 = vector.broadcast %1 : vector<4x1xf32> to vector<4x256xf32>
    %115 = arith.addf %113, %114 : vector<4x256xf32>
    %cst_45 = arith.constant 0.000000e+00 : f32
    %116 = vector.broadcast %cst_45 : f32 to vector<4x256xf32>
    %117 = arith.maximumf %115, %116 : vector<4x256xf32>
    %118 = vector.extract_strided_slice %2 {offsets = [0, 0], sizes = [48, 1], strides = [1, 1]} : vector<48x4xf32> to vector<48x1xf32>
    %119 = vector.extract_strided_slice %117 {offsets = [0, 0], sizes = [1, 256], strides = [1, 1]} : vector<4x256xf32> to vector<1x256xf32>
    %120 = vector.broadcast %118 : vector<48x1xf32> to vector<48x256xf32>
    %121 = vector.broadcast %119 : vector<1x256xf32> to vector<48x256xf32>
    %122 = arith.mulf %120, %121 : vector<48x256xf32>
    %123 = vector.extract_strided_slice %2 {offsets = [0, 1], sizes = [48, 1], strides = [1, 1]} : vector<48x4xf32> to vector<48x1xf32>
    %124 = vector.extract_strided_slice %117 {offsets = [1, 0], sizes = [1, 256], strides = [1, 1]} : vector<4x256xf32> to vector<1x256xf32>
    %125 = vector.broadcast %123 : vector<48x1xf32> to vector<48x256xf32>
    %126 = vector.broadcast %124 : vector<1x256xf32> to vector<48x256xf32>
    %127 = arith.mulf %125, %126 : vector<48x256xf32>
    %128 = arith.addf %122, %127 : vector<48x256xf32>
    %129 = vector.extract_strided_slice %2 {offsets = [0, 2], sizes = [48, 1], strides = [1, 1]} : vector<48x4xf32> to vector<48x1xf32>
    %130 = vector.extract_strided_slice %117 {offsets = [2, 0], sizes = [1, 256], strides = [1, 1]} : vector<4x256xf32> to vector<1x256xf32>
    %131 = vector.broadcast %129 : vector<48x1xf32> to vector<48x256xf32>
    %132 = vector.broadcast %130 : vector<1x256xf32> to vector<48x256xf32>
    %133 = arith.mulf %131, %132 : vector<48x256xf32>
    %134 = arith.addf %128, %133 : vector<48x256xf32>
    %135 = vector.extract_strided_slice %2 {offsets = [0, 3], sizes = [48, 1], strides = [1, 1]} : vector<48x4xf32> to vector<48x1xf32>
    %136 = vector.extract_strided_slice %117 {offsets = [3, 0], sizes = [1, 256], strides = [1, 1]} : vector<4x256xf32> to vector<1x256xf32>
    %137 = vector.broadcast %135 : vector<48x1xf32> to vector<48x256xf32>
    %138 = vector.broadcast %136 : vector<1x256xf32> to vector<48x256xf32>
    %139 = arith.mulf %137, %138 : vector<48x256xf32>
    %140 = arith.addf %134, %139 : vector<48x256xf32>
    %141 = vector.broadcast %3 : vector<48x1xf32> to vector<48x256xf32>
    %142 = arith.addf %140, %141 : vector<48x256xf32>
    %cst_46 = arith.constant 0.000000e+00 : f32
    %143 = vector.broadcast %cst_46 : f32 to vector<48x256xf32>
    %144 = arith.maximumf %142, %143 : vector<48x256xf32>
    %cst_47 = arith.constant 0.000000e+00 : f32
    %145 = vector.broadcast %cst_47 : f32 to vector<12x256xf32>
    %c17_i32_48 = arith.constant 17 : i32
    %146 = tpu.dynamic_rotate %144 by %c17_i32_48 dim 1 : vector<48x256xf32>, i32 -> vector<48x256xf32>
    %147 = vector.extract_strided_slice %4 {offsets = [0, 0], sizes = [1, 256], strides = [1, 1]} : vector<9x256xf32> to vector<1x256xf32>
    %148 = vector.broadcast %147 : vector<1x256xf32> to vector<48x256xf32>
    %149 = arith.mulf %146, %148 : vector<48x256xf32>
    %c0_49 = arith.constant 0 : index
    %c0_50 = arith.constant 0 : index
    %c0_51 = arith.constant 0 : index
    %150 = vector.load %arg7[%c0_49, %c0_50, %c0_51] : memref<9x12x48xf32, #tpu.memory_space<vmem>>, vector<1x12x48xf32>
    %151 = vector.shape_cast %150 : vector<1x12x48xf32> to vector<12x48xf32>
    %cst_52 = arith.constant dense<0.000000e+00> : vector<12x256xf32>
    %152 = tpu.matmul %151, %149, %cst_52 {dimension_numbers = #tpu.dot_dimension_numbers<[1], [0], [0], [1], [0, 0, 1, 1], [], []>} : vector<12x48xf32>, vector<48x256xf32>, vector<12x256xf32> -> vector<12x256xf32>
    %153 = arith.addf %145, %152 : vector<12x256xf32>
    %c16_i32_53 = arith.constant 16 : i32
    %154 = tpu.dynamic_rotate %144 by %c16_i32_53 dim 1 : vector<48x256xf32>, i32 -> vector<48x256xf32>
    %155 = vector.extract_strided_slice %4 {offsets = [1, 0], sizes = [1, 256], strides = [1, 1]} : vector<9x256xf32> to vector<1x256xf32>
    %156 = vector.broadcast %155 : vector<1x256xf32> to vector<48x256xf32>
    %157 = arith.mulf %154, %156 : vector<48x256xf32>
    %c1_54 = arith.constant 1 : index
    %c0_55 = arith.constant 0 : index
    %c0_56 = arith.constant 0 : index
    %158 = vector.load %arg7[%c1_54, %c0_55, %c0_56] : memref<9x12x48xf32, #tpu.memory_space<vmem>>, vector<1x12x48xf32>
    %159 = vector.shape_cast %158 : vector<1x12x48xf32> to vector<12x48xf32>
    %cst_57 = arith.constant dense<0.000000e+00> : vector<12x256xf32>
    %160 = tpu.matmul %159, %157, %cst_57 {dimension_numbers = #tpu.dot_dimension_numbers<[1], [0], [0], [1], [0, 0, 1, 1], [], []>} : vector<12x48xf32>, vector<48x256xf32>, vector<12x256xf32> -> vector<12x256xf32>
    %161 = arith.addf %153, %160 : vector<12x256xf32>
    %c15_i32_58 = arith.constant 15 : i32
    %162 = tpu.dynamic_rotate %144 by %c15_i32_58 dim 1 : vector<48x256xf32>, i32 -> vector<48x256xf32>
    %163 = vector.extract_strided_slice %4 {offsets = [2, 0], sizes = [1, 256], strides = [1, 1]} : vector<9x256xf32> to vector<1x256xf32>
    %164 = vector.broadcast %163 : vector<1x256xf32> to vector<48x256xf32>
    %165 = arith.mulf %162, %164 : vector<48x256xf32>
    %c2_59 = arith.constant 2 : index
    %c0_60 = arith.constant 0 : index
    %c0_61 = arith.constant 0 : index
    %166 = vector.load %arg7[%c2_59, %c0_60, %c0_61] : memref<9x12x48xf32, #tpu.memory_space<vmem>>, vector<1x12x48xf32>
    %167 = vector.shape_cast %166 : vector<1x12x48xf32> to vector<12x48xf32>
    %cst_62 = arith.constant dense<0.000000e+00> : vector<12x256xf32>
    %168 = tpu.matmul %167, %165, %cst_62 {dimension_numbers = #tpu.dot_dimension_numbers<[1], [0], [0], [1], [0, 0, 1, 1], [], []>} : vector<12x48xf32>, vector<48x256xf32>, vector<12x256xf32> -> vector<12x256xf32>
    %169 = arith.addf %161, %168 : vector<12x256xf32>
    %c1_i32_63 = arith.constant 1 : i32
    %170 = tpu.dynamic_rotate %144 by %c1_i32_63 dim 1 : vector<48x256xf32>, i32 -> vector<48x256xf32>
    %171 = vector.extract_strided_slice %4 {offsets = [3, 0], sizes = [1, 256], strides = [1, 1]} : vector<9x256xf32> to vector<1x256xf32>
    %172 = vector.broadcast %171 : vector<1x256xf32> to vector<48x256xf32>
    %173 = arith.mulf %170, %172 : vector<48x256xf32>
    %c3_64 = arith.constant 3 : index
    %c0_65 = arith.constant 0 : index
    %c0_66 = arith.constant 0 : index
    %174 = vector.load %arg7[%c3_64, %c0_65, %c0_66] : memref<9x12x48xf32, #tpu.memory_space<vmem>>, vector<1x12x48xf32>
    %175 = vector.shape_cast %174 : vector<1x12x48xf32> to vector<12x48xf32>
    %cst_67 = arith.constant dense<0.000000e+00> : vector<12x256xf32>
    %176 = tpu.matmul %175, %173, %cst_67 {dimension_numbers = #tpu.dot_dimension_numbers<[1], [0], [0], [1], [0, 0, 1, 1], [], []>} : vector<12x48xf32>, vector<48x256xf32>, vector<12x256xf32> -> vector<12x256xf32>
    %177 = arith.addf %169, %176 : vector<12x256xf32>
    %c4_68 = arith.constant 4 : index
    %c0_69 = arith.constant 0 : index
    %c0_70 = arith.constant 0 : index
    %178 = vector.load %arg7[%c4_68, %c0_69, %c0_70] : memref<9x12x48xf32, #tpu.memory_space<vmem>>, vector<1x12x48xf32>
    %179 = vector.shape_cast %178 : vector<1x12x48xf32> to vector<12x48xf32>
    %cst_71 = arith.constant dense<0.000000e+00> : vector<12x256xf32>
    %180 = tpu.matmul %179, %144, %cst_71 {dimension_numbers = #tpu.dot_dimension_numbers<[1], [0], [0], [1], [0, 0, 1, 1], [], []>} : vector<12x48xf32>, vector<48x256xf32>, vector<12x256xf32> -> vector<12x256xf32>
    %181 = arith.addf %177, %180 : vector<12x256xf32>
    %c255_i32_72 = arith.constant 255 : i32
    %182 = tpu.dynamic_rotate %144 by %c255_i32_72 dim 1 : vector<48x256xf32>, i32 -> vector<48x256xf32>
    %183 = vector.extract_strided_slice %4 {offsets = [5, 0], sizes = [1, 256], strides = [1, 1]} : vector<9x256xf32> to vector<1x256xf32>
    %184 = vector.broadcast %183 : vector<1x256xf32> to vector<48x256xf32>
    %185 = arith.mulf %182, %184 : vector<48x256xf32>
    %c5_73 = arith.constant 5 : index
    %c0_74 = arith.constant 0 : index
    %c0_75 = arith.constant 0 : index
    %186 = vector.load %arg7[%c5_73, %c0_74, %c0_75] : memref<9x12x48xf32, #tpu.memory_space<vmem>>, vector<1x12x48xf32>
    %187 = vector.shape_cast %186 : vector<1x12x48xf32> to vector<12x48xf32>
    %cst_76 = arith.constant dense<0.000000e+00> : vector<12x256xf32>
    %188 = tpu.matmul %187, %185, %cst_76 {dimension_numbers = #tpu.dot_dimension_numbers<[1], [0], [0], [1], [0, 0, 1, 1], [], []>} : vector<12x48xf32>, vector<48x256xf32>, vector<12x256xf32> -> vector<12x256xf32>
    %189 = arith.addf %181, %188 : vector<12x256xf32>
    %c241_i32_77 = arith.constant 241 : i32
    %190 = tpu.dynamic_rotate %144 by %c241_i32_77 dim 1 : vector<48x256xf32>, i32 -> vector<48x256xf32>
    %191 = vector.extract_strided_slice %4 {offsets = [6, 0], sizes = [1, 256], strides = [1, 1]} : vector<9x256xf32> to vector<1x256xf32>
    %192 = vector.broadcast %191 : vector<1x256xf32> to vector<48x256xf32>
    %193 = arith.mulf %190, %192 : vector<48x256xf32>
    %c6_78 = arith.constant 6 : index
    %c0_79 = arith.constant 0 : index
    %c0_80 = arith.constant 0 : index
    %194 = vector.load %arg7[%c6_78, %c0_79, %c0_80] : memref<9x12x48xf32, #tpu.memory_space<vmem>>, vector<1x12x48xf32>
    %195 = vector.shape_cast %194 : vector<1x12x48xf32> to vector<12x48xf32>
    %cst_81 = arith.constant dense<0.000000e+00> : vector<12x256xf32>
    %196 = tpu.matmul %195, %193, %cst_81 {dimension_numbers = #tpu.dot_dimension_numbers<[1], [0], [0], [1], [0, 0, 1, 1], [], []>} : vector<12x48xf32>, vector<48x256xf32>, vector<12x256xf32> -> vector<12x256xf32>
    %197 = arith.addf %189, %196 : vector<12x256xf32>
    %c240_i32_82 = arith.constant 240 : i32
    %198 = tpu.dynamic_rotate %144 by %c240_i32_82 dim 1 : vector<48x256xf32>, i32 -> vector<48x256xf32>
    %199 = vector.extract_strided_slice %4 {offsets = [7, 0], sizes = [1, 256], strides = [1, 1]} : vector<9x256xf32> to vector<1x256xf32>
    %200 = vector.broadcast %199 : vector<1x256xf32> to vector<48x256xf32>
    %201 = arith.mulf %198, %200 : vector<48x256xf32>
    %c7_83 = arith.constant 7 : index
    %c0_84 = arith.constant 0 : index
    %c0_85 = arith.constant 0 : index
    %202 = vector.load %arg7[%c7_83, %c0_84, %c0_85] : memref<9x12x48xf32, #tpu.memory_space<vmem>>, vector<1x12x48xf32>
    %203 = vector.shape_cast %202 : vector<1x12x48xf32> to vector<12x48xf32>
    %cst_86 = arith.constant dense<0.000000e+00> : vector<12x256xf32>
    %204 = tpu.matmul %203, %201, %cst_86 {dimension_numbers = #tpu.dot_dimension_numbers<[1], [0], [0], [1], [0, 0, 1, 1], [], []>} : vector<12x48xf32>, vector<48x256xf32>, vector<12x256xf32> -> vector<12x256xf32>
    %205 = arith.addf %197, %204 : vector<12x256xf32>
    %c239_i32_87 = arith.constant 239 : i32
    %206 = tpu.dynamic_rotate %144 by %c239_i32_87 dim 1 : vector<48x256xf32>, i32 -> vector<48x256xf32>
    %207 = vector.extract_strided_slice %4 {offsets = [8, 0], sizes = [1, 256], strides = [1, 1]} : vector<9x256xf32> to vector<1x256xf32>
    %208 = vector.broadcast %207 : vector<1x256xf32> to vector<48x256xf32>
    %209 = arith.mulf %206, %208 : vector<48x256xf32>
    %c8_88 = arith.constant 8 : index
    %c0_89 = arith.constant 0 : index
    %c0_90 = arith.constant 0 : index
    %210 = vector.load %arg7[%c8_88, %c0_89, %c0_90] : memref<9x12x48xf32, #tpu.memory_space<vmem>>, vector<1x12x48xf32>
    %211 = vector.shape_cast %210 : vector<1x12x48xf32> to vector<12x48xf32>
    %cst_91 = arith.constant dense<0.000000e+00> : vector<12x256xf32>
    %212 = tpu.matmul %211, %209, %cst_91 {dimension_numbers = #tpu.dot_dimension_numbers<[1], [0], [0], [1], [0, 0, 1, 1], [], []>} : vector<12x48xf32>, vector<48x256xf32>, vector<12x256xf32> -> vector<12x256xf32>
    %213 = arith.addf %205, %212 : vector<12x256xf32>
    %214 = tpu.concatenate %111, %213 in 0 : vector<4x256xf32>, vector<12x256xf32> -> vector<16x256xf32>
    %215 = vector.shape_cast %109 : vector<16x256xf32> to vector<1x16x256xf32>
    %216 = vector.shape_cast %214 : vector<16x256xf32> to vector<1x16x256xf32>
    %217 = tpu.concatenate %215, %216 in 0 : vector<1x16x256xf32>, vector<1x16x256xf32> -> vector<2x16x256xf32>
    %c0_92 = arith.constant 0 : index
    %c0_93 = arith.constant 0 : index
    %c0_94 = arith.constant 0 : index
    %218 = vector.load %arg8[%c0_92, %c0_93, %c0_94] : memref<2x16x256xf32, #tpu.memory_space<vmem>>, vector<2x16x256xf32>
    tpu.vector_store %arg8[%c0_92, %c0_93, %c0_94], %217 {strides = array<i32>} : memref<2x16x256xf32, #tpu.memory_space<vmem>>, vector<2x16x256xf32>,
    return
  }
  func.func @transform_0(%arg0: i32) -> (i32, i32, i32) {
    %c0_i32 = arith.constant 0 : i32
    %c0_i32_0 = arith.constant 0 : i32
    %c0_i32_1 = arith.constant 0 : i32
    return %arg0, %c0_i32, %c0_i32_0 : i32, i32, i32
  }
  func.func @transform_1(%arg0: i32) -> (i32, i32) {
    %c0_i32 = arith.constant 0 : i32
    %c0_i32_0 = arith.constant 0 : i32
    %c0_i32_1 = arith.constant 0 : i32
    return %c0_i32, %c0_i32_0 : i32, i32
  }
  func.func @transform_2(%arg0: i32) -> (i32, i32) {
    %c0_i32 = arith.constant 0 : i32
    %c0_i32_0 = arith.constant 0 : i32
    %c0_i32_1 = arith.constant 0 : i32
    return %c0_i32, %c0_i32_0 : i32, i32
  }
  func.func @transform_3(%arg0: i32) -> (i32, i32) {
    %c0_i32 = arith.constant 0 : i32
    %c0_i32_0 = arith.constant 0 : i32
    %c0_i32_1 = arith.constant 0 : i32
    return %c0_i32, %c0_i32_0 : i32, i32
  }
  func.func @transform_4(%arg0: i32) -> (i32, i32) {
    %c0_i32 = arith.constant 0 : i32
    %c0_i32_0 = arith.constant 0 : i32
    %c0_i32_1 = arith.constant 0 : i32
    return %c0_i32, %c0_i32_0 : i32, i32
  }
  func.func @transform_5(%arg0: i32) -> (i32, i32) {
    %c0_i32 = arith.constant 0 : i32
    %c0_i32_0 = arith.constant 0 : i32
    %c0_i32_1 = arith.constant 0 : i32
    return %c0_i32, %c0_i32_0 : i32, i32
  }
  func.func @transform_6(%arg0: i32) -> (i32, i32, i32) {
    %c0_i32 = arith.constant 0 : i32
    %c0_i32_0 = arith.constant 0 : i32
    %c0_i32_1 = arith.constant 0 : i32
    %c0_i32_2 = arith.constant 0 : i32
    return %c0_i32, %c0_i32_0, %c0_i32_1 : i32, i32, i32
  }
  func.func @transform_7(%arg0: i32) -> (i32, i32, i32) {
    %c0_i32 = arith.constant 0 : i32
    %c0_i32_0 = arith.constant 0 : i32
    %c0_i32_1 = arith.constant 0 : i32
    return %arg0, %c0_i32, %c0_i32_0 : i32, i32, i32
  }
}

</mosaic_0001>

<bundles_post_ra>
// kernel: tpu_custom_call.1
= control target key start
LH: loop header
LB: loop body
LE: loop exit
PB: predicated region body
PF: predicated region fallthrough
CT: control target
= control target key end

     0   :  { %12 = vsyncpa [#allocation3], 0  ;;  %s5640_s0 = inlined_call_operand.vmem [shape: f32[4,4,256], index: 0, kind: input, shape index: {}]   ;;  %s5641_s1 = inlined_call_operand.vmem [shape: f32[9,256], index: 1, kind: input, shape index: {}]   ;;  %s5642_s2 = inlined_call_operand.vmem [shape: f32[4,1], index: 2, kind: input, shape index: {}]   ;;  %s5643_s3 = inlined_call_operand.vmem [shape: f32[4,1], index: 3, kind: input, shape index: {}]   ;;  %s5644_s4 = inlined_call_operand.vmem [shape: f32[48,4], index: 4, kind: input, shape index: {}]   ;;  %s5645_s5 = inlined_call_operand.vmem [shape: f32[48,1], index: 5, kind: input, shape index: {}]   ;;  %s5646_s6 = inlined_call_operand.hbm [shape: f32[9,12,48], index: 6, kind: input, shape index: {}]   ;;  %s5647_s7 = inlined_call_operand.hbm [shape: f32[4,16,256], index: 7, kind: output, shape index: {}]  }
   0x1   :  { %13 = vsyncpa [#allocation4], 0 }
   0x2   :  { %15 = vsyncpa [#allocation4 + $0x1], 0  ;;  %s3925_s24 = smov 0   ;;  %s3927_s25 = smov 0  }
   0x3   :  { %s3929_s26 = smov 0   ;;  %s3931_s27 = smov 0  }
   0x4 LB: > { %s3946_s28 = sadd.s32 4294967295, %s3864_s27   ;;  %s3344_s29 = sadd.s32 4294967294, %s3864_s27   ;;  %s3864_s27 = sphi %s3931_s27, %s5689_s27   ;;  %s3860_s26 = sphi %s3929_s26, %s5688_s26   ;;  %s3856_s25 = sphi %s3927_s25, %s5687_s25   ;;  %s3852_s24 = sphi %s3925_s24, %s5686_s24  }
   0x5   : > { %s3950_s30 = sadd.s32 1, %s3864_s27   ;;  %s180_s8 = sadd.s32 1, %s3860_s26 }
   0x6   : > { %s177_s9 = ssub.s32 %s3864_s27, %s3950_s30  ;;  %p190_p0 = scmp.ne.s32.totalorder %s3860_s26, %s3856_s25 }
   0x7   : > { %p178_p1 = scmp.eq.s32.totalorder %s177_s9, 0  ;;  %p191_p2 = scmp.eq.s32.totalorder %s3946_s28, 1 }
   0x8   : > { %p196_p3 = scmp.ne.s32.totalorder %s3856_s25, %s3852_s24  ;;  %p197_p4 = scmp.eq.s32.totalorder %s3344_s29, 1 }
   0x9   : > { %s3961_s10 = scalar_select %p178_p1, %s3860_s26, %s180_s8  }
   0xa   : > { %p3963_p5 = por %p191_p2, %p190_p0  ;;  %p3967_p6 = por %p197_p4, %p196_p3 }
   0xb   : > { %p3345_p7 = scmp.ge.s32.totalorder %s3864_s27, 1  ;;  %p204_p8 = scmp.lt.s32.totalorder %s3864_s27, 3 }
   0xc   : > { %s5664_s11 = scalar_select %p3963_p5, 1, 0 }
   0xd   : > { %s5665_s12 = scalar_select %p3967_p6, 1, 0 }
   0xe   : > { %p5648_p9 = scmp.eq.s32.totalorder %s3946_s28, 0  ;;  %p3974_p10 = pnand %p3345_p7, %p204_p8 }
   0xf   : > { %s3866_s14 = smov [#allocation2]   ;;  %s3770_s19 = scalar_lea.hbm %s5646_s6, 2304 }
  0x10   : > { %s5666_s13 = scalar_select %p3974_p10, 1, 0 }
  0x11   : > { %s231_s15 = sshll.u32 %s3866_s14, 4  ;;  %p3688_p11 = pneg %p3974_p10  ;;  %s232_s15 = int_to_ptr.vmem [resolvable:$true] %s231_s15 }
  0x12   : > { %p3771_p13 = scmp.ne.s32.totalorder %s5646_s6, %s3770_s19  ;;  %p3777_p3 = scmp.lt.u32.totalorder %s3770_s19, %s5646_s6 }
  0x13   : > { %p3982_p12 = pnand %p5648_p9, %p3688_p11 }
  0x15   : > { %p3772_p0 = pneg %p3982_p12 }
  0x17   : > { %p3773_p1 = pnand %p3772_p0, %p3771_p13 }
  0x19   : > { %p3774_p2 = pneg %p3773_p1 }
  0x1b   : > { %p3779_p4 = pnand %p3777_p3, %p3774_p2 }
  0x1d   : > { %3782 = shalt.err (!%p3779_p4)
}
  0x1e   : > { %s3783_s29 = scalar_lea.vmem %s232_s15, 2304  ;;  %p3791_p9 = scmp.lt.s32.totalorder %s232_s15, %s232_s15 }
  0x1f   : > { %p3784_p7 = scmp.ne.s32.totalorder %s232_s15, %s3783_s29  ;;  %p3792_p6 = scmp.lt.s32.totalorder %s3783_s29, %s3783_s29 }
  0x21   : > { %p3786_p8 = pnand %p3784_p7, %p3772_p0  ;;  %p3793_p5 = por %p3792_p6, %p3791_p9 }
  0x23   : > { %p3787_p11 = pneg %p3786_p8 }
  0x25   : > { %p3794_p10 = pnand %p3793_p5, %p3787_p11 }
  0x27   : > { %3797 = shalt.err (!%p3794_p10)
}
  0x28   : > { %s3867_s8 = smov 128   ;;  %s3868_s9 = smov 8  }
  0x29   : > { %3691 = dma.hbm_to_vmem [thread:$0]  (!%p3982_p12), %s5646_s6, 2304, %s232_s15, [#allocation3], %s3867_s8, %s3867_s8, %s3868_s9  }
  0x2a   : > { %p5668_p13 = scmp.ne.s32.totalorder %s5666_s13, 0 }
  0x2c   : > { %257 = sbr.rel (%p5668_p13) target bundleno = 997 (0x3e5), region = 48 }
  0x33   : > { %p5669_p1 = scmp.eq.s32.totalorder %s3946_s28, 0 }
  0x35   : > { %3843 = dma.done.wait (%p5669_p1), [#allocation3], 2304   ;;  %p5670_p0 = pmov %p5669_p1 }
  0x36   : > { %v3869_v0 = vmov 1   ;;  %v3870_v1 = vmov 0   ;;  %v300_v2 = vld [vmem:[%s5644_s4] sm:$0xff]  ;;  %v303_v3 = vld [vmem:[%s5644_s4 + $0x18] sm:$0xff]  ;;  %v301_v4 = vld [vmem:[%s5644_s4 + $0x8] sm:$0xff]  ;;  %v3871_v7 = vmov 2   ;;  %v5651_v33 = vlaneseq }
  0x37   : > { %3845 = vsyncadd (%p5670_p0), [#allocation3], 4294964992  ;;  %3750 = vset.pattern.permute.xlu0 %v3869_v0  ;;  %3749 = vset.pattern.permute.xlu1 %v3870_v1  ;;  %v304_v5 = vld [vmem:[%s5644_s4 + $0x20] sm:$0xff]  ;;  %v305_v6 = vld [vmem:[%s5644_s4 + $0x28] sm:$0xff]  ;;  %v3872_v9 = vmov 3   ;;  %s3351_s18 = sshll.u32 %s3946_s28, 1 }
  0x38   : > { %406 = vperm.xlu0 %3750, %v300_v2   ;;  %346 = vperm.xlu1 %3749, %v300_v2   ;;  %v302_v8 = vld [vmem:[%s5644_s4 + $0x10] sm:$0xff]  ;;  %v298_v10 = vld [vmem:[%s5642_s2] sm:$0xf]  ;;  %v307_v14 = vld [vmem:[%s5645_s5 + $0x8] sm:$0xff]  ;;  %p291_p5 = scmp.lt.s32.totalorder %s3351_s18, 3  ;;  %v325_v37 = vshrl.u32 %v5651_v33, 7 }
  0x39   : > { %v299_v11 = vld [vmem:[%s5643_s3] sm:$0xf]  ;;  %v308_v15 = vld [vmem:[%s5645_s5 + $0x10] sm:$0xff]  ;;  %v309_v16 = vld [vmem:[%s5645_s5 + $0x18] sm:$0xff]  ;;  %v3873_v31 = vmov 839922192  }
  0x3a   : > { %v310_v12 = vld [vmem:[%s5645_s5 + $0x20] sm:$0xff]  ;;  %v311_v17 = vld [vmem:[%s5645_s5 + $0x28] sm:$0xff]  ;;  %v322_v32 = vunpack.c.l.s4 %v3873_v31  ;;  %s5691_s18 = smov (!%p291_p5, %s3351_s18), 3  ;;  %v4095_v53 = vsub.s32 0, %v325_v37  ;;  %v381_v54 = vsub.s32 4, %v325_v37  ;;  %v4097_v55 = vsub.s32 1, %v325_v37 }
  0x3b   : > { %v306_v13 = vld [vmem:[%s5645_s5] sm:$0xff]  ;;  %s3399_s19 = sshll.u32 %s5691_s18, 3  ;;  %v4099_v56 = vsub.s32 5, %v325_v37  ;;  %v4101_v57 = vsub.s32 2, %v325_v37  ;;  %v4103_v59 = vsub.s32 6, %v325_v37  ;;  %s3874_s20 = smov 16  }
  0x3c   : > { %418 = vperm.xlu0 %3750, %v303_v3   ;;  %351 = vperm.xlu1 %3749, %v301_v4   ;;  %v323_v36 = vunpack.c.0.s8 %v322_v32  ;;  %s4087_s13 = scalar_lea.vmem %s5640_s0, %s3399_s19  ;;  %5671 = vst [vmem:[#allocation8_spill] sm:$0xff] %v4095_v53  ;;  %s3875_s21 = smov 17   ;;  %vm778_vm1 = vcmask 392192   ;;  %vm1924_vm9 = vcmask 1043456  }
  0x3d   : > { %v316_v42 = vld [vmem:[%s4087_s13] sm:$0xff]  ;;  %v3374_v45 = vld [vmem:[%s4087_s13 + $0x8] sm:$0xff]  ;;  %5672 = vst [vmem:[#allocation9_spill] sm:$0xff] %v4099_v56  ;;  %5673 = vst [vmem:[#allocation10_spill] sm:$0xff] %v4101_v57  ;;  %s3877_s22 = smov 15   ;;  %s3878_s14 = smov 1  }
  0x3e   : > { %v326_v40 = vsub.s32 %v323_v36, %v325_v37  ;;  %5674 = vst [vmem:[#allocation11_spill] sm:$0xff] %v4103_v59  ;;  %s3879_s17 = smov 127   ;;  %s3880_s18 = smov 113  }
  0x3f   : > { %s3881_s19 = smov 112   ;;  %s3882_s23 = smov 111  }
  0x40   : > { %422 = vperm.xlu0 %3750, %v304_v5   ;;  %361 = vperm.xlu1 %3749, %v303_v3   ;;  %p5684_p9 = scmp.ne.s32.totalorder %s5664_s11, 0  ;;  %s3883_s29 = smov [#allocation5]  }
  0x41   : > { %s3802_s8 = sshll.u32 %s3883_s29, 4  ;;  %s3803_s8 = int_to_ptr.vmem [resolvable:$false] %s3802_s8 }
  0x42   : > { %s3804_s9 = scalar_lea.vmem %s3803_s8, 2048 }
  0x44   : > { %3755 = vset.pattern.permute.xlu0 %v3871_v7  ;;  %371 = vperm.xlu1 %3749, %v305_v6  }
  0x45   : > { %476 = vperm.xlu0 %3755, %v301_v4  }
  0x48   : > { %3751 = vset.pattern.permute.xlu1 %v3869_v0 }
  0x49   : > { %480 = vperm.xlu0 %3755, %v302_v8   ;;  %410 = vperm.xlu1 %3751, %v301_v4  }
  0x4d   : > { %488 = vperm.xlu0 %3755, %v304_v5   ;;  %414 = vperm.xlu1 %3751, %v302_v8  }
  0x51   : > { %3759 = vset.pattern.permute.xlu0 %v3872_v9  ;;  %3752 = vset.pattern.permute.xlu1 %v3871_v7 }
  0x52   : > { %550 = vperm.xlu0 %3759, %v303_v3   ;;  %472 = vperm.xlu1 %3752, %v300_v2  }
  0x56   : > { %558 = vperm.xlu0 %3759, %v305_v6   ;;  %3753 = vset.pattern.permute.xlu1 %v3872_v9 }
  0x57   : > { %538 = vperm.xlu1 %3753, %v300_v2  }
  0x5a   : > { %3762 = vset.pattern.permute.xlu0 %v3870_v1 }
  0x5b   : > { %542 = vperm.xlu1 %3753, %v301_v4   ;;  %319 = vperm.xlu0 %3762, %v298_v10   ;;  %v4113_v4 = vsub.s32 3, %v325_v37 }
  0x5d   : > { %5675 = vst [vmem:[#allocation12_spill] sm:$0xff] %v4113_v4 }
  0x5f   : > { %3754 = vset.pattern.permute.xlu1 %v3871_v7  ;;  %332 = vperm.xlu0 %3762, %v299_v11  }
  0x60   : > { %484 = vperm.xlu1 %3754, %v303_v3  }
  0x63   : > { %356 = vperm.xlu0 %3762, %v302_v8  }
  0x64   : > { %3756 = vset.pattern.permute.xlu1 %v3869_v0 }
  0x65   : > { %426 = vperm.xlu1 %3756, %v305_v6  }
  0x67   : > { %366 = vperm.xlu0 %3762, %v304_v5  }
  0x69   : > { %3757 = vset.pattern.permute.xlu1 %v3872_v9 }
  0x6a   : > { %546 = vperm.xlu1 %3757, %v302_v8  }
  0x6b   : > { %625 = vperm.xlu0 %3762, %v310_v12  }
  0x6e   : > { %3758 = vset.pattern.permute.xlu1 %v3870_v1 }
  0x6f   : > { %605 = vperm.xlu1 %3758, %v306_v13  }
  0x73   : > { %610 = vperm.xlu1 %3758, %v307_v14  }
  0x77   : > { %3760 = vset.pattern.permute.xlu1 %v3871_v7 }
  0x78   : > { %492 = vperm.xlu1 %3760, %v305_v6  }
  0x7c   : > { %3761 = vset.pattern.permute.xlu1 %v3872_v9 }
  0x7d   : > { %554 = vperm.xlu1 %3761, %v304_v5   ;;  %v4115_v5 = vsub.s32 7, %v325_v37 }
  0x7f   : > { %5676 = vst [vmem:[#allocation13_spill] sm:$0xff] %v4115_v5 }
  0x81   : > { %3763 = vset.pattern.permute.xlu1 %v3870_v1 }
  0x82   : > { %615 = vperm.xlu1 %3763, %v308_v15  }
  0x86   : > { %620 = vperm.xlu1 %3763, %v309_v16  }
  0x8a   : > { %630 = vperm.xlu1 %3763, %v311_v17  }
  0xb7   : > { %v4050_v18 = vpop.permute.xlu0 %406  ;;  %v4052_v19 = vpop.permute.xlu1 %346 }
  0xbb   : > { %v4054_v20 = vpop.permute.xlu0 %418  ;;  %v4056_v21 = vpop.permute.xlu1 %351 }
  0xbf   : > { %v4058_v22 = vpop.permute.xlu0 %422  ;;  %v4060_v23 = vpop.permute.xlu1 %361 }
  0xc3   : > { %v4064_v25 = vpop.permute.xlu1 %371 }
  0xc4   : > { %v4062_v24 = vpop.permute.xlu0 %476 }
  0xc8   : > { %v4066_v26 = vpop.permute.xlu0 %480  ;;  %v4068_v27 = vpop.permute.xlu1 %410 }
  0xcc   : > { %v4070_v28 = vpop.permute.xlu0 %488  ;;  %v4072_v29 = vpop.permute.xlu1 %414 }
  0xd1   : > { %v4074_v30 = vpop.permute.xlu0 %550  ;;  %v4079_v35 = vpop.permute.xlu1 %472 }
  0xd5   : > { %v4077_v34 = vpop.permute.xlu0 %558 }
  0xd6   : > { %v4082_v39 = vpop.permute.xlu1 %538 }
  0xda   : > { %v320_v38 = vpop.permute.xlu0 %319  ;;  %v4090_v44 = vpop.permute.xlu1 %542 }
  0xdb   : > { %v327_v41 = vrot.slane %v320_v38, %v326_v40 }
  0xdd   : > { %v329_v46 = vmul.f32 %v327_v41, %v316_v42  ;;  %v1939_v48 = vmul.f32 %v3374_v45, %v327_v41 }
  0xde   : > { %v333_v43 = vpop.permute.xlu0 %332 }
  0xdf   : > { %v340_v47 = vrot.slane %v333_v43, %v326_v40  ;;  %v4093_v50 = vpop.permute.xlu1 %484 }
  0xe1   : > { %v342_v49 = vadd.f32 %v340_v47, %v329_v46  ;;  %v1940_v51 = vadd.f32 %v1939_v48, %v340_v47 }
  0xe3   : > { %v343_v52 = vmax.f32 %v342_v49, 0.0  ;;  %v1941_v58 = vmax.f32 %v1940_v51, 0.0 }
  0xe4   : > { %v4105_v60 = vpop.permute.xlu1 %426 }
  0xe5   : > { %v378_v61 = vrot.slane %v343_v52, %v4095_v53  ;;  %v382_v62 = vrot.slane %v343_v52, %v381_v54  ;;  %v432_v63 = vrot.slane %v343_v52, %v4097_v55  ;;  %v436_v0 = vrot.slane %v343_v52, %v4099_v56 }
  0xe6   : > { %v498_v1 = vrot.slane %v343_v52, %v4101_v57  ;;  %v502_v2 = vrot.slane %v343_v52, %v4103_v59  ;;  %v1946_v3 = vrot.slane %v1941_v58, %v4095_v53  ;;  %v1950_v8 = vrot.slane %v1941_v58, %v381_v54 }
  0xe7   : > { %v4118_v6 = vrot.slane %v378_v61, %v4095_v53  ;;  %v4121_v7 = vrot.slane %v382_v62, %v4095_v53  ;;  %v4126_v10 = vrot.slane %v432_v63, %v4097_v55  ;;  %v4129_v11 = vrot.slane %v436_v0, %v4097_v55 }
  0xe8   : > { %v4132_v12 = vrot.slane %v498_v1, %v4101_v57  ;;  %v4135_v13 = vrot.slane %v502_v2, %v4101_v57  ;;  %v4138_v14 = vrot.slane %v1946_v3, %v4095_v53  ;;  %v1976_v15 = vrot.slane %v1941_v58, %v4097_v55 }
  0xe9   : > { %v4123_v9 = vpop.permute.xlu1 %546  ;;  %v1980_v16 = vrot.slane %v1941_v58, %v4099_v56  ;;  %v2018_v17 = vrot.slane %v1941_v58, %v4101_v57  ;;  %v2022_v31 = vrot.slane %v1941_v58, %v4103_v59  ;;  %v564_v32 = vrot.slane %v343_v52, %v4113_v4 }
  0xea   : > { %v568_v36 = vrot.slane %v343_v52, %v4115_v5  ;;  %v4148_v37 = vmul.f32 %v4118_v6, %v4060_v23  ;;  %v4152_v38 = vmul.f32 %v4121_v7, %v4060_v23  ;;  %v4155_v40 = vrot.slane %v1950_v8, %v4095_v53 }
  0xeb   : > { %v2060_v41 = vrot.slane %v1941_v58, %v4113_v4  ;;  %v4159_v42 = vrot.slane %v564_v32, %v4113_v4  ;;  %v393_v45 = vmul.f32 %v4118_v6, %v4052_v19  ;;  %v394_v46 = vmul.f32 %v4121_v7, %v4052_v19 }
  0xec   : > { %v4162_v43 = vrot.slane %v568_v36, %v4113_v4  ;;  %v4169_v47 = vrot.slane %v1976_v15, %v4097_v55  ;;  %v4172_v48 = vrot.slane %v1980_v16, %v4097_v55  ;;  %v447_v51 = vmul.f32 %v4126_v10, %v4050_v18 }
  0xed   : > { %v448_v52 = vmul.f32 %v4129_v11, %v4050_v18  ;;  %v4181_v54 = vrot.slane %v2018_v17, %v4101_v57  ;;  %v4184_v61 = vrot.slane %v2022_v31, %v4101_v57  ;;  %v2064_v62 = vrot.slane %v1941_v58, %v4115_v5 }
  0xee   : > { %v4174_v49 = vpop.permute.xlu1 %605  ;;  %v4188_v63 = vrot.slane %v2060_v41, %v4113_v4  ;;  %v459_v0 = vadd.f32 %v447_v51, %v393_v45  ;;  %v513_v2 = vmul.f32 %v4132_v12, %v4079_v35  ;;  %v514_v3 = vmul.f32 %v4135_v13, %v4079_v35 }
  0xef   : > { %v460_v1 = vadd.f32 %v448_v52, %v394_v46  ;;  %v579_v8 = vmul.f32 %v4159_v42, %v4082_v39  ;;  %v580_v15 = vmul.f32 %v4162_v43, %v4082_v39  ;;  %v1961_v58 = vmul.f32 %v4138_v14, %v4052_v19 }
  0xf0   : > { %v1962_v16 = vmul.f32 %v4155_v40, %v4052_v19  ;;  %v525_v17 = vadd.f32 %v513_v2, %v459_v0  ;;  %v1991_v32 = vmul.f32 %v4169_v47, %v4050_v18  ;;  %v1992_v36 = vmul.f32 %v4172_v48, %v4050_v18 }
  0xf1   : > { %v526_v31 = vadd.f32 %v514_v3, %v460_v1  ;;  %v453_v41 = vmul.f32 %v4126_v10, %v4054_v20  ;;  %v454_v45 = vmul.f32 %v4129_v11, %v4054_v20  ;;  %v4211_v46 = vrot.slane %v2064_v62, %v4113_v4 }
  0xf2   : > { %v2033_v19 = vmul.f32 %v4181_v54, %v4079_v35  ;;  %v591_v51 = vadd.f32 %v579_v8, %v525_v17  ;;  %v2003_v0 = vadd.f32 %v1991_v32, %v1961_v58  ;;  %v2004_v1 = vadd.f32 %v1992_v36, %v1962_v16  ;;  %v4215_v2 = vpop.permute.xlu1 %610 }
  0xf3   : > { %v592_v52 = vadd.f32 %v580_v15, %v526_v31  ;;  %v395_v18 = vmul.f32 %v4118_v6, %v4056_v21  ;;  %v396_v3 = vmul.f32 %v4121_v7, %v4056_v21  ;;  %v449_v33 = vmul.f32 %v4126_v10, %v4068_v27 }
  0xf4   : > { %v450_v62 = vmul.f32 %v4129_v11, %v4068_v27  ;;  %v633_v5 = vadd.f32 %v4174_v49, %v591_v51  ;;  %v2034_v8 = vmul.f32 %v4184_v61, %v4079_v35  ;;  %v2045_v15 = vadd.f32 %v2033_v19, %v2003_v0 }
  0xf5   : > { %v2075_v58 = vmul.f32 %v4188_v63, %v4082_v39  ;;  %v461_v16 = vadd.f32 %v449_v33, %v395_v18  ;;  %v515_v31 = vmul.f32 %v4132_v12, %v4062_v24  ;;  %v516_v32 = vmul.f32 %v4135_v13, %v4062_v24 }
  0xf6   : > { %v462_v17 = vadd.f32 %v450_v62, %v396_v3  ;;  %v634_v36 = vadd.f32 %v4174_v49, %v592_v52  ;;  %v4235_v59 = vmax.f32 %v633_v5, 0.0  ;;  %v2046_v51 = vadd.f32 %v2034_v8, %v2004_v1 }
  0xf7   : > { %v2087_v56 = vadd.f32 %v2075_v58, %v2045_v15  ;;  %v519_v35 = vmul.f32 %v4132_v12, %v4093_v50  ;;  %v527_v19 = vadd.f32 %v515_v31, %v461_v16  ;;  %v581_v33 = vmul.f32 %v4159_v42, %v4090_v44  ;;  %v4251_v1 = vpop.permute.xlu1 %492 }
  0xf8   : > { %v528_v0 = vadd.f32 %v516_v32, %v462_v17  ;;  %v2076_v18 = vmul.f32 %v4211_v46, %v4082_v39  ;;  %v582_v3 = vmul.f32 %v4162_v43, %v4090_v44  ;;  %v1963_v5 = vmul.f32 %v4138_v14, %v4056_v21  ;;  %718 = vrot.lane.b32.xlu1 %v4235_v59, %s3874_s20 }
  0xf9   : > { %v1964_v52 = vmul.f32 %v4155_v40, %v4056_v21  ;;  %v520_v62 = vmul.f32 %v4135_v13, %v4093_v50  ;;  %v593_v8 = vadd.f32 %v581_v33, %v527_v19  ;;  %v1993_v39 = vmul.f32 %v4169_v47, %v4068_v27 }
  0xfa   : > { %v1994_v15 = vmul.f32 %v4172_v48, %v4068_v27  ;;  %v4259_v58 = vmax.f32 %v634_v36, 0.0  ;;  %v2088_v16 = vadd.f32 %v2076_v18, %v2046_v51  ;;  %v2099_v21 = vadd.f32 %v2087_v56, %v4174_v49  ;;  %v357_v56 = vpop.permute.xlu0 %356 }
  0xfb   : > { %v594_v17 = vadd.f32 %v582_v3, %v528_v0  ;;  %v635_v31 = vadd.f32 %v4215_v2, %v593_v8  ;;  %v2005_v32 = vadd.f32 %v1993_v39, %v1963_v5  ;;  %v2035_v57 = vmul.f32 %v4181_v54, %v4062_v24 }
  0xfc   : > { %v2006_v4 = vadd.f32 %v1994_v15, %v1964_v52  ;;  %v465_v19 = vadd.f32 %v453_v41, %v4148_v37  ;;  %v451_v33 = vmul.f32 %v4126_v10, %v4072_v29  ;;  %v452_v27 = vmul.f32 %v4129_v11, %v4072_v29  ;;  %730 = vrot.lane.b32.xlu1 %v4259_v58, %s3874_s20 }
  0xfd   : > { %v2036_v36 = vmul.f32 %v4184_v61, %v4062_v24  ;;  %v636_v51 = vadd.f32 %v4215_v2, %v594_v17  ;;  %v4275_v0 = vmax.f32 %v635_v31, 0.0  ;;  %v2047_v18 = vadd.f32 %v2035_v57, %v2005_v32  ;;  %v4284_v24 = vpop.permute.xlu1 %554 }
  0xfe   : > { %v2077_v37 = vmul.f32 %v4188_v63, %v4090_v44  ;;  %v397_v41 = vmul.f32 %v4118_v6, %v357_v56  ;;  %v398_v3 = vmul.f32 %v4121_v7, %v357_v56  ;;  %v2100_v5 = vadd.f32 %v2088_v16, %v4174_v49 }
  0xff   : > { %v4282_v52 = vmax.f32 %v2099_v21, 0.0  ;;  %v466_v8 = vadd.f32 %v454_v45, %v4152_v38  ;;  %v1967_v39 = vmul.f32 %v4138_v14, %v4060_v23  ;;  %v2048_v15 = vadd.f32 %v2036_v36, %v2006_v4  ;;  %720 = vrot.lane.b32.xlu0 %v4275_v0, %s3874_s20 }
 0x100   : > { %v2089_v57 = vadd.f32 %v2077_v37, %v2047_v18  ;;  %v531_v17 = vadd.f32 %v519_v35, %v465_v19  ;;  %v1968_v31 = vmul.f32 %v4155_v40, %v4060_v23  ;;  %v1997_v49 = vmul.f32 %v4169_v47, %v4054_v20 }
 0x101   : > { %v1998_v16 = vmul.f32 %v4172_v48, %v4054_v20  ;;  %2171 = vrot.lane.b32.xlu1 %v4282_v52, %s3874_s20  ;;  %v1995_v4 = vmul.f32 %v4169_v47, %v4072_v29  ;;  %v4301_v38 = vmax.f32 %v636_v51, 0.0  ;;  %v2078_v45 = vmul.f32 %v4211_v46, %v4090_v44 }
 0x102   : > { %v2101_v35 = vadd.f32 %v2089_v57, %v4215_v2  ;;  %v463_v23 = vadd.f32 %v451_v33, %v397_v41  ;;  %v464_v21 = vadd.f32 %v452_v27, %v398_v3  ;;  %v1965_v32 = vmul.f32 %v4138_v14, %v357_v56  ;;  %v4317_v27 = vpop.permute.xlu1 %615 }
 0x103   : > { %v4307_v19 = vmax.f32 %v2100_v5, 0.0  ;;  %v532_v20 = vadd.f32 %v520_v62, %v466_v8  ;;  %v2039_v36 = vmul.f32 %v4181_v54, %v4093_v50  ;;  %v1996_v18 = vmul.f32 %v4172_v48, %v4072_v29  ;;  %732 = vrot.lane.b32.xlu0 %v4301_v38, %s3874_s20 }
 0x104   : > { %v2090_v51 = vadd.f32 %v2078_v45, %v2048_v15  ;;  %v2009_v44 = vadd.f32 %v1997_v49, %v1967_v39  ;;  %v2040_v33 = vmul.f32 %v4184_v61, %v4093_v50  ;;  %v517_v37 = vmul.f32 %v4132_v12, %v4066_v26 }
 0x105   : > { %v518_v62 = vmul.f32 %v4135_v13, %v4066_v26  ;;  %2183 = vrot.lane.b32.xlu1 %v4307_v19, %s3874_s20  ;;  %v2010_v29 = vadd.f32 %v1998_v16, %v1968_v31  ;;  %v1966_v41 = vmul.f32 %v4155_v40, %v357_v56  ;;  %v4327_v5 = vmax.f32 %v2101_v35, 0.0 }
 0x106   : > { %v2102_v3 = vadd.f32 %v2090_v51, %v4215_v2  ;;  %v2007_v8 = vadd.f32 %v1995_v4, %v1965_v32  ;;  %v583_v50 = vmul.f32 %v4159_v42, %v4123_v9  ;;  %v529_v39 = vadd.f32 %v517_v37, %v463_v23 }
 0x107   : > { %v530_v15 = vadd.f32 %v518_v62, %v464_v21  ;;  %v403_v57 = vmul.f32 %v4118_v6, %v4064_v25  ;;  %v404_v49 = vmul.f32 %v4121_v7, %v4064_v25  ;;  %v457_v31 = vmul.f32 %v4126_v10, %v4105_v60  ;;  %2173 = vrot.lane.b32.xlu0 %v4327_v5, %s3874_s20  ;;  %v367_v21 = vpop.permute.xlu0 %366 }
 0x108   : > { %v458_v2 = vmul.f32 %v4129_v11, %v4105_v60  ;;  %v2051_v56 = vadd.f32 %v2039_v36, %v2009_v44  ;;  %v584_v16 = vmul.f32 %v4162_v43, %v4123_v9  ;;  %v595_v4 = vadd.f32 %v583_v50, %v529_v39  ;;  %v621_v50 = vpop.permute.xlu1 %620 }
 0x109   : > { %v2037_v45 = vmul.f32 %v4181_v54, %v4066_v26  ;;  %v2008_v35 = vadd.f32 %v1996_v18, %v1966_v41  ;;  %v455_v23 = vmul.f32 %v4126_v10, %v4058_v22  ;;  %v4347_v32 = vmax.f32 %v2102_v3, 0.0 }
 0x10a   : > { %v585_v51 = vmul.f32 %v4159_v42, %v4074_v30  ;;  %v401_v37 = vmul.f32 %v4118_v6, %v367_v21  ;;  %v596_v36 = vadd.f32 %v584_v16, %v530_v15  ;;  %v637_v44 = vadd.f32 %v4317_v27, %v595_v4 }
 0x10b   : > { %v2049_v62 = vadd.f32 %v2037_v45, %v2007_v8  ;;  %v2052_v39 = vadd.f32 %v2040_v33, %v2010_v29  ;;  %v469_v53 = vadd.f32 %v457_v31, %v403_v57  ;;  %2185 = vrot.lane.b32.xlu0 %v4347_v32, %s3874_s20  ;;  %v586_v10 = vmul.f32 %v4162_v43, %v4074_v30 }
 0x10c   : > { %v597_v18 = vadd.f32 %v585_v51, %v531_v17  ;;  %v2079_v41 = vmul.f32 %v4188_v63, %v4123_v9  ;;  %v638_v3 = vadd.f32 %v4317_v27, %v596_v36  ;;  %v4360_v6 = vmax.f32 %v637_v44, 0.0 }
 0x10d   : > { %v2038_v8 = vmul.f32 %v4184_v61, %v4066_v26  ;;  %v470_v15 = vadd.f32 %v458_v2, %v404_v49  ;;  %v456_v33 = vmul.f32 %v4129_v11, %v4058_v22  ;;  %v598_v29 = vadd.f32 %v586_v10, %v532_v20 }
 0x10e   : > { %v639_v57 = vadd.f32 %v621_v50, %v597_v18  ;;  %v402_v31 = vmul.f32 %v4121_v7, %v367_v21  ;;  %v467_v16 = vadd.f32 %v455_v23, %v401_v37  ;;  %v2091_v4 = vadd.f32 %v2079_v41, %v2049_v62  ;;  %722 = vrot.lane.b32.xlu1 %v4360_v6, %s3874_s20 }
 0x10f   : > { %v2050_v17 = vadd.f32 %v2038_v8, %v2008_v35  ;;  %v2080_v45 = vmul.f32 %v4211_v46, %v4123_v9  ;;  %v640_v51 = vadd.f32 %v621_v50, %v598_v29  ;;  %v2081_v26 = vmul.f32 %v4188_v63, %v4074_v30 }
 0x110   : > { %v4371_v36 = vmax.f32 %v639_v57, 0.0  ;;  %v521_v11 = vmul.f32 %v4132_v12, %v4070_v28  ;;  %v587_v7 = vmul.f32 %v4159_v42, %v4284_v24  ;;  %v4379_v20 = vmax.f32 %v638_v3, 0.0 }
 0x111   : > { %v2103_v49 = vadd.f32 %v2091_v4, %v4317_v27  ;;  %v1971_v2 = vmul.f32 %v4138_v14, %v4064_v25  ;;  %v1999_v9 = vmul.f32 %v4169_v47, %v4058_v22  ;;  %v523_v35 = vmul.f32 %v4132_v12, %v4251_v1 }
 0x112   : > { %v2093_v23 = vadd.f32 %v2081_v26, %v2051_v56  ;;  %724 = vrot.lane.b32.xlu0 %v4371_v36, %s3874_s20  ;;  %v468_v37 = vadd.f32 %v456_v33, %v402_v31  ;;  %v1969_v44 = vmul.f32 %v4138_v14, %v367_v21  ;;  %v533_v62 = vadd.f32 %v521_v11, %v467_v16  ;;  %v631_v11 = vpop.permute.xlu1 %630 }
 0x113   : > { %v2092_v10 = vadd.f32 %v2080_v45, %v2050_v17  ;;  %734 = vrot.lane.b32.xlu1 %v4379_v20, %s3874_s20  ;;  %v522_v18 = vmul.f32 %v4135_v13, %v4070_v28  ;;  %v4395_v41 = vmax.f32 %v640_v51, 0.0  ;;  %v2082_v12 = vmul.f32 %v4211_v46, %v4074_v30  ;;  %v626_v45 = vpop.permute.xlu0 %625 }
 0x114   : > { %v2105_v56 = vadd.f32 %v2093_v23, %v621_v50  ;;  %v588_v3 = vmul.f32 %v4162_v43, %v4284_v24  ;;  %v599_v8 = vadd.f32 %v587_v7, %v533_v62  ;;  %v4402_v33 = vmax.f32 %v2103_v49, 0.0 }
 0x115   : > { %v2104_v14 = vadd.f32 %v2092_v10, %v4317_v27  ;;  %v2001_v29 = vmul.f32 %v4169_v47, %v4105_v60  ;;  %v524_v57 = vmul.f32 %v4135_v13, %v4251_v1  ;;  %v535_v31 = vadd.f32 %v523_v35, %v469_v53 }
 0x116   : > { %v2094_v16 = vadd.f32 %v2082_v12, %v2052_v39  ;;  %736 = vrot.lane.b32.xlu0 %v4395_v41, %s3874_s20  ;;  %v2000_v30 = vmul.f32 %v4172_v48, %v4058_v22  ;;  %v1970_v17 = vmul.f32 %v4155_v40, %v367_v21  ;;  %v2011_v4 = vadd.f32 %v1999_v9, %v1969_v44 }
 0x117   : > { %v534_v27 = vadd.f32 %v522_v18, %v468_v37  ;;  %2175 = vrot.lane.b32.xlu1 %v4402_v33, %s3874_s20  ;;  %v2041_v47 = vmul.f32 %v4181_v54, %v4070_v28  ;;  %v4417_v53 = vmax.f32 %v2105_v56, 0.0  ;;  %v589_v39 = vmul.f32 %v4159_v42, %v4077_v34 }
 0x118   : > { %v2106_v13 = vadd.f32 %v2094_v16, %v621_v50  ;;  %v641_v26 = vadd.f32 %v626_v45, %v599_v8  ;;  %v2083_v22 = vmul.f32 %v4188_v63, %v4284_v24  ;;  %v4423_v21 = vmax.f32 %v2104_v14, 0.0 }
 0x119   : > { %v600_v51 = vadd.f32 %v588_v3, %v534_v27  ;;  %v1972_v7 = vmul.f32 %v4155_v40, %v4064_v25  ;;  %v536_v49 = vadd.f32 %v524_v57, %v470_v15  ;;  %v2043_v50 = vmul.f32 %v4181_v54, %v4251_v1 }
 0x11a   : > { %v601_v9 = vadd.f32 %v589_v39, %v535_v31  ;;  %2177 = vrot.lane.b32.xlu0 %v4417_v53, %s3874_s20  ;;  %v2002_v42 = vmul.f32 %v4172_v48, %v4105_v60  ;;  %v2013_v35 = vadd.f32 %v2001_v29, %v1971_v2  ;;  %v2012_v23 = vadd.f32 %v2000_v30, %v1970_v17 }
 0x11b   : > { %v2053_v37 = vadd.f32 %v2041_v47, %v2011_v4  ;;  %2187 = vrot.lane.b32.xlu1 %v4423_v21, %s3874_s20  ;;  %v2042_v25 = vmul.f32 %v4184_v61, %v4070_v28  ;;  %v4437_v40 = vmax.f32 %v2106_v13, 0.0  ;;  %v590_v54 = vmul.f32 %v4162_v43, %v4077_v34 }
 0x11c   : > { %v643_v15 = vadd.f32 %v631_v11, %v601_v9  ;;  %v642_v44 = vadd.f32 %v626_v45, %v600_v51  ;;  %v4441_v62 = vmax.f32 %v641_v26, 0.0  ;;  %v2084_v60 = vmul.f32 %v4211_v46, %v4284_v24  ;;  %v4533_v51 = vld [vmem:[%s5641_s1] sm:$0xff]  ;;  %v4538_v26 = vld [vmem:[%s5641_s1 + $0x8] sm:$0xff] }
 0x11d   : > { %v2095_v48 = vadd.f32 %v2083_v22, %v2053_v37  ;;  %v2044_v2 = vmul.f32 %v4184_v61, %v4251_v1  ;;  %v2055_v10 = vadd.f32 %v2043_v50, %v2013_v35  ;;  %v602_v18 = vadd.f32 %v590_v54, %v536_v49 }
 0x11e   : > { %2189 = vrot.lane.b32.xlu0 %v4437_v40, %s3874_s20  ;;  %v2054_v28 = vadd.f32 %v2042_v25, %v2012_v23  ;;  %v2014_v43 = vadd.f32 %v2002_v42, %v1972_v7  ;;  %v4451_v56 = vmax.f32 %v643_v15, 0.0  ;;  %v2085_v24 = vmul.f32 %v4188_v63, %v4077_v34 }
 0x11f   : > { %726 = vrot.lane.b32.xlu1 %v4441_v62, %s3874_s20  ;;  %v644_v12 = vadd.f32 %v631_v11, %v602_v18  ;;  %v4455_v3 = vmax.f32 %v642_v44, 0.0  ;;  %v2107_v61 = vadd.f32 %v2095_v48, %v626_v45  ;;  %v2086_v57 = vmul.f32 %v4211_v46, %v4077_v34 }
 0x120   : > { %v2096_v8 = vadd.f32 %v2084_v60, %v2054_v28  ;;  %v2056_v1 = vadd.f32 %v2044_v2, %v2014_v43  ;;  %v2097_v14 = vadd.f32 %v2085_v24, %v2055_v10  ;;  %v3876_v46 = vmov 0.0  }
 0x121   : > { %v4461_v29 = vmax.f32 %v644_v12, 0.0  ;;  %v4465_v63 = vmax.f32 %v2107_v61, 0.0  ;;  %849 = vmatprep.mubr.f32.mxu0 %v3876_v46  ;;  %2283 = vmatprep.mubr.f32.mxu1 %v3876_v46  ;;  %v5677_v47 = vlaneseq  ;;  %v4551_v7 = vrot.slane %v4538_v26, %v4097_v55 }
 0x122   : > { %728 = vrot.lane.b32.xlu0 %v4451_v56, %s3874_s20  ;;  %v2109_v31 = vadd.f32 %v2097_v14, %v631_v11  ;;  %v2108_v16 = vadd.f32 %v2096_v8, %v626_v45  ;;  %v2098_v30 = vadd.f32 %v2086_v57, %v2056_v1 }
 0x123   : > { %738 = vrot.lane.b32.xlu1 %v4455_v3, %s3874_s20  ;;  %v4524_v13 = vand.u32 127, %v5677_v47 }
 0x124   : > { %v2110_v17 = vadd.f32 %v2098_v30, %v631_v11  ;;  %v4471_v4 = vmax.f32 %v2109_v31, 0.0  ;;  %v4473_v27 = vmax.f32 %v2108_v16, 0.0  ;;  %v4547_v11 = vrot.slane %v4533_v51, %v4097_v55 }
 0x125   : > { %vm742_vm0 = vcmp.lt.s32.totalorder %v4524_v13, 16  ;;  %vm683_vm2 = vcmp.lt.s32.totalorder %v4524_v13, 17  ;;  %vm969_vm3 = vcmp.lt.s32.totalorder %v4524_v13, 15  ;;  %vm1116_vm4 = vcmp.lt.s32.totalorder %v4524_v13, 1 }
 0x126   : > { %740 = vrot.lane.b32.xlu0 %v4461_v29, %s3874_s20  ;;  %v4479_v34 = vmax.f32 %v2110_v17, 0.0  ;;  %vm1353_vm5 = vcmp.lt.s32.totalorder %v4524_v13, 127  ;;  %vm1500_vm6 = vcmp.lt.s32.totalorder %v4524_v13, 113  ;;  %vm1647_vm7 = vcmp.lt.s32.totalorder %v4524_v13, 112 }
 0x127   : > { %2179 = vrot.lane.b32.xlu1 %v4465_v63, %s3874_s20  ;;  %vm1794_vm8 = vcmp.lt.s32.totalorder %v4524_v13, 111  ;;  %v3768_v13 = vld [vmem:[%s4087_s13] sm:$0xff] }
 0x12a   : > { %2181 = vrot.lane.b32.xlu0 %v4471_v4, %s3874_s20 }
 0x12b   : > { %2191 = vrot.lane.b32.xlu1 %v4473_v27, %s3874_s20 }
 0x12e   : > { %2193 = vrot.lane.b32.xlu0 %v4479_v34, %s3874_s20 }
 0x12f   : > { %657 = vrot.lane.b32.xlu1 %v4235_v59, %s3875_s21 }
 0x132   : > { %659 = vrot.lane.b32.xlu0 %v4275_v0, %s3875_s21 }
 0x133   : > { %669 = vrot.lane.b32.xlu1 %v4259_v58, %s3875_s21 }
 0x136   : > { %671 = vrot.lane.b32.xlu0 %v4301_v38, %s3875_s21 }
 0x137   : > { %2123 = vrot.lane.b32.xlu1 %v4282_v52, %s3875_s21 }
 0x13a   : > { %2125 = vrot.lane.b32.xlu0 %v4327_v5, %s3875_s21 }
 0x13b   : > { %2135 = vrot.lane.b32.xlu1 %v4307_v19, %s3875_s21 }
 0x13e   : > { %2137 = vrot.lane.b32.xlu0 %v4347_v32, %s3875_s21 }
 0x13f   : > { %661 = vrot.lane.b32.xlu1 %v4360_v6, %s3875_s21 }
 0x142   : > { %663 = vrot.lane.b32.xlu0 %v4371_v36, %s3875_s21 }
 0x143   : > { %673 = vrot.lane.b32.xlu1 %v4379_v20, %s3875_s21 }
 0x146   : > { %675 = vrot.lane.b32.xlu0 %v4395_v41, %s3875_s21 }
 0x147   : > { %2127 = vrot.lane.b32.xlu1 %v4402_v33, %s3875_s21 }
 0x14a   : > { %2129 = vrot.lane.b32.xlu0 %v4417_v53, %s3875_s21 }
 0x14b   : > { %2139 = vrot.lane.b32.xlu1 %v4423_v21, %s3875_s21 }
 0x14e   : > { %2141 = vrot.lane.b32.xlu0 %v4437_v40, %s3875_s21 }
 0x14f   : > { %665 = vrot.lane.b32.xlu1 %v4441_v62, %s3875_s21 }
 0x152   : > { %667 = vrot.lane.b32.xlu0 %v4451_v56, %s3875_s21 }
 0x153   : > { %677 = vrot.lane.b32.xlu1 %v4455_v3, %s3875_s21 }
 0x156   : > { %679 = vrot.lane.b32.xlu0 %v4461_v29, %s3875_s21 }
 0x157   : > { %2131 = vrot.lane.b32.xlu1 %v4465_v63, %s3875_s21 }
 0x15a   : > { %2133 = vrot.lane.b32.xlu0 %v4471_v4, %s3875_s21 }
 0x15b   : > { %2143 = vrot.lane.b32.xlu1 %v4473_v27, %s3875_s21 }
 0x15e   : > { %2145 = vrot.lane.b32.xlu0 %v4479_v34, %s3875_s21 }
 0x15f   : > { %945 = vrot.lane.b32.xlu1 %v4235_v59, %s3877_s22 }
 0x162   : > { %947 = vrot.lane.b32.xlu0 %v4275_v0, %s3877_s22 }
 0x163   : > { %957 = vrot.lane.b32.xlu1 %v4259_v58, %s3877_s22 }
 0x166   : > { %959 = vrot.lane.b32.xlu0 %v4301_v38, %s3877_s22 }
 0x167   : > { %2373 = vrot.lane.b32.xlu1 %v4282_v52, %s3877_s22 }
 0x16a   : > { %2375 = vrot.lane.b32.xlu0 %v4327_v5, %s3877_s22  ;;  %v719_v45 = vpop.permute.xlu1 %718 }
 0x16b   : > { %2385 = vrot.lane.b32.xlu1 %v4307_v19, %s3877_s22 }
 0x16e   : > { %2387 = vrot.lane.b32.xlu0 %v4347_v32, %s3877_s22  ;;  %v731_v39 = vpop.permute.xlu1 %730 }
 0x16f   : > { %949 = vrot.lane.b32.xlu1 %v4360_v6, %s3877_s22  ;;  %v749_v50 = vsel %vm742_vm0, %v731_v39, %v719_v45  ;;  %v743_v9 = vsel %vm742_vm0, %v719_v45, %v731_v39 }
 0x170   : > { %v764_v23 = vmul.f32 %v4551_v7, %v743_v9  ;;  %v763_v25 = vmul.f32 %v4547_v11, %v749_v50 }
 0x171   : > { %v721_v22 = vpop.permute.xlu0 %720 }
 0x172   : > { %951 = vrot.lane.b32.xlu0 %v4371_v36, %s3877_s22 }
 0x173   : > { %961 = vrot.lane.b32.xlu1 %v4379_v20, %s3877_s22  ;;  %v2172_v49 = vpop.permute.xlu1 %2171 }
 0x175   : > { %v733_v42 = vpop.permute.xlu0 %732 }
 0x176   : > { %963 = vrot.lane.b32.xlu0 %v4395_v41, %s3877_s22  ;;  %v750_v35 = vsel %vm742_vm0, %v733_v42, %v721_v22  ;;  %v744_v55 = vsel %vm742_vm0, %v721_v22, %v733_v42 }
 0x177   : > { %2377 = vrot.lane.b32.xlu1 %v4402_v33, %s3877_s22  ;;  %v766_v37 = vmul.f32 %v4551_v7, %v744_v55  ;;  %v765_v54 = vmul.f32 %v4547_v11, %v750_v35  ;;  %v2184_v44 = vpop.permute.xlu1 %2183 }
 0x178   : > { %v2201_v2 = vsel %vm742_vm0, %v2184_v44, %v2172_v49  ;;  %v2195_v10 = vsel %vm742_vm0, %v2172_v49, %v2184_v44 }
 0x179   : > { %v2174_v15 = vpop.permute.xlu0 %2173  ;;  %v3402_v60 = vpack.c.bf16 %v766_v37, %v764_v23  ;;  %v3404_v48 = vpack.c.bf16 %v765_v54, %v763_v25  ;;  %v2208_v12 = vmul.f32 %v2195_v10, %v4551_v7  ;;  %v2207_v8 = vmul.f32 %v2201_v2, %v4547_v11 }
 0x17a   : > { %2379 = vrot.lane.b32.xlu0 %v4417_v53, %s3877_s22 }
 0x17b   : > { %2389 = vrot.lane.b32.xlu1 %v4423_v21, %s3877_s22  ;;  %3403 = vmatprep.subr.bf16.mxu0 %v3402_v60 }
 0x17c   : > { %3405 = vmatpush1.bf16.msra.mxu0 %v3404_v48 }
 0x17d   : > { %v2186_v18 = vpop.permute.xlu0 %2185 }
 0x17e   : > { %2391 = vrot.lane.b32.xlu0 %v4437_v40, %s3877_s22  ;;  %v2202_v28 = vsel %vm742_vm0, %v2186_v18, %v2174_v15  ;;  %v2196_v43 = vsel %vm742_vm0, %v2174_v15, %v2186_v18 }
 0x17f   : > { %953 = vrot.lane.b32.xlu1 %v4441_v62, %s3877_s22  ;;  %v2210_v24 = vmul.f32 %v2196_v43, %v4551_v7  ;;  %v2209_v61 = vmul.f32 %v2202_v28, %v4547_v11 }
 0x180   : > { %v723_v1 = vpop.permute.xlu1 %722 }
 0x181   : > { %v3510_v14 = vpack.c.bf16 %v2210_v24, %v2208_v12  ;;  %v3512_v57 = vpack.c.bf16 %v2209_v61, %v2207_v8 }
 0x182   : > { %955 = vrot.lane.b32.xlu0 %v4451_v56, %s3877_s22 }
 0x183   : > { %965 = vrot.lane.b32.xlu1 %v4455_v3, %s3877_s22  ;;  %3511 = vmatprep.subr.bf16.mxu1 %v3510_v14 }
 0x184   : > { %v725_v31 = vpop.permute.xlu0 %724  ;;  %3513 = vmatpush1.bf16.msra.mxu1 %v3512_v57 }
 0x185   : > { %v735_v16 = vpop.permute.xlu1 %734 }
 0x186   : > { %967 = vrot.lane.b32.xlu0 %v4461_v29, %s3877_s22  ;;  %v745_v30 = vsel %vm742_vm0, %v723_v1, %v735_v16  ;;  %v751_v17 = vsel %vm742_vm0, %v735_v16, %v723_v1 }
 0x187   : > { %2381 = vrot.lane.b32.xlu1 %v4465_v63, %s3877_s22  ;;  %v767_v49 = vmul.f32 %v4547_v11, %v751_v17  ;;  %v768_v50 = vmul.f32 %v4551_v7, %v745_v30 }
 0x188   : > { %v737_v45 = vpop.permute.xlu0 %736 }
 0x189   : > { %v2176_v47 = vpop.permute.xlu1 %2175  ;;  %v746_v39 = vsel %vm742_vm0, %v725_v31, %v737_v45  ;;  %v752_v22 = vsel %vm742_vm0, %v737_v45, %v725_v31 }
 0x18a   : > { %v769_v9 = vmul.f32 %v4547_v11, %v752_v22  ;;  %v770_v42 = vmul.f32 %v4551_v7, %v746_v39  ;;  %2383 = vrot.lane.b32.xlu0 %v4471_v4, %s3877_s22 }
 0x18b   : > { %2393 = vrot.lane.b32.xlu1 %v4473_v27, %s3877_s22 }
 0x18c   : > { %v2178_v35 = vpop.permute.xlu0 %2177  ;;  %v3406_v55 = vpack.c.bf16 %v770_v42, %v768_v50  ;;  %v3408_v23 = vpack.c.bf16 %v769_v9, %v767_v49 }
 0x18d   : > { %v2188_v37 = vpop.permute.xlu1 %2187 }
 0x18e   : > { %2395 = vrot.lane.b32.xlu0 %v4479_v34, %s3877_s22  ;;  %3407 = vmatprep.subr.bf16.mxu0 %v3406_v55  ;;  %v2197_v25 = vsel %vm742_vm0, %v2176_v47, %v2188_v37  ;;  %v2203_v54 = vsel %vm742_vm0, %v2188_v37, %v2176_v47 }
 0x18f   : > { %1092 = vrot.lane.b32.xlu1 %v4235_v59, %s3878_s14  ;;  %3409 = vmatpush1.bf16.msra.mxu0 %v3408_v23  ;;  %v2211_v2 = vmul.f32 %v2203_v54, %v4547_v11  ;;  %v2212_v10 = vmul.f32 %v2197_v25, %v4551_v7 }
 0x190   : > { %v2190_v15 = vpop.permute.xlu0 %2189 }
 0x191   : > { %v727_v44 = vpop.permute.xlu1 %726  ;;  %v2198_v60 = vsel %vm742_vm0, %v2178_v35, %v2190_v15  ;;  %v2204_v48 = vsel %vm742_vm0, %v2190_v15, %v2178_v35  ;;  %v776_v35 = vld [vmem:[#allocation2 + $0x10] sm:$0xff] }
 0x192   : > { %v2213_v18 = vmul.f32 %v2204_v48, %v4547_v11  ;;  %v2214_v28 = vmul.f32 %v2198_v60, %v4551_v7  ;;  %1094 = vrot.lane.b32.xlu0 %v4275_v0, %s3878_s14 }
 0x193   : > { %1104 = vrot.lane.b32.xlu1 %v4259_v58, %s3878_s14 }
 0x194   : > { %v729_v43 = vpop.permute.xlu0 %728  ;;  %v3514_v12 = vpack.c.bf16 %v2214_v28, %v2212_v10  ;;  %v3516_v24 = vpack.c.bf16 %v2213_v18, %v2211_v2  ;;  %v5678_v18 = vld [vmem:[#allocation8_spill] sm:$0xff]  ;;  %v777_v28 = vld [vmem:[#allocation2 + $0x18] sm:$0xf] }
 0x195   : > { %v739_v8 = vpop.permute.xlu1 %738 }
 0x196   : > { %1106 = vrot.lane.b32.xlu0 %v4301_v38, %s3878_s14  ;;  %3515 = vmatprep.subr.bf16.mxu1 %v3514_v12  ;;  %v747_v61 = vsel %vm742_vm0, %v727_v44, %v739_v8  ;;  %v753_v1 = vsel %vm742_vm0, %v739_v8, %v727_v44 }
 0x197   : > { %2502 = vrot.lane.b32.xlu1 %v4282_v52, %s3878_s14  ;;  %3517 = vmatpush1.bf16.msra.mxu1 %v3516_v24  ;;  %v771_v30 = vmul.f32 %v4547_v11, %v753_v1  ;;  %v772_v17 = vmul.f32 %v4551_v7, %v747_v61 }
 0x198   : > { %v741_v14 = vpop.permute.xlu0 %740 }
 0x199   : > { %v2180_v57 = vpop.permute.xlu1 %2179  ;;  %v748_v31 = vsel %vm742_vm0, %v729_v43, %v741_v14  ;;  %v754_v16 = vsel %vm742_vm0, %v741_v14, %v729_v43  ;;  %v4682_v43 = vrot.slane %v4538_v26, %v5678_v18 }
 0x19a   : > { %v773_v45 = vmul.f32 %v4547_v11, %v754_v16  ;;  %v774_v47 = vmul.f32 %v4551_v7, %v748_v31  ;;  %2504 = vrot.lane.b32.xlu0 %v4327_v5, %s3878_s14 }
 0x19b   : > { %2514 = vrot.lane.b32.xlu1 %v4307_v19, %s3878_s14 }
 0x19c   : > { %v2182_v39 = vpop.permute.xlu0 %2181  ;;  %v3410_v22 = vpack.c.bf16 %v774_v47, %v772_v17  ;;  %v3412_v49 = vpack.c.bf16 %v773_v45, %v771_v30 }
 0x19d   : > { %v2192_v50 = vpop.permute.xlu1 %2191 }
 0x19e   : > { %v2205_v9 = vsel %vm742_vm0, %v2192_v50, %v2180_v57  ;;  %2516 = vrot.lane.b32.xlu0 %v4347_v32, %s3878_s14  ;;  %3411 = vmatprep.subr.bf16.mxu0 %v3410_v22  ;;  %v2199_v42 = vsel %vm742_vm0, %v2180_v57, %v2192_v50 }
 0x19f   : > { %1096 = vrot.lane.b32.xlu1 %v4360_v6, %s3878_s14  ;;  %3413 = vmatpush1.bf16.msra.mxu0 %v3412_v49  ;;  %v2215_v23 = vmul.f32 %v2205_v9, %v4547_v11  ;;  %v2216_v15 = vmul.f32 %v2199_v42, %v4551_v7 }
 0x1a0   : > { %v2194_v55 = vpop.permute.xlu0 %2193 }
 0x1a1   : > { %v658_v37 = vpop.permute.xlu1 %657  ;;  %v2200_v25 = vsel %vm742_vm0, %v2182_v39, %v2194_v55  ;;  %v2206_v54 = vsel %vm742_vm0, %v2194_v55, %v2182_v39 }
 0x1a2   : > { %v2217_v44 = vmul.f32 %v2206_v54, %v4547_v11  ;;  %v2218_v60 = vmul.f32 %v2200_v25, %v4551_v7  ;;  %1098 = vrot.lane.b32.xlu0 %v4371_v36, %s3878_s14  ;;  %3354 = vmatmul.mubr.msk.f32.vlgmr.msra.gmra.mrb[0].mxu0 %vm778_vm1, %v776_v35  ;;  %v4678_v11 = vrot.slane %v4533_v51, %v5678_v18 }
 0x1a3   : > { %1108 = vrot.lane.b32.xlu1 %v4379_v20, %s3878_s14  ;;  %855 = vmatprep.mubr.f32.mxu0 %v3876_v46 }
 0x1a4   : > { %v660_v48 = vpop.permute.xlu0 %659  ;;  %v3518_v2 = vpack.c.bf16 %v2218_v60, %v2216_v15  ;;  %v3520_v10 = vpack.c.bf16 %v2217_v44, %v2215_v23 }
 0x1a5   : > { %v670_v7 = vpop.permute.xlu1 %669 }
 0x1a6   : > { %v690_v12 = vsel %vm683_vm2, %v670_v7, %v658_v37  ;;  %1110 = vrot.lane.b32.xlu0 %v4395_v41, %s3878_s14  ;;  %3519 = vmatprep.subr.bf16.mxu1 %v3518_v2  ;;  %v684_v24 = vsel %vm683_vm2, %v658_v37, %v670_v7 }
 0x1a7   : > { %2506 = vrot.lane.b32.xlu1 %v4402_v33, %s3878_s14  ;;  %3521 = vmatpush1.bf16.msra.mxu1 %v3520_v10  ;;  %v704_v61 = vmul.f32 %v4678_v11, %v690_v12  ;;  %v705_v31 = vmul.f32 %v4682_v43, %v684_v24 }
 0x1a8   : > { %v672_v8 = vpop.permute.xlu0 %671  ;;  %3355 = vmatmul.mubr.msk.f32.gmra.mrb[2].mxu0 %vm778_vm1, %v777_v28 }
 0x1a9   : > { %v2124_v1 = vpop.permute.xlu1 %2123  ;;  %v685_v14 = vsel %vm683_vm2, %v660_v48, %v672_v8  ;;  %v691_v57 = vsel %vm683_vm2, %v672_v8, %v660_v48  ;;  %932 = vmatprep.mubr.f32.mxu0 %v3876_v46 }
 0x1aa   : > { %v706_v16 = vmul.f32 %v4678_v11, %v691_v57  ;;  %v707_v30 = vmul.f32 %v4682_v43, %v685_v14  ;;  %2508 = vrot.lane.b32.xlu0 %v4417_v53, %s3878_s14  ;;  %3375 = vmatmul.mubr.msk.f32.vlgmr.msra.gmra.mrb[0].mxu1 %vm778_vm1, %v776_v35 }
 0x1ab   : > { %2518 = vrot.lane.b32.xlu1 %v4423_v21, %s3878_s14  ;;  %2289 = vmatprep.mubr.f32.mxu1 %v3876_v46 }
 0x1ac   : > { %v3416_v17 = vpack.c.bf16 %v706_v16, %v704_v61  ;;  %v2126_v45 = vpop.permute.xlu0 %2125  ;;  %v3414_v47 = vpack.c.bf16 %v707_v30, %v705_v31 }
 0x1ad   : > { %v2136_v39 = vpop.permute.xlu1 %2135 }
 0x1ae   : > { %2520 = vrot.lane.b32.xlu0 %v4437_v40, %s3878_s14  ;;  %3415 = vmatprep.subr.bf16.mxu0 %v3414_v47  ;;  %v2147_v22 = vsel %vm683_vm2, %v2124_v1, %v2136_v39  ;;  %v2153_v49 = vsel %vm683_vm2, %v2136_v39, %v2124_v1 }
 0x1af   : > { %1100 = vrot.lane.b32.xlu1 %v4441_v62, %s3878_s14  ;;  %3417 = vmatpush1.bf16.msra.mxu0 %v3416_v17  ;;  %v2159_v55 = vmul.f32 %v2153_v49, %v4678_v11  ;;  %v2160_v23 = vmul.f32 %v2147_v22, %v4682_v43 }
 0x1b0   : > { %v2138_v50 = vpop.permute.xlu0 %2137  ;;  %3376 = vmatmul.mubr.msk.f32.gmra.mrb[2].mxu1 %vm778_vm1, %v777_v28 }
 0x1b1   : > { %v662_v9 = vpop.permute.xlu1 %661  ;;  %v2148_v42 = vsel %vm683_vm2, %v2126_v45, %v2138_v50  ;;  %v2154_v35 = vsel %vm683_vm2, %v2138_v50, %v2126_v45  ;;  %2360 = vmatprep.mubr.f32.mxu1 %v3876_v46 }
 0x1b2   : > { %v2161_v37 = vmul.f32 %v2154_v35, %v4678_v11  ;;  %v2162_v25 = vmul.f32 %v2148_v42, %v4682_v43  ;;  %1102 = vrot.lane.b32.xlu0 %v4451_v56, %s3878_s14 }
 0x1b3   : > { %1112 = vrot.lane.b32.xlu1 %v4455_v3, %s3878_s14 }
 0x1b4   : > { %v3524_v54 = vpack.c.bf16 %v2161_v37, %v2159_v55  ;;  %v664_v15 = vpop.permute.xlu0 %663  ;;  %v3522_v44 = vpack.c.bf16 %v2162_v25, %v2160_v23 }
 0x1b5   : > { %v674_v60 = vpop.permute.xlu1 %673 }
 0x1b6   : > { %1114 = vrot.lane.b32.xlu0 %v4461_v29, %s3878_s14  ;;  %3523 = vmatprep.subr.bf16.mxu1 %v3522_v44  ;;  %v686_v48 = vsel %vm683_vm2, %v662_v9, %v674_v60  ;;  %v692_v2 = vsel %vm683_vm2, %v674_v60, %v662_v9 }
 0x1b7   : > { %2510 = vrot.lane.b32.xlu1 %v4465_v63, %s3878_s14  ;;  %3525 = vmatpush1.bf16.msra.mxu1 %v3524_v54  ;;  %v708_v12 = vmul.f32 %v4678_v11, %v692_v2  ;;  %v709_v24 = vmul.f32 %v4682_v43, %v686_v48 }
 0x1b8   : > { %v676_v10 = vpop.permute.xlu0 %675 }
 0x1b9   : > { %v2128_v18 = vpop.permute.xlu1 %2127  ;;  %v687_v7 = vsel %vm683_vm2, %v664_v15, %v676_v10  ;;  %v693_v28 = vsel %vm683_vm2, %v676_v10, %v664_v15 }
 0x1ba   : > { %v710_v8 = vmul.f32 %v4678_v11, %v693_v28  ;;  %v711_v61 = vmul.f32 %v4682_v43, %v687_v7  ;;  %2512 = vrot.lane.b32.xlu0 %v4471_v4, %s3878_s14 }
 0x1bb   : > { %2522 = vrot.lane.b32.xlu1 %v4473_v27, %s3878_s14 }
 0x1bc   : > { %v3420_v1 = vpack.c.bf16 %v710_v8, %v708_v12  ;;  %v2130_v14 = vpop.permute.xlu0 %2129  ;;  %v3418_v57 = vpack.c.bf16 %v711_v61, %v709_v24 }
 0x1bd   : > { %v2140_v31 = vpop.permute.xlu1 %2139 }
 0x1be   : > { %2524 = vrot.lane.b32.xlu0 %v4479_v34, %s3878_s14  ;;  %3419 = vmatprep.subr.bf16.mxu0 %v3418_v57  ;;  %v2149_v16 = vsel %vm683_vm2, %v2128_v18, %v2140_v31  ;;  %v2155_v30 = vsel %vm683_vm2, %v2140_v31, %v2128_v18 }
 0x1bf   : > { %1329 = vrot.lane.b32.xlu1 %v4235_v59, %s3879_s17  ;;  %3421 = vmatpush1.bf16.msra.mxu0 %v3420_v1  ;;  %v2163_v22 = vmul.f32 %v2155_v30, %v4678_v11  ;;  %v2164_v49 = vmul.f32 %v2149_v16, %v4682_v43  ;;  %v716_v1 = vld [vmem:[#allocation2] sm:$0xff] }
 0x1c0   : > { %v2142_v17 = vpop.permute.xlu0 %2141 }
 0x1c1   : > { %v666_v45 = vpop.permute.xlu1 %665  ;;  %v2150_v47 = vsel %vm683_vm2, %v2130_v14, %v2142_v17  ;;  %v2156_v39 = vsel %vm683_vm2, %v2142_v17, %v2130_v14 }
 0x1c2   : > { %v2165_v50 = vmul.f32 %v2156_v39, %v4678_v11  ;;  %v2166_v9 = vmul.f32 %v2150_v47, %v4682_v43  ;;  %1331 = vrot.lane.b32.xlu0 %v4275_v0, %s3879_s17  ;;  %v5679_v39 = vld [vmem:[#allocation10_spill] sm:$0xff] }
 0x1c3   : > { %1341 = vrot.lane.b32.xlu1 %v4259_v58, %s3879_s17 }
 0x1c4   : > { %v3528_v42 = vpack.c.bf16 %v2165_v50, %v2163_v22  ;;  %v668_v35 = vpop.permute.xlu0 %667  ;;  %v3526_v55 = vpack.c.bf16 %v2166_v9, %v2164_v49  ;;  %v4812_v22 = vrot.slane %v4533_v51, %v5679_v39  ;;  %v4816_v49 = vrot.slane %v4538_v26, %v5679_v39 }
 0x1c5   : > { %v678_v23 = vpop.permute.xlu1 %677 }
 0x1c6   : > { %1343 = vrot.lane.b32.xlu0 %v4301_v38, %s3879_s17  ;;  %3527 = vmatprep.subr.bf16.mxu1 %v3526_v55  ;;  %v688_v37 = vsel %vm683_vm2, %v666_v45, %v678_v23  ;;  %v694_v25 = vsel %vm683_vm2, %v678_v23, %v666_v45 }
 0x1c7   : > { %2712 = vrot.lane.b32.xlu1 %v4282_v52, %s3879_s17  ;;  %3529 = vmatpush1.bf16.msra.mxu1 %v3528_v42  ;;  %v712_v48 = vmul.f32 %v4678_v11, %v694_v25  ;;  %v713_v2 = vmul.f32 %v4682_v43, %v688_v37  ;;  %v717_v42 = vld [vmem:[#allocation2 + $0x8] sm:$0xf] }
 0x1c8   : > { %v680_v54 = vpop.permute.xlu0 %679 }
 0x1c9   : > { %v2132_v15 = vpop.permute.xlu1 %2131  ;;  %v689_v44 = vsel %vm683_vm2, %v668_v35, %v680_v54  ;;  %v695_v60 = vsel %vm683_vm2, %v680_v54, %v668_v35 }
 0x1ca   : > { %v714_v10 = vmul.f32 %v4678_v11, %v695_v60  ;;  %v715_v18 = vmul.f32 %v4682_v43, %v689_v44  ;;  %2714 = vrot.lane.b32.xlu0 %v4327_v5, %s3879_s17 }
 0x1cb   : > { %2724 = vrot.lane.b32.xlu1 %v4307_v19, %s3879_s17 }
 0x1cc   : > { %v3424_v7 = vpack.c.bf16 %v714_v10, %v712_v48  ;;  %v2134_v28 = vpop.permute.xlu0 %2133  ;;  %v3422_v12 = vpack.c.bf16 %v715_v18, %v713_v2 }
 0x1cd   : > { %v2144_v24 = vpop.permute.xlu1 %2143 }
 0x1ce   : > { %v2157_v8 = vsel %vm683_vm2, %v2144_v24, %v2132_v15  ;;  %2726 = vrot.lane.b32.xlu0 %v4347_v32, %s3879_s17  ;;  %3423 = vmatprep.subr.bf16.mxu0 %v3422_v12  ;;  %v2151_v61 = vsel %vm683_vm2, %v2132_v15, %v2144_v24 }
 0x1cf   : > { %1333 = vrot.lane.b32.xlu1 %v4360_v6, %s3879_s17  ;;  %3425 = vmatpush1.bf16.msra.mxu0 %v3424_v7  ;;  %v2167_v57 = vmul.f32 %v2157_v8, %v4678_v11  ;;  %v2168_v17 = vmul.f32 %v2151_v61, %v4682_v43 }
 0x1d0   : > { %v2146_v14 = vpop.permute.xlu0 %2145 }
 0x1d1   : > { %v946_v31 = vpop.permute.xlu1 %945  ;;  %v2152_v16 = vsel %vm683_vm2, %v2134_v28, %v2146_v14  ;;  %v2158_v30 = vsel %vm683_vm2, %v2146_v14, %v2134_v28 }
 0x1d2   : > { %v2169_v45 = vmul.f32 %v2158_v30, %v4678_v11  ;;  %v2170_v47 = vmul.f32 %v2152_v16, %v4682_v43  ;;  %1335 = vrot.lane.b32.xlu0 %v4371_v36, %s3879_s17  ;;  %3356 = vmatmul.mubr.msk.f32.vlgmr.msra.gmra.mrb[0].mxu0 %vm778_vm1, %v716_v1 }
 0x1d3   : > { %1345 = vrot.lane.b32.xlu1 %v4379_v20, %s3879_s17  ;;  %938 = vmatprep.mubr.f32.mxu0 %v3876_v46 }
 0x1d4   : > { %v3532_v11 = vpack.c.bf16 %v2169_v45, %v2167_v57  ;;  %v948_v43 = vpop.permute.xlu0 %947  ;;  %v3530_v50 = vpack.c.bf16 %v2170_v47, %v2168_v17 }
 0x1d5   : > { %v958_v9 = vpop.permute.xlu1 %957 }
 0x1d6   : > { %v970_v35 = vsel %vm969_vm3, %v946_v31, %v958_v9  ;;  %v976_v55 = vsel %vm969_vm3, %v958_v9, %v946_v31  ;;  %1347 = vrot.lane.b32.xlu0 %v4395_v41, %s3879_s17  ;;  %3531 = vmatprep.subr.bf16.mxu1 %v3530_v50 }
 0x1d7   : > { %v990_v23 = vmul.f32 %v4812_v22, %v976_v55  ;;  %v991_v37 = vmul.f32 %v4816_v49, %v970_v35  ;;  %2716 = vrot.lane.b32.xlu1 %v4402_v33, %s3879_s17  ;;  %3533 = vmatpush1.bf16.msra.mxu1 %v3532_v11 }
 0x1d8   : > { %v960_v25 = vpop.permute.xlu0 %959  ;;  %3357 = vmatmul.mubr.msk.f32.gmra.mrb[2].mxu0 %vm778_vm1, %v717_v42 }
 0x1d9   : > { %v2374_v54 = vpop.permute.xlu1 %2373  ;;  %v971_v15 = vsel %vm969_vm3, %v948_v43, %v960_v25  ;;  %v977_v44 = vsel %vm969_vm3, %v960_v25, %v948_v43  ;;  %1075 = vmatprep.mubr.f32.mxu0 %v3876_v46 }
 0x1da   : > { %v992_v60 = vmul.f32 %v4812_v22, %v977_v44  ;;  %v993_v48 = vmul.f32 %v4816_v49, %v971_v15  ;;  %2718 = vrot.lane.b32.xlu0 %v4417_v53, %s3879_s17  ;;  %3377 = vmatmul.mubr.msk.f32.vlgmr.msra.gmra.mrb[0].mxu1 %vm778_vm1, %v716_v1 }
 0x1db   : > { %2728 = vrot.lane.b32.xlu1 %v4423_v21, %s3879_s17  ;;  %2366 = vmatprep.mubr.f32.mxu1 %v3876_v46 }
 0x1dc   : > { %v3428_v2 = vpack.c.bf16 %v992_v60, %v990_v23  ;;  %v2376_v10 = vpop.permute.xlu0 %2375  ;;  %v3426_v18 = vpack.c.bf16 %v993_v48, %v991_v37 }
 0x1dd   : > { %v2386_v7 = vpop.permute.xlu1 %2385 }
 0x1de   : > { %v2397_v28 = vsel %vm969_vm3, %v2374_v54, %v2386_v7  ;;  %v2403_v12 = vsel %vm969_vm3, %v2386_v7, %v2374_v54  ;;  %2730 = vrot.lane.b32.xlu0 %v4437_v40, %s3879_s17  ;;  %3427 = vmatprep.subr.bf16.mxu0 %v3426_v18 }
 0x1df   : > { %v2409_v24 = vmul.f32 %v2403_v12, %v4812_v22  ;;  %v2410_v8 = vmul.f32 %v2397_v28, %v4816_v49  ;;  %1337 = vrot.lane.b32.xlu1 %v4441_v62, %s3879_s17  ;;  %3429 = vmatpush1.bf16.msra.mxu0 %v3428_v2 }
 0x1e0   : > { %v2388_v61 = vpop.permute.xlu0 %2387  ;;  %3378 = vmatmul.mubr.msk.f32.gmra.mrb[2].mxu1 %vm778_vm1, %v717_v42 }
 0x1e1   : > { %v950_v1 = vpop.permute.xlu1 %949  ;;  %v2398_v14 = vsel %vm969_vm3, %v2376_v10, %v2388_v61  ;;  %v2404_v57 = vsel %vm969_vm3, %v2388_v61, %v2376_v10  ;;  %2485 = vmatprep.mubr.f32.mxu1 %v3876_v46 }
 0x1e2   : > { %v2411_v31 = vmul.f32 %v2404_v57, %v4812_v22  ;;  %v2412_v16 = vmul.f32 %v2398_v14, %v4816_v49  ;;  %1339 = vrot.lane.b32.xlu0 %v4451_v56, %s3879_s17 }
 0x1e3   : > { %1349 = vrot.lane.b32.xlu1 %v4455_v3, %s3879_s17 }
 0x1e4   : > { %v3536_v30 = vpack.c.bf16 %v2411_v31, %v2409_v24  ;;  %v952_v17 = vpop.permute.xlu0 %951  ;;  %v3534_v45 = vpack.c.bf16 %v2412_v16, %v2410_v8 }
 0x1e5   : > { %v962_v47 = vpop.permute.xlu1 %961 }
 0x1e6   : > { %v972_v39 = vsel %vm969_vm3, %v950_v1, %v962_v47  ;;  %v978_v11 = vsel %vm969_vm3, %v962_v47, %v950_v1  ;;  %1351 = vrot.lane.b32.xlu0 %v4461_v29, %s3879_s17  ;;  %3535 = vmatprep.subr.bf16.mxu1 %v3534_v45 }
 0x1e7   : > { %v994_v43 = vmul.f32 %v4812_v22, %v978_v11  ;;  %v995_v50 = vmul.f32 %v4816_v49, %v972_v39  ;;  %2720 = vrot.lane.b32.xlu1 %v4465_v63, %s3879_s17  ;;  %3537 = vmatpush1.bf16.msra.mxu1 %v3536_v30 }
 0x1e8   : > { %v964_v9 = vpop.permute.xlu0 %963 }
 0x1e9   : > { %v2378_v42 = vpop.permute.xlu1 %2377  ;;  %v973_v35 = vsel %vm969_vm3, %v952_v17, %v964_v9  ;;  %v979_v55 = vsel %vm969_vm3, %v964_v9, %v952_v17 }
 0x1ea   : > { %v996_v23 = vmul.f32 %v4812_v22, %v979_v55  ;;  %v997_v37 = vmul.f32 %v4816_v49, %v973_v35  ;;  %2722 = vrot.lane.b32.xlu0 %v4471_v4, %s3879_s17 }
 0x1eb   : > { %2732 = vrot.lane.b32.xlu1 %v4473_v27, %s3879_s17 }
 0x1ec   : > { %v3432_v25 = vpack.c.bf16 %v996_v23, %v994_v43  ;;  %v2380_v54 = vpop.permute.xlu0 %2379  ;;  %v3430_v15 = vpack.c.bf16 %v997_v37, %v995_v50 }
 0x1ed   : > { %v2390_v44 = vpop.permute.xlu1 %2389 }
 0x1ee   : > { %v2399_v60 = vsel %vm969_vm3, %v2378_v42, %v2390_v44  ;;  %v2405_v48 = vsel %vm969_vm3, %v2390_v44, %v2378_v42  ;;  %2734 = vrot.lane.b32.xlu0 %v4479_v34, %s3879_s17  ;;  %3431 = vmatprep.subr.bf16.mxu0 %v3430_v15  ;;  %v1003_v15 = vld [vmem:[#allocation2 + $0x20] sm:$0xff]  ;;  %s287_s17 = sand.u32 1, %s3856_s25  }
 0x1ef   : > { %v2413_v2 = vmul.f32 %v2405_v48, %v4812_v22  ;;  %v2414_v10 = vmul.f32 %v2399_v60, %v4816_v49  ;;  %1476 = vrot.lane.b32.xlu1 %v4235_v59, %s3880_s18  ;;  %3433 = vmatpush1.bf16.msra.mxu0 %v3432_v25 }
 0x1f0   : > { %v2392_v18 = vpop.permute.xlu0 %2391 }
 0x1f1   : > { %v954_v7 = vpop.permute.xlu1 %953  ;;  %v2400_v28 = vsel %vm969_vm3, %v2380_v54, %v2392_v18  ;;  %v2406_v12 = vsel %vm969_vm3, %v2392_v18, %v2380_v54 }
 0x1f2   : > { %v2415_v24 = vmul.f32 %v2406_v12, %v4812_v22  ;;  %v2416_v8 = vmul.f32 %v2400_v28, %v4816_v49  ;;  %1478 = vrot.lane.b32.xlu0 %v4275_v0, %s3880_s18 }
 0x1f3   : > { %1488 = vrot.lane.b32.xlu1 %v4259_v58, %s3880_s18 }
 0x1f4   : > { %v3540_v61 = vpack.c.bf16 %v2415_v24, %v2413_v2  ;;  %v956_v1 = vpop.permute.xlu0 %955  ;;  %v3538_v14 = vpack.c.bf16 %v2416_v8, %v2414_v10 }
 0x1f5   : > { %v966_v57 = vpop.permute.xlu1 %965 }
 0x1f6   : > { %v974_v31 = vsel %vm969_vm3, %v954_v7, %v966_v57  ;;  %v980_v16 = vsel %vm969_vm3, %v966_v57, %v954_v7  ;;  %1490 = vrot.lane.b32.xlu0 %v4301_v38, %s3880_s18  ;;  %3539 = vmatprep.subr.bf16.mxu1 %v3538_v14  ;;  %v5680_v7 = vld [vmem:[#allocation12_spill] sm:$0xff] }
 0x1f7   : > { %v998_v30 = vmul.f32 %v4812_v22, %v980_v16  ;;  %v999_v17 = vmul.f32 %v4816_v49, %v974_v31  ;;  %2841 = vrot.lane.b32.xlu1 %v4282_v52, %s3880_s18  ;;  %3541 = vmatpush1.bf16.msra.mxu1 %v3540_v61  ;;  %v4949_v28 = vrot.slane %v4533_v51, %v5680_v7  ;;  %v1004_v61 = vld [vmem:[#allocation2 + $0x28] sm:$0xf] }
 0x1f8   : > { %v968_v45 = vpop.permute.xlu0 %967  ;;  %v4953_v12 = vrot.slane %v4538_v26, %v5680_v7 }
 0x1f9   : > { %v2382_v47 = vpop.permute.xlu1 %2381  ;;  %v975_v39 = vsel %vm969_vm3, %v956_v1, %v968_v45  ;;  %v981_v11 = vsel %vm969_vm3, %v968_v45, %v956_v1 }
 0x1fa   : > { %v1000_v43 = vmul.f32 %v4812_v22, %v981_v11  ;;  %v1001_v50 = vmul.f32 %v4816_v49, %v975_v39  ;;  %2843 = vrot.lane.b32.xlu0 %v4327_v5, %s3880_s18 }
 0x1fb   : > { %2853 = vrot.lane.b32.xlu1 %v4307_v19, %s3880_s18 }
 0x1fc   : > { %v3436_v9 = vpack.c.bf16 %v1000_v43, %v998_v30  ;;  %v2384_v42 = vpop.permute.xlu0 %2383  ;;  %v3434_v35 = vpack.c.bf16 %v1001_v50, %v999_v17 }
 0x1fd   : > { %v2394_v55 = vpop.permute.xlu1 %2393 }
 0x1fe   : > { %v2401_v23 = vsel %vm969_vm3, %v2382_v47, %v2394_v55  ;;  %v2407_v37 = vsel %vm969_vm3, %v2394_v55, %v2382_v47  ;;  %2855 = vrot.lane.b32.xlu0 %v4347_v32, %s3880_s18  ;;  %3435 = vmatprep.subr.bf16.mxu0 %v3434_v35 }
 0x1ff   : > { %v2417_v25 = vmul.f32 %v2407_v37, %v4812_v22  ;;  %v2418_v54 = vmul.f32 %v2401_v23, %v4816_v49  ;;  %1480 = vrot.lane.b32.xlu1 %v4360_v6, %s3880_s18  ;;  %3437 = vmatpush1.bf16.msra.mxu0 %v3436_v9 }
 0x200   : > { %v2396_v44 = vpop.permute.xlu0 %2395 }
 0x201   : > { %v1093_v60 = vpop.permute.xlu1 %1092  ;;  %v2402_v48 = vsel %vm969_vm3, %v2384_v42, %v2396_v44  ;;  %v2408_v2 = vsel %vm969_vm3, %v2396_v44, %v2384_v42 }
 0x202   : > { %v2419_v10 = vmul.f32 %v2408_v2, %v4812_v22  ;;  %v2420_v18 = vmul.f32 %v2402_v48, %v4816_v49  ;;  %1482 = vrot.lane.b32.xlu0 %v4371_v36, %s3880_s18  ;;  %3358 = vmatmul.mubr.msk.f32.vlgmr.msra.gmra.mrb[0].mxu0 %vm778_vm1, %v1003_v15 }
 0x203   : > { %1492 = vrot.lane.b32.xlu1 %v4379_v20, %s3880_s18  ;;  %1081 = vmatprep.mubr.f32.mxu0 %v3876_v46 }
 0x204   : > { %v3544_v22 = vpack.c.bf16 %v2419_v10, %v2417_v25  ;;  %v1095_v49 = vpop.permute.xlu0 %1094  ;;  %v3542_v24 = vpack.c.bf16 %v2420_v18, %v2418_v54 }
 0x205   : > { %v1105_v8 = vpop.permute.xlu1 %1104 }
 0x206   : > { %v1117_v1 = vsel %vm1116_vm4, %v1093_v60, %v1105_v8  ;;  %v1123_v51 = vsel %vm1116_vm4, %v1105_v8, %v1093_v60  ;;  %1494 = vrot.lane.b32.xlu0 %v4395_v41, %s3880_s18  ;;  %3543 = vmatprep.subr.bf16.mxu1 %v3542_v24 }
 0x207   : > { %v1137_v26 = vmul.f32 %v4949_v28, %v1123_v51  ;;  %v1138_v14 = vmul.f32 %v4953_v12, %v1117_v1  ;;  %2845 = vrot.lane.b32.xlu1 %v4402_v33, %s3880_s18  ;;  %3545 = vmatpush1.bf16.msra.mxu1 %v3544_v22 }
 0x208   : > { %v1107_v57 = vpop.permute.xlu0 %1106  ;;  %3359 = vmatmul.mubr.msk.f32.gmra.mrb[2].mxu0 %vm778_vm1, %v1004_v61 }
 0x209   : > { %v2503_v31 = vpop.permute.xlu1 %2502  ;;  %v1118_v16 = vsel %vm1116_vm4, %v1095_v49, %v1107_v57  ;;  %v1124_v30 = vsel %vm1116_vm4, %v1107_v57, %v1095_v49  ;;  %1222 = vmatprep.mubr.f32.mxu0 %v3876_v46 }
 0x20a   : > { %v1139_v17 = vmul.f32 %v4949_v28, %v1124_v30  ;;  %v1140_v45 = vmul.f32 %v4953_v12, %v1118_v16  ;;  %2847 = vrot.lane.b32.xlu0 %v4417_v53, %s3880_s18  ;;  %3379 = vmatmul.mubr.msk.f32.vlgmr.msra.gmra.mrb[0].mxu1 %vm778_vm1, %v1003_v15 }
 0x20b   : > { %2857 = vrot.lane.b32.xlu1 %v4423_v21, %s3880_s18  ;;  %2491 = vmatprep.mubr.f32.mxu1 %v3876_v46 }
 0x20c   : > { %v3440_v47 = vpack.c.bf16 %v1139_v17, %v1137_v26  ;;  %v2505_v39 = vpop.permute.xlu0 %2504  ;;  %v3438_v11 = vpack.c.bf16 %v1140_v45, %v1138_v14 }
 0x20d   : > { %v2515_v43 = vpop.permute.xlu1 %2514 }
 0x20e   : > { %v2526_v50 = vsel %vm1116_vm4, %v2503_v31, %v2515_v43  ;;  %v2532_v9 = vsel %vm1116_vm4, %v2515_v43, %v2503_v31  ;;  %2859 = vrot.lane.b32.xlu0 %v4437_v40, %s3880_s18  ;;  %3439 = vmatprep.subr.bf16.mxu0 %v3438_v11 }
 0x20f   : > { %v2538_v42 = vmul.f32 %v2532_v9, %v4949_v28  ;;  %v2539_v35 = vmul.f32 %v2526_v50, %v4953_v12  ;;  %1484 = vrot.lane.b32.xlu1 %v4441_v62, %s3880_s18  ;;  %3441 = vmatpush1.bf16.msra.mxu0 %v3440_v47 }
 0x210   : > { %v2517_v55 = vpop.permute.xlu0 %2516  ;;  %3380 = vmatmul.mubr.msk.f32.gmra.mrb[2].mxu1 %vm778_vm1, %v1004_v61 }
 0x211   : > { %v1097_v23 = vpop.permute.xlu1 %1096  ;;  %v2527_v37 = vsel %vm1116_vm4, %v2505_v39, %v2517_v55  ;;  %v2533_v25 = vsel %vm1116_vm4, %v2517_v55, %v2505_v39  ;;  %2614 = vmatprep.mubr.f32.mxu1 %v3876_v46 }
 0x212   : > { %v2540_v54 = vmul.f32 %v2533_v25, %v4949_v28  ;;  %v2541_v15 = vmul.f32 %v2527_v37, %v4953_v12  ;;  %1486 = vrot.lane.b32.xlu0 %v4451_v56, %s3880_s18 }
 0x213   : > { %1496 = vrot.lane.b32.xlu1 %v4455_v3, %s3880_s18 }
 0x214   : > { %v3548_v44 = vpack.c.bf16 %v2540_v54, %v2538_v42  ;;  %v1099_v60 = vpop.permute.xlu0 %1098  ;;  %v3546_v48 = vpack.c.bf16 %v2541_v15, %v2539_v35 }
 0x215   : > { %v1109_v2 = vpop.permute.xlu1 %1108 }
 0x216   : > { %v1119_v10 = vsel %vm1116_vm4, %v1097_v23, %v1109_v2  ;;  %v1125_v18 = vsel %vm1116_vm4, %v1109_v2, %v1097_v23  ;;  %1498 = vrot.lane.b32.xlu0 %v4461_v29, %s3880_s18  ;;  %3547 = vmatprep.subr.bf16.mxu1 %v3546_v48 }
 0x217   : > { %v1141_v7 = vmul.f32 %v4949_v28, %v1125_v18  ;;  %v1142_v22 = vmul.f32 %v4953_v12, %v1119_v10  ;;  %2849 = vrot.lane.b32.xlu1 %v4465_v63, %s3880_s18  ;;  %3549 = vmatpush1.bf16.msra.mxu1 %v3548_v44 }
 0x218   : > { %v1111_v49 = vpop.permute.xlu0 %1110 }
 0x219   : > { %v2507_v24 = vpop.permute.xlu1 %2506  ;;  %v1120_v8 = vsel %vm1116_vm4, %v1099_v60, %v1111_v49  ;;  %v1126_v61 = vsel %vm1116_vm4, %v1111_v49, %v1099_v60 }
 0x21a   : > { %v1143_v1 = vmul.f32 %v4949_v28, %v1126_v61  ;;  %v1144_v51 = vmul.f32 %v4953_v12, %v1120_v8  ;;  %2851 = vrot.lane.b32.xlu0 %v4471_v4, %s3880_s18 }
 0x21b   : > { %2861 = vrot.lane.b32.xlu1 %v4473_v27, %s3880_s18 }
 0x21c   : > { %v3444_v26 = vpack.c.bf16 %v1143_v1, %v1141_v7  ;;  %v2509_v14 = vpop.permute.xlu0 %2508  ;;  %v3442_v57 = vpack.c.bf16 %v1144_v51, %v1142_v22  ;;  %v3450_v1 = vpack.c.bf16 %v4301_v38, %v4259_v58 }
 0x21d   : > { %v2519_v31 = vpop.permute.xlu1 %2518 }
 0x21e   : > { %v2528_v16 = vsel %vm1116_vm4, %v2507_v24, %v2519_v31  ;;  %v2534_v30 = vsel %vm1116_vm4, %v2519_v31, %v2507_v24  ;;  %2863 = vrot.lane.b32.xlu0 %v4479_v34, %s3880_s18  ;;  %3443 = vmatprep.subr.bf16.mxu0 %v3442_v57  ;;  %s3350_s18 = sshll.u32 %s287_s17, 6 }
 0x21f   : > { %v2542_v17 = vmul.f32 %v2534_v30, %v4949_v28  ;;  %v2543_v45 = vmul.f32 %v2528_v16, %v4953_v12  ;;  %1623 = vrot.lane.b32.xlu1 %v4235_v59, %s3881_s19  ;;  %3445 = vmatpush1.bf16.msra.mxu0 %v3444_v26 }
 0x220   : > { %v2521_v47 = vpop.permute.xlu0 %2520 }
 0x221   : > { %v1101_v39 = vpop.permute.xlu1 %1100  ;;  %v2529_v11 = vsel %vm1116_vm4, %v2509_v14, %v2521_v47  ;;  %v2535_v43 = vsel %vm1116_vm4, %v2521_v47, %v2509_v14  ;;  %v1150_v14 = vld [vmem:[#allocation2 + $0x30] sm:$0xff] }
 0x222   : > { %v2544_v50 = vmul.f32 %v2535_v43, %v4949_v28  ;;  %v2545_v9 = vmul.f32 %v2529_v11, %v4953_v12  ;;  %1625 = vrot.lane.b32.xlu0 %v4275_v0, %s3881_s19  ;;  %v5093_v11 = vld [vmem:[%s5641_s1] sm:$0xff]  ;;  %v5681_v43 = vld [vmem:[#allocation9_spill] sm:$0xff] }
 0x223   : > { %1635 = vrot.lane.b32.xlu1 %v4259_v58, %s3881_s19 }
 0x224   : > { %v3552_v42 = vpack.c.bf16 %v2544_v50, %v2542_v17  ;;  %v1103_v35 = vpop.permute.xlu0 %1102  ;;  %v3550_v55 = vpack.c.bf16 %v2545_v9, %v2543_v45  ;;  %v3452_v17 = vpack.c.bf16 %v4275_v0, %v4235_v59 }
 0x225   : > { %v1113_v23 = vpop.permute.xlu1 %1112 }
 0x226   : > { %v1121_v37 = vsel %vm1116_vm4, %v1101_v39, %v1113_v23  ;;  %v1127_v25 = vsel %vm1116_vm4, %v1113_v23, %v1101_v39  ;;  %1637 = vrot.lane.b32.xlu0 %v4301_v38, %s3881_s19  ;;  %3551 = vmatprep.subr.bf16.mxu1 %v3550_v55  ;;  %v3454_v39 = vpack.c.bf16 %v4395_v41, %v4379_v20 }
 0x227   : > { %v1145_v54 = vmul.f32 %v4949_v28, %v1127_v25  ;;  %v1146_v15 = vmul.f32 %v4953_v12, %v1121_v37  ;;  %2970 = vrot.lane.b32.xlu1 %v4282_v52, %s3881_s19  ;;  %3553 = vmatpush1.bf16.msra.mxu1 %v3552_v42  ;;  %v3456_v23 = vpack.c.bf16 %v4371_v36, %v4360_v6 }
 0x228   : > { %v1115_v44 = vpop.permute.xlu0 %1114 }
 0x229   : > { %v2511_v60 = vpop.permute.xlu1 %2510  ;;  %v1122_v48 = vsel %vm1116_vm4, %v1103_v35, %v1115_v44  ;;  %v1128_v2 = vsel %vm1116_vm4, %v1115_v44, %v1103_v35 }
 0x22a   : > { %v1147_v10 = vmul.f32 %v4949_v28, %v1128_v2  ;;  %v1148_v18 = vmul.f32 %v4953_v12, %v1122_v48  ;;  %2972 = vrot.lane.b32.xlu0 %v4327_v5, %s3881_s19  ;;  %v3558_v48 = vpack.c.bf16 %v4347_v32, %v4307_v19 }
 0x22b   : > { %2982 = vrot.lane.b32.xlu1 %v4307_v19, %s3881_s19 }
 0x22c   : > { %v3448_v7 = vpack.c.bf16 %v1147_v10, %v1145_v54  ;;  %v2513_v22 = vpop.permute.xlu0 %2512  ;;  %v3446_v49 = vpack.c.bf16 %v1148_v18, %v1146_v15  ;;  %v3458_v54 = vpack.c.bf16 %v4461_v29, %v4455_v3  ;;  %v1151_v15 = vld [vmem:[#allocation2 + $0x38] sm:$0xf] }
 0x22d   : > { %v2523_v24 = vpop.permute.xlu1 %2522 }
 0x22e   : > { %v2530_v8 = vsel %vm1116_vm4, %v2511_v60, %v2523_v24  ;;  %v2536_v61 = vsel %vm1116_vm4, %v2523_v24, %v2511_v60  ;;  %2984 = vrot.lane.b32.xlu0 %v4347_v32, %s3881_s19  ;;  %3447 = vmatprep.subr.bf16.mxu0 %v3446_v49 }
 0x22f   : > { %v2546_v51 = vmul.f32 %v2536_v61, %v4949_v28  ;;  %v2547_v26 = vmul.f32 %v2530_v8, %v4953_v12  ;;  %1627 = vrot.lane.b32.xlu1 %v4360_v6, %s3881_s19  ;;  %3449 = vmatpush1.bf16.msra.mxu0 %v3448_v7  ;;  %v3560_v8 = vpack.c.bf16 %v4327_v5, %v4282_v52 }
 0x230   : > { %3451 = vmatprep.subr.bf16.mxu0 %v3450_v1  ;;  %v2525_v57 = vpop.permute.xlu0 %2524  ;;  %v3562_v1 = vpack.c.bf16 %v4437_v40, %v4423_v21 }
 0x231   : > { %v1330_v31 = vpop.permute.xlu1 %1329  ;;  %v2531_v16 = vsel %vm1116_vm4, %v2513_v22, %v2525_v57  ;;  %v2537_v30 = vsel %vm1116_vm4, %v2525_v57, %v2513_v22  ;;  %v3460_v22 = vpack.c.bf16 %v4451_v56, %v4441_v62 }
 0x232   : > { %v2548_v45 = vmul.f32 %v2537_v30, %v4949_v28  ;;  %v2549_v47 = vmul.f32 %v2531_v16, %v4953_v12  ;;  %1629 = vrot.lane.b32.xlu0 %v4371_v36, %s3881_s19  ;;  %3360 = vmatmul.mubr.msk.f32.vlgmr.msra.gmra.mrb[0].mxu0 %vm778_vm1, %v1150_v14  ;;  %v5097_v28 = vrot.slane %v5093_v11, %v5681_v43  ;;  %v5102_v12 = vld [vmem:[%s5641_s1 + $0x8] sm:$0xff] }
 0x233   : > { %v5106_v50 = vrot.slane %v5102_v12, %v5681_v43  ;;  %1639 = vrot.lane.b32.xlu1 %v4379_v20, %s3881_s19  ;;  %3453 = vmatpush1.bf16.msra.mxu0 %v3452_v17 }
 0x234   : > { %v3556_v9 = vpack.c.bf16 %v2548_v45, %v2546_v51  ;;  %3455 = vmatprep.subr.bf16.mxu0 %v3454_v39  ;;  %v1332_v42 = vpop.permute.xlu0 %1331  ;;  %v3554_v35 = vpack.c.bf16 %v2549_v47, %v2547_v26  ;;  %1228 = vmatprep.mubr.f32.mxu0 %v3876_v46  ;;  %v3564_v45 = vpack.c.bf16 %v4417_v53, %v4402_v33 }
 0x235   : > { %v1342_v55 = vpop.permute.xlu1 %1341  ;;  %v3566_v47 = vpack.c.bf16 %v4479_v34, %v4473_v27 }
 0x236   : > { %v1354_v37 = vsel %vm1353_vm5, %v1330_v31, %v1342_v55  ;;  %v1360_v25 = vsel %vm1353_vm5, %v1342_v55, %v1330_v31  ;;  %1641 = vrot.lane.b32.xlu0 %v4395_v41, %s3881_s19  ;;  %3555 = vmatprep.subr.bf16.mxu1 %v3554_v35  ;;  %v1240_v31 = vld [vmem:[#allocation2 + $0x40] sm:$0xff] }
 0x237   : > { %v1374_v44 = vmul.f32 %v5097_v28, %v1354_v37  ;;  %v1375_v60 = vmul.f32 %v5106_v50, %v1360_v25  ;;  %2974 = vrot.lane.b32.xlu1 %v4402_v33, %s3881_s19  ;;  %3457 = vmatpush1.bf16.msra.mxu0 %v3456_v23  ;;  %v1241_v23 = vld [vmem:[#allocation2 + $0x48] sm:$0xf]  ;;  %v3568_v37 = vpack.c.bf16 %v4471_v4, %v4465_v63 }
 0x238   : > { %3557 = vmatpush1.bf16.msra.mxu1 %v3556_v9  ;;  %3459 = vmatprep.subr.bf16.mxu0 %v3458_v54  ;;  %v1344_v2 = vpop.permute.xlu0 %1343 }
 0x239   : > { %v2713_v10 = vpop.permute.xlu1 %2712  ;;  %3559 = vmatprep.subr.bf16.mxu1 %v3558_v48  ;;  %v1355_v18 = vsel %vm1353_vm5, %v1332_v42, %v1344_v2  ;;  %v1361_v7 = vsel %vm1353_vm5, %v1344_v2, %v1332_v42  ;;  %3361 = vmatmul.mubr.msk.f32.gmra.mrb[2].mxu0 %vm778_vm1, %v1151_v15 }
 0x23a   : > { %v1376_v49 = vmul.f32 %v5097_v28, %v1355_v18  ;;  %v1377_v24 = vmul.f32 %v5106_v50, %v1361_v7  ;;  %2976 = vrot.lane.b32.xlu0 %v4417_v53, %s3881_s19  ;;  %1312 = vmatprep.mubr.f32.mxu0 %v3876_v46 }
 0x23b   : > { %2986 = vrot.lane.b32.xlu1 %v4423_v21, %s3881_s19  ;;  %3461 = vmatpush1.bf16.msra.mxu0 %v3460_v22 }
 0x23c   : > { %v3464_v61 = vpack.c.bf16 %v1376_v49, %v1374_v44  ;;  %3381 = vmatmul.mubr.msk.f32.vlgmr.msra.gmra.mrb[0].mxu1 %vm778_vm1, %v1150_v14  ;;  %v2715_v51 = vpop.permute.xlu0 %2714  ;;  %v3462_v26 = vpack.c.bf16 %v1377_v24, %v1375_v60 }
 0x23d   : > { %3561 = vmatpush1.bf16.msra.mxu1 %v3560_v8  ;;  %v2725_v57 = vpop.permute.xlu1 %2724  ;;  %2620 = vmatprep.mubr.f32.mxu1 %v3876_v46 }
 0x23e   : > { %v2736_v16 = vsel %vm1353_vm5, %v2713_v10, %v2725_v57  ;;  %v2742_v30 = vsel %vm1353_vm5, %v2725_v57, %v2713_v10  ;;  %3563 = vmatprep.subr.bf16.mxu1 %v3562_v1  ;;  %2988 = vrot.lane.b32.xlu0 %v4437_v40, %s3881_s19 }
 0x23f   : > { %v2748_v14 = vmul.f32 %v2736_v16, %v5097_v28  ;;  %v2749_v17 = vmul.f32 %v2742_v30, %v5106_v50  ;;  %1631 = vrot.lane.b32.xlu1 %v4441_v62, %s3881_s19  ;;  %3463 = vmatprep.subr.bf16.mxu0 %v3462_v26 }
 0x240   : > { %3362 = vmatmul.mubr.msk.f32.vlgmr.msra.gmra.mrb[0].mxu0 %vm778_vm1, %v1240_v31  ;;  %v2727_v39 = vpop.permute.xlu0 %2726  ;;  %3382 = vmatmul.mubr.msk.f32.gmra.mrb[2].mxu1 %vm778_vm1, %v1151_v15 }
 0x241   : > { %3465 = vmatpush1.bf16.msra.mxu0 %v3464_v61  ;;  %3565 = vmatpush1.bf16.msra.mxu1 %v3564_v45  ;;  %v1334_v43 = vpop.permute.xlu1 %1333  ;;  %v2737_v9 = vsel %vm1353_vm5, %v2715_v51, %v2727_v39  ;;  %v2743_v42 = vsel %vm1353_vm5, %v2727_v39, %v2715_v51 }
 0x242   : > { %3567 = vmatprep.subr.bf16.mxu1 %v3566_v47  ;;  %v2750_v35 = vmul.f32 %v2737_v9, %v5097_v28  ;;  %v2751_v55 = vmul.f32 %v2743_v42, %v5106_v50  ;;  %1633 = vrot.lane.b32.xlu0 %v4451_v56, %s3881_s19 }
 0x243   : > { %1643 = vrot.lane.b32.xlu1 %v4455_v3, %s3881_s19  ;;  %2695 = vmatprep.mubr.f32.mxu1 %v3876_v46 }
 0x244   : > { %v3572_v25 = vpack.c.bf16 %v2750_v35, %v2748_v14  ;;  %v1336_v54 = vpop.permute.xlu0 %1335  ;;  %v3570_v15 = vpack.c.bf16 %v2751_v55, %v2749_v17  ;;  %1318 = vmatprep.mubr.f32.mxu0 %v3876_v46 }
 0x245   : > { %3569 = vmatpush1.bf16.msra.mxu1 %v3568_v37  ;;  %v1346_v44 = vpop.permute.xlu1 %1345  ;;  %3363 = vmatmul.mubr.msk.f32.gmra.mrb[2].mxu0 %vm778_vm1, %v1241_v23 }
 0x246   : > { %v1356_v60 = vsel %vm1353_vm5, %v1334_v43, %v1346_v44  ;;  %v1362_v48 = vsel %vm1353_vm5, %v1346_v44, %v1334_v43  ;;  %1645 = vrot.lane.b32.xlu0 %v4461_v29, %s3881_s19  ;;  %3571 = vmatprep.subr.bf16.mxu1 %v3570_v15 }
 0x247   : > { %v1378_v2 = vmul.f32 %v5097_v28, %v1356_v60  ;;  %v1379_v10 = vmul.f32 %v5106_v50, %v1362_v48  ;;  %2978 = vrot.lane.b32.xlu1 %v4465_v63, %s3881_s19  ;;  %1459 = vmatprep.mubr.f32.mxu0 %v3876_v46 }
 0x248   : > { %3383 = vmatmul.mubr.msk.f32.vlgmr.msra.gmra.mrb[0].mxu1 %vm778_vm1, %v1240_v31  ;;  %v1348_v18 = vpop.permute.xlu0 %1347 }
 0x249   : > { %3573 = vmatpush1.bf16.msra.mxu1 %v3572_v25  ;;  %v2717_v7 = vpop.permute.xlu1 %2716  ;;  %v1357_v22 = vsel %vm1353_vm5, %v1336_v54, %v1348_v18  ;;  %v1363_v49 = vsel %vm1353_vm5, %v1348_v18, %v1336_v54  ;;  %2701 = vmatprep.mubr.f32.mxu1 %v3876_v46 }
 0x24a   : > { %v1380_v24 = vmul.f32 %v5097_v28, %v1357_v22  ;;  %v1381_v8 = vmul.f32 %v5106_v50, %v1363_v49  ;;  %2980 = vrot.lane.b32.xlu0 %v4471_v4, %s3881_s19 }
 0x24b   : > { %2990 = vrot.lane.b32.xlu1 %v4473_v27, %s3881_s19 }
 0x24c   : > { %v3468_v61 = vpack.c.bf16 %v1380_v24, %v1378_v2  ;;  %v2719_v1 = vpop.permute.xlu0 %2718  ;;  %v3466_v51 = vpack.c.bf16 %v1381_v8, %v1379_v10  ;;  %3384 = vmatmul.mubr.msk.f32.gmra.mrb[2].mxu1 %vm778_vm1, %v1241_v23 }
 0x24d   : > { %v2729_v26 = vpop.permute.xlu1 %2728  ;;  %2824 = vmatprep.mubr.f32.mxu1 %v3876_v46 }
 0x24e   : > { %v2738_v57 = vsel %vm1353_vm5, %v2717_v7, %v2729_v26  ;;  %v2744_v31 = vsel %vm1353_vm5, %v2729_v26, %v2717_v7  ;;  %2992 = vrot.lane.b32.xlu0 %v4479_v34, %s3881_s19  ;;  %3467 = vmatprep.subr.bf16.mxu0 %v3466_v51  ;;  %s5569_s19 = scalar_lea.vmem [#allocation5], %s3350_s18 }
 0x24f   : > { %v2752_v16 = vmul.f32 %v2738_v57, %v5097_v28  ;;  %v2753_v30 = vmul.f32 %v2744_v31, %v5106_v50  ;;  %1770 = vrot.lane.b32.xlu1 %v4235_v59, %s3882_s23  ;;  %3469 = vmatpush1.bf16.msra.mxu0 %v3468_v61  ;;  %v1388_v57 = vld [vmem:[#allocation2 + $0x58] sm:$0xf]  ;;  %s3270_s15 = sshll.u32 %s5569_s19, 4  ;;  %s5585_s15 = int_to_ptr.vmem [resolvable:$true] %s3270_s15 }
 0x250   : > { %v2731_v14 = vpop.permute.xlu0 %2730  ;;  %p3805_p2 = scmp.lt.s32.totalorder %s5585_s15, %s3803_s8 }
 0x251   : > { %v1338_v17 = vpop.permute.xlu1 %1337  ;;  %v2739_v45 = vsel %vm1353_vm5, %v2719_v1, %v2731_v14  ;;  %v2745_v47 = vsel %vm1353_vm5, %v2731_v14, %v2719_v1 }
 0x252   : > { %v2754_v39 = vmul.f32 %v2739_v45, %v5097_v28  ;;  %v2755_v43 = vmul.f32 %v2745_v47, %v5106_v50  ;;  %1772 = vrot.lane.b32.xlu0 %v4275_v0, %s3882_s23 }
 0x253   : > { %1782 = vrot.lane.b32.xlu1 %v4259_v58, %s3882_s23 }
 0x254   : > { %v3576_v59 = vpack.c.bf16 %v2754_v39, %v2752_v16  ;;  %v1340_v9 = vpop.permute.xlu0 %1339  ;;  %v3574_v42 = vpack.c.bf16 %v2755_v43, %v2753_v30 }
 0x255   : > { %v1350_v35 = vpop.permute.xlu1 %1349 }
 0x256   : > { %v1358_v55 = vsel %vm1353_vm5, %v1338_v17, %v1350_v35  ;;  %v1364_v23 = vsel %vm1353_vm5, %v1350_v35, %v1338_v17  ;;  %1784 = vrot.lane.b32.xlu0 %v4301_v38, %s3882_s23  ;;  %3575 = vmatprep.subr.bf16.mxu1 %v3574_v42 }
 0x257   : > { %v1382_v37 = vmul.f32 %v5097_v28, %v1358_v55  ;;  %v1383_v0 = vmul.f32 %v5106_v50, %v1364_v23  ;;  %3099 = vrot.lane.b32.xlu1 %v4282_v52, %s3882_s23  ;;  %3577 = vmatpush1.bf16.msra.mxu1 %v3576_v59 }
 0x258   : > { %v1352_v58 = vpop.permute.xlu0 %1351 }
 0x259   : > { %v2721_v25 = vpop.permute.xlu1 %2720  ;;  %v1359_v54 = vsel %vm1353_vm5, %v1340_v9, %v1352_v58  ;;  %v1365_v15 = vsel %vm1353_vm5, %v1352_v58, %v1340_v9 }
 0x25a   : > { %v1384_v44 = vmul.f32 %v5097_v28, %v1359_v54  ;;  %v1385_v38 = vmul.f32 %v5106_v50, %v1365_v15  ;;  %3101 = vrot.lane.b32.xlu0 %v4327_v5, %s3882_s23 }
 0x25b   : > { %3111 = vrot.lane.b32.xlu1 %v4307_v19, %s3882_s23  ;;  %v1387_v19 = vld [vmem:[#allocation2 + $0x50] sm:$0xff] }
 0x25c   : > { %v3472_v52 = vpack.c.bf16 %v1384_v44, %v1382_v37  ;;  %v2723_v60 = vpop.permute.xlu0 %2722  ;;  %v3470_v48 = vpack.c.bf16 %v1385_v38, %v1383_v0 }
 0x25d   : > { %v2733_v2 = vpop.permute.xlu1 %2732 }
 0x25e   : > { %v2740_v10 = vsel %vm1353_vm5, %v2721_v25, %v2733_v2  ;;  %v2746_v18 = vsel %vm1353_vm5, %v2733_v2, %v2721_v25  ;;  %3113 = vrot.lane.b32.xlu0 %v4347_v32, %s3882_s23  ;;  %3471 = vmatprep.subr.bf16.mxu0 %v3470_v48 }
 0x25f   : > { %v2756_v7 = vmul.f32 %v2740_v10, %v5097_v28  ;;  %v2757_v5 = vmul.f32 %v2746_v18, %v5106_v50  ;;  %1774 = vrot.lane.b32.xlu1 %v4360_v6, %s3882_s23  ;;  %3473 = vmatpush1.bf16.msra.mxu0 %v3472_v52  ;;  %v5682_v6 = vld [vmem:[#allocation11_spill] sm:$0xff] }
 0x260   : > { %v2735_v22 = vpop.permute.xlu0 %2734  ;;  %v5265_v1 = vrot.slane %v5093_v11, %v5682_v6  ;;  %v5269_v51 = vrot.slane %v5102_v12, %v5682_v6 }
 0x261   : > { %v1477_v49 = vpop.permute.xlu1 %1476  ;;  %v2741_v24 = vsel %vm1353_vm5, %v2723_v60, %v2735_v22  ;;  %v2747_v8 = vsel %vm1353_vm5, %v2735_v22, %v2723_v60 }
 0x262   : > { %v2758_v32 = vmul.f32 %v2741_v24, %v5097_v28  ;;  %v2759_v61 = vmul.f32 %v2747_v8, %v5106_v50  ;;  %1776 = vrot.lane.b32.xlu0 %v4371_v36, %s3882_s23  ;;  %3364 = vmatmul.mubr.msk.f32.vlgmr.msra.gmra.mrb[0].mxu0 %vm778_vm1, %v1387_v19 }
 0x263   : > { %1786 = vrot.lane.b32.xlu1 %v4379_v20, %s3882_s23  ;;  %1465 = vmatprep.mubr.f32.mxu0 %v3876_v46 }
 0x264   : > { %v3580_v28 = vpack.c.bf16 %v2758_v32, %v2756_v7  ;;  %v1479_v50 = vpop.permute.xlu0 %1478  ;;  %v3578_v36 = vpack.c.bf16 %v2759_v61, %v2757_v5 }
 0x265   : > { %v1489_v26 = vpop.permute.xlu1 %1488 }
 0x266   : > { %v1501_v31 = vsel %vm1500_vm6, %v1477_v49, %v1489_v26  ;;  %v1507_v16 = vsel %vm1500_vm6, %v1489_v26, %v1477_v49  ;;  %1788 = vrot.lane.b32.xlu0 %v4395_v41, %s3882_s23  ;;  %3579 = vmatprep.subr.bf16.mxu1 %v3578_v36 }
 0x267   : > { %v1521_v30 = vmul.f32 %v5265_v1, %v1501_v31  ;;  %v1522_v20 = vmul.f32 %v5269_v51, %v1507_v16  ;;  %3103 = vrot.lane.b32.xlu1 %v4402_v33, %s3882_s23  ;;  %3581 = vmatpush1.bf16.msra.mxu1 %v3580_v28 }
 0x268   : > { %v1491_v14 = vpop.permute.xlu0 %1490  ;;  %3365 = vmatmul.mubr.msk.f32.gmra.mrb[2].mxu0 %vm778_vm1, %v1388_v57 }
 0x269   : > { %v2842_v17 = vpop.permute.xlu1 %2841  ;;  %v1502_v45 = vsel %vm1500_vm6, %v1479_v50, %v1491_v14  ;;  %v1508_v47 = vsel %vm1500_vm6, %v1491_v14, %v1479_v50  ;;  %1606 = vmatprep.mubr.f32.mxu0 %v3876_v46 }
 0x26a   : > { %v1523_v41 = vmul.f32 %v5265_v1, %v1502_v45  ;;  %v1524_v39 = vmul.f32 %v5269_v51, %v1508_v47  ;;  %3105 = vrot.lane.b32.xlu0 %v4417_v53, %s3882_s23  ;;  %3385 = vmatmul.mubr.msk.f32.vlgmr.msra.gmra.mrb[0].mxu1 %vm778_vm1, %v1387_v19 }
 0x26b   : > { %3115 = vrot.lane.b32.xlu1 %v4423_v21, %s3882_s23  ;;  %2830 = vmatprep.mubr.f32.mxu1 %v3876_v46 }
 0x26c   : > { %v3476_v33 = vpack.c.bf16 %v1523_v41, %v1521_v30  ;;  %v2844_v43 = vpop.permute.xlu0 %2843  ;;  %v3474_v59 = vpack.c.bf16 %v1524_v39, %v1522_v20 }
 0x26d   : > { %v2854_v9 = vpop.permute.xlu1 %2853 }
 0x26e   : > { %v2865_v42 = vsel %vm1500_vm6, %v2842_v17, %v2854_v9  ;;  %v2871_v35 = vsel %vm1500_vm6, %v2854_v9, %v2842_v17  ;;  %3117 = vrot.lane.b32.xlu0 %v4437_v40, %s3882_s23  ;;  %3475 = vmatprep.subr.bf16.mxu0 %v3474_v59 }
 0x26f   : > { %v2877_v53 = vmul.f32 %v2865_v42, %v5265_v1  ;;  %v2878_v21 = vmul.f32 %v2871_v35, %v5269_v51  ;;  %1778 = vrot.lane.b32.xlu1 %v4441_v62, %s3882_s23  ;;  %3477 = vmatpush1.bf16.msra.mxu0 %v3476_v33 }
 0x270   : > { %v2856_v55 = vpop.permute.xlu0 %2855  ;;  %3386 = vmatmul.mubr.msk.f32.gmra.mrb[2].mxu1 %vm778_vm1, %v1388_v57 }
 0x271   : > { %v1481_v23 = vpop.permute.xlu1 %1480  ;;  %v2866_v37 = vsel %vm1500_vm6, %v2844_v43, %v2856_v55  ;;  %v2872_v0 = vsel %vm1500_vm6, %v2856_v55, %v2844_v43  ;;  %2953 = vmatprep.mubr.f32.mxu1 %v3876_v46 }
 0x272   : > { %v2879_v40 = vmul.f32 %v2866_v37, %v5265_v1  ;;  %v2880_v58 = vmul.f32 %v2872_v0, %v5269_v51  ;;  %1780 = vrot.lane.b32.xlu0 %v4451_v56, %s3882_s23 }
 0x273   : > { %1790 = vrot.lane.b32.xlu1 %v4455_v3, %s3882_s23 }
 0x274   : > { %v3584_v62 = vpack.c.bf16 %v2879_v40, %v2877_v53  ;;  %v1483_v25 = vpop.permute.xlu0 %1482  ;;  %v3582_v54 = vpack.c.bf16 %v2880_v58, %v2878_v21  ;;  %v1534_v53 = vld [vmem:[#allocation2 + $0x60] sm:$0xff]  ;;  %v5683_v58 = vld [vmem:[#allocation13_spill] sm:$0xff] }
 0x275   : > { %v1493_v15 = vpop.permute.xlu1 %1492 }
 0x276   : > { %v1503_v44 = vsel %vm1500_vm6, %v1481_v23, %v1493_v15  ;;  %v1509_v38 = vsel %vm1500_vm6, %v1493_v15, %v1481_v23  ;;  %1792 = vrot.lane.b32.xlu0 %v4461_v29, %s3882_s23  ;;  %3583 = vmatprep.subr.bf16.mxu1 %v3582_v54  ;;  %v1535_v54 = vld [vmem:[#allocation2 + $0x68] sm:$0xf] }
 0x277   : > { %v1525_v52 = vmul.f32 %v5265_v1, %v1503_v44  ;;  %v1526_v56 = vmul.f32 %v5269_v51, %v1509_v38  ;;  %3107 = vrot.lane.b32.xlu1 %v4465_v63, %s3882_s23  ;;  %3585 = vmatpush1.bf16.msra.mxu1 %v3584_v62  ;;  %v5382_v62 = vrot.slane %v5093_v11, %v5683_v58 }
 0x278   : > { %v1495_v3 = vpop.permute.xlu0 %1494 }
 0x279   : > { %v2846_v60 = vpop.permute.xlu1 %2845  ;;  %v1504_v48 = vsel %vm1500_vm6, %v1483_v25, %v1495_v3  ;;  %v1510_v2 = vsel %vm1500_vm6, %v1495_v3, %v1483_v25  ;;  %v5386_v25 = vrot.slane %v5102_v12, %v5683_v58 }
 0x27a   : > { %v1527_v10 = vmul.f32 %v5265_v1, %v1504_v48  ;;  %v1528_v29 = vmul.f32 %v5269_v51, %v1510_v2  ;;  %3109 = vrot.lane.b32.xlu0 %v4471_v4, %s3882_s23 }
 0x27b   : > { %3119 = vrot.lane.b32.xlu1 %v4473_v27, %s3882_s23 }
 0x27c   : > { %v3480_v63 = vpack.c.bf16 %v1527_v10, %v1525_v52  ;;  %v2848_v18 = vpop.permute.xlu0 %2847  ;;  %v3478_v7 = vpack.c.bf16 %v1528_v29, %v1526_v56 }
 0x27d   : > { %v2858_v5 = vpop.permute.xlu1 %2857 }
 0x27e   : > { %v2867_v19 = vsel %vm1500_vm6, %v2846_v60, %v2858_v5  ;;  %v2873_v22 = vsel %vm1500_vm6, %v2858_v5, %v2846_v60  ;;  %3121 = vrot.lane.b32.xlu0 %v4479_v34, %s3882_s23  ;;  %3479 = vmatprep.subr.bf16.mxu0 %v3478_v7  ;;  %s3798_s23 = scalar_lea.vmem %s5585_s15, 1024 }
 0x27f   : > { %v2881_v49 = vmul.f32 %v2867_v19, %v5265_v1  ;;  %v2882_v4 = vmul.f32 %v2873_v22, %v5269_v51  ;;  %3481 = vmatpush1.bf16.msra.mxu0 %v3480_v63  ;;  %p3799_p6 = scmp.ne.s32.totalorder %s5585_s15, %s3798_s23  ;;  %p3806_p3 = scmp.lt.s32.totalorder %s3804_s9, %s3798_s23 }
 0x280   : > { %v2860_v27 = vpop.permute.xlu0 %2859 }
 0x281   : > { %v1485_v24 = vpop.permute.xlu1 %1484  ;;  %v2868_v8 = vsel %vm1500_vm6, %v2848_v18, %v2860_v27  ;;  %v2874_v32 = vsel %vm1500_vm6, %v2860_v27, %v2848_v18  ;;  %p3800_p10 = pnand %p3799_p6, %p5684_p9  ;;  %p3807_p4 = por %p3806_p3, %p3805_p2 }
 0x282   : > { %v2883_v61 = vmul.f32 %v2868_v8, %v5265_v1  ;;  %v2884_v6 = vmul.f32 %v2874_v32, %v5269_v51 }
 0x283   : > { %p3801_p12 = pneg %p3800_p10 }
 0x284   : > { %v3588_v28 = vpack.c.bf16 %v2883_v61, %v2881_v49  ;;  %v1487_v34 = vpop.permute.xlu0 %1486  ;;  %v3586_v50 = vpack.c.bf16 %v2884_v6, %v2882_v4 }
 0x285   : > { %v1497_v36 = vpop.permute.xlu1 %1496  ;;  %p3808_p7 = pnand %p3807_p4, %p3801_p12 }
 0x286   : > { %v1505_v26 = vsel %vm1500_vm6, %v1485_v24, %v1497_v36  ;;  %v1511_v57 = vsel %vm1500_vm6, %v1497_v36, %v1485_v24  ;;  %3587 = vmatprep.subr.bf16.mxu1 %v3586_v50 }
 0x287   : > { %v1529_v31 = vmul.f32 %v5265_v1, %v1505_v26  ;;  %v1530_v16 = vmul.f32 %v5269_v51, %v1511_v57  ;;  %3589 = vmatpush1.bf16.msra.mxu1 %v3588_v28 }
 0x288   : > { %v1499_v30 = vpop.permute.xlu0 %1498 }
 0x289   : > { %v2850_v20 = vpop.permute.xlu1 %2849  ;;  %v1506_v14 = vsel %vm1500_vm6, %v1487_v34, %v1499_v30  ;;  %v1512_v17 = vsel %vm1500_vm6, %v1499_v30, %v1487_v34 }
 0x28a   : > { %v1531_v45 = vmul.f32 %v5265_v1, %v1506_v14  ;;  %v1532_v47 = vmul.f32 %v5269_v51, %v1512_v17 }
 0x28c   : > { %v3484_v41 = vpack.c.bf16 %v1531_v45, %v1529_v31  ;;  %v2852_v39 = vpop.permute.xlu0 %2851  ;;  %v3482_v33 = vpack.c.bf16 %v1532_v47, %v1530_v16 }
 0x28d   : > { %v2862_v43 = vpop.permute.xlu1 %2861 }
 0x28e   : > { %v2869_v59 = vsel %vm1500_vm6, %v2850_v20, %v2862_v43  ;;  %v2875_v9 = vsel %vm1500_vm6, %v2862_v43, %v2850_v20  ;;  %3483 = vmatprep.subr.bf16.mxu0 %v3482_v33 }
 0x28f   : > { %v2885_v42 = vmul.f32 %v2869_v59, %v5265_v1  ;;  %v2886_v35 = vmul.f32 %v2875_v9, %v5269_v51  ;;  %3485 = vmatpush1.bf16.msra.mxu0 %v3484_v41 }
 0x290   : > { %v2864_v21 = vpop.permute.xlu0 %2863 }
 0x291   : > { %v1624_v55 = vpop.permute.xlu1 %1623  ;;  %v2870_v23 = vsel %vm1500_vm6, %v2852_v39, %v2864_v21  ;;  %v2876_v37 = vsel %vm1500_vm6, %v2864_v21, %v2852_v39 }
 0x292   : > { %v2887_v0 = vmul.f32 %v2870_v23, %v5265_v1  ;;  %v2888_v40 = vmul.f32 %v2876_v37, %v5269_v51  ;;  %3366 = vmatmul.mubr.msk.f32.vlgmr.msra.gmra.mrb[0].mxu0 %vm778_vm1, %v1534_v53 }
 0x293   : > { %1612 = vmatprep.mubr.f32.mxu0 %v3876_v46 }
 0x294   : > { %v3592_v15 = vpack.c.bf16 %v2887_v0, %v2885_v42  ;;  %v1626_v44 = vpop.permute.xlu0 %1625  ;;  %v3590_v1 = vpack.c.bf16 %v2888_v40, %v2886_v35 }
 0x295   : > { %v1636_v38 = vpop.permute.xlu1 %1635 }
 0x296   : > { %v1648_v51 = vsel %vm1647_vm7, %v1624_v55, %v1636_v38  ;;  %v1654_v52 = vsel %vm1647_vm7, %v1636_v38, %v1624_v55  ;;  %3591 = vmatprep.subr.bf16.mxu1 %v3590_v1  ;;  %3367 = vmatmul.mubr.msk.f32.gmra.mrb[2].mxu0 %vm778_vm1, %v1535_v54 }
 0x297   : > { %v1668_v11 = vmul.f32 %v5382_v62, %v1648_v51  ;;  %v1669_v12 = vmul.f32 %v5386_v25, %v1654_v52  ;;  %3593 = vmatpush1.bf16.msra.mxu1 %v3592_v15  ;;  %1753 = vmatprep.mubr.f32.mxu0 %v3876_v46 }
 0x298   : > { %v1638_v56 = vpop.permute.xlu0 %1637 }
 0x299   : > { %v2971_v3 = vpop.permute.xlu1 %2970  ;;  %v1649_v60 = vsel %vm1647_vm7, %v1626_v44, %v1638_v56  ;;  %v1655_v48 = vsel %vm1647_vm7, %v1638_v56, %v1626_v44 }
 0x29a   : > { %v1670_v2 = vmul.f32 %v5382_v62, %v1649_v60  ;;  %v1671_v10 = vmul.f32 %v5386_v25, %v1655_v48  ;;  %3387 = vmatmul.mubr.msk.f32.vlgmr.msra.gmra.mrb[0].mxu1 %vm778_vm1, %v1534_v53 }
 0x29b   : > { %2959 = vmatprep.mubr.f32.mxu1 %v3876_v46 }
 0x29c   : > { %v3488_v29 = vpack.c.bf16 %v1670_v2, %v1668_v11  ;;  %v2973_v63 = vpop.permute.xlu0 %2972  ;;  %v3486_v18 = vpack.c.bf16 %v1671_v10, %v1669_v12 }
 0x29d   : > { %v2983_v7 = vpop.permute.xlu1 %2982 }
 0x29e   : > { %v2994_v5 = vsel %vm1647_vm7, %v2971_v3, %v2983_v7  ;;  %v3000_v19 = vsel %vm1647_vm7, %v2983_v7, %v2971_v3  ;;  %3487 = vmatprep.subr.bf16.mxu0 %v3486_v18  ;;  %3388 = vmatmul.mubr.msk.f32.gmra.mrb[2].mxu1 %vm778_vm1, %v1535_v54 }
 0x29f   : > { %v3006_v22 = vmul.f32 %v2994_v5, %v5382_v62  ;;  %v3007_v49 = vmul.f32 %v3000_v19, %v5386_v25  ;;  %3489 = vmatpush1.bf16.msra.mxu0 %v3488_v29  ;;  %3082 = vmatprep.mubr.f32.mxu1 %v3876_v46  ;;  %v1681_v5 = vld [vmem:[#allocation2 + $0x70] sm:$0xff] }
 0x2a0   : > { %v2985_v4 = vpop.permute.xlu0 %2984 }
 0x2a1   : > { %v1628_v27 = vpop.permute.xlu1 %1627  ;;  %v2995_v24 = vsel %vm1647_vm7, %v2973_v63, %v2985_v4  ;;  %v3001_v8 = vsel %vm1647_vm7, %v2985_v4, %v2973_v63 }
 0x2a2   : > { %v3008_v32 = vmul.f32 %v2995_v24, %v5382_v62  ;;  %v3009_v61 = vmul.f32 %v3001_v8, %v5386_v25  ;;  %v1682_v8 = vld [vmem:[#allocation2 + $0x78] sm:$0xf] }
 0x2a4   : > { %v3596_v6 = vpack.c.bf16 %v3008_v32, %v3006_v22  ;;  %v1630_v28 = vpop.permute.xlu0 %1629  ;;  %v3594_v34 = vpack.c.bf16 %v3009_v61, %v3007_v49 }
 0x2a5   : > { %v1640_v50 = vpop.permute.xlu1 %1639 }
 0x2a6   : > { %v1650_v36 = vsel %vm1647_vm7, %v1628_v27, %v1640_v50  ;;  %v1656_v26 = vsel %vm1647_vm7, %v1640_v50, %v1628_v27  ;;  %3595 = vmatprep.subr.bf16.mxu1 %v3594_v34 }
 0x2a7   : > { %v1672_v57 = vmul.f32 %v5382_v62, %v1650_v36  ;;  %v1673_v31 = vmul.f32 %v5386_v25, %v1656_v26  ;;  %3597 = vmatpush1.bf16.msra.mxu1 %v3596_v6 }
 0x2a8   : > { %v1642_v16 = vpop.permute.xlu0 %1641 }
 0x2a9   : > { %v2975_v30 = vpop.permute.xlu1 %2974  ;;  %v1651_v20 = vsel %vm1647_vm7, %v1630_v28, %v1642_v16  ;;  %v1657_v14 = vsel %vm1647_vm7, %v1642_v16, %v1630_v28 }
 0x2aa   : > { %v1674_v17 = vmul.f32 %v5382_v62, %v1651_v20  ;;  %v1675_v45 = vmul.f32 %v5386_v25, %v1657_v14 }
 0x2ac   : > { %v3492_v47 = vpack.c.bf16 %v1674_v17, %v1672_v57  ;;  %v2977_v41 = vpop.permute.xlu0 %2976  ;;  %v3490_v39 = vpack.c.bf16 %v1675_v45, %v1673_v31 }
 0x2ad   : > { %v2987_v33 = vpop.permute.xlu1 %2986 }
 0x2ae   : > { %v2996_v43 = vsel %vm1647_vm7, %v2975_v30, %v2987_v33  ;;  %v3002_v59 = vsel %vm1647_vm7, %v2987_v33, %v2975_v30  ;;  %3491 = vmatprep.subr.bf16.mxu0 %v3490_v39 }
 0x2af   : > { %v3010_v9 = vmul.f32 %v2996_v43, %v5382_v62  ;;  %v3011_v42 = vmul.f32 %v3002_v59, %v5386_v25  ;;  %3493 = vmatpush1.bf16.msra.mxu0 %v3492_v47 }
 0x2b0   : > { %v2989_v35 = vpop.permute.xlu0 %2988 }
 0x2b1   : > { %v1632_v53 = vpop.permute.xlu1 %1631  ;;  %v2997_v21 = vsel %vm1647_vm7, %v2977_v41, %v2989_v35  ;;  %v3003_v55 = vsel %vm1647_vm7, %v2989_v35, %v2977_v41 }
 0x2b2   : > { %v3012_v23 = vmul.f32 %v2997_v21, %v5382_v62  ;;  %v3013_v37 = vmul.f32 %v3003_v55, %v5386_v25 }
 0x2b4   : > { %v3600_v0 = vpack.c.bf16 %v3012_v23, %v3010_v9  ;;  %v1634_v40 = vpop.permute.xlu0 %1633  ;;  %v3598_v58 = vpack.c.bf16 %v3013_v37, %v3011_v42 }
 0x2b5   : > { %v1644_v54 = vpop.permute.xlu1 %1643 }
 0x2b6   : > { %v1652_v15 = vsel %vm1647_vm7, %v1632_v53, %v1644_v54  ;;  %v1658_v44 = vsel %vm1647_vm7, %v1644_v54, %v1632_v53  ;;  %3599 = vmatprep.subr.bf16.mxu1 %v3598_v58 }
 0x2b7   : > { %v1676_v1 = vmul.f32 %v5382_v62, %v1652_v15  ;;  %v1677_v38 = vmul.f32 %v5386_v25, %v1658_v44  ;;  %3601 = vmatpush1.bf16.msra.mxu1 %v3600_v0 }
 0x2b8   : > { %v1646_v51 = vpop.permute.xlu0 %1645 }
 0x2b9   : > { %v2979_v52 = vpop.permute.xlu1 %2978  ;;  %v1653_v11 = vsel %vm1647_vm7, %v1634_v40, %v1646_v51  ;;  %v1659_v12 = vsel %vm1647_vm7, %v1646_v51, %v1634_v40 }
 0x2ba   : > { %v1678_v56 = vmul.f32 %v5382_v62, %v1653_v11  ;;  %v1679_v3 = vmul.f32 %v5386_v25, %v1659_v12 }
 0x2bc   : > { %v3496_v60 = vpack.c.bf16 %v1678_v56, %v1676_v1  ;;  %v2981_v48 = vpop.permute.xlu0 %2980  ;;  %v3494_v2 = vpack.c.bf16 %v1679_v3, %v1677_v38 }
 0x2bd   : > { %v2991_v10 = vpop.permute.xlu1 %2990 }
 0x2be   : > { %v2998_v29 = vsel %vm1647_vm7, %v2979_v52, %v2991_v10  ;;  %v3004_v63 = vsel %vm1647_vm7, %v2991_v10, %v2979_v52  ;;  %3495 = vmatprep.subr.bf16.mxu0 %v3494_v2 }
 0x2bf   : > { %v3014_v18 = vmul.f32 %v2998_v29, %v5382_v62  ;;  %v3015_v7 = vmul.f32 %v3004_v63, %v5386_v25  ;;  %3497 = vmatpush1.bf16.msra.mxu0 %v3496_v60 }
 0x2c0   : > { %v2993_v19 = vpop.permute.xlu0 %2992 }
 0x2c1   : > { %v1771_v22 = vpop.permute.xlu1 %1770  ;;  %v2999_v49 = vsel %vm1647_vm7, %v2981_v48, %v2993_v19  ;;  %v3005_v4 = vsel %vm1647_vm7, %v2993_v19, %v2981_v48 }
 0x2c2   : > { %v3016_v27 = vmul.f32 %v2999_v49, %v5382_v62  ;;  %v3017_v24 = vmul.f32 %v3005_v4, %v5386_v25  ;;  %3368 = vmatmul.mubr.msk.f32.vlgmr.msra.gmra.mrb[0].mxu0 %vm778_vm1, %v1681_v5  ;;  %v5474_v62 = vld [vmem:[%s5641_s1 + $0x10] ss:$0 sm:$0xff]  ;;  %v5479_v25 = vld [vmem:[%s5641_s1 + $0x18] ss:$0 sm:$0xff] }
 0x2c3   : > { %1759 = vmatprep.mubr.f32.mxu0 %v3876_v46 }
 0x2c4   : > { %v3604_v32 = vpack.c.bf16 %v3016_v27, %v3014_v18  ;;  %v1773_v61 = vpop.permute.xlu0 %1772  ;;  %v3602_v6 = vpack.c.bf16 %v3017_v24, %v3015_v7 }
 0x2c5   : > { %v1783_v28 = vpop.permute.xlu1 %1782 }
 0x2c6   : > { %3603 = vmatprep.subr.bf16.mxu1 %v3602_v6  ;;  %3369 = vmatmul.mubr.msk.f32.gmra.mrb[2].mxu0 %vm778_vm1, %v1682_v8  ;;  %v1795_v34 = vsel %vm1794_vm8, %v1771_v22, %v1783_v28  ;;  %v1801_v50 = vsel %vm1794_vm8, %v1783_v28, %v1771_v22 }
 0x2c7   : > { %3605 = vmatpush1.bf16.msra.mxu1 %v3604_v32  ;;  %1900 = vmatprep.mubr.f32.mxu0 %v3876_v46  ;;  %v1815_v16 = vmul.f32 %v5474_v62, %v1795_v34  ;;  %v1816_v30 = vmul.f32 %v5479_v25, %v1801_v50 }
 0x2c8   : > { %v1785_v36 = vpop.permute.xlu0 %1784 }
 0x2c9   : > { %v3100_v26 = vpop.permute.xlu1 %3099  ;;  %v1796_v57 = vsel %vm1794_vm8, %v1773_v61, %v1785_v36  ;;  %v1802_v31 = vsel %vm1794_vm8, %v1785_v36, %v1773_v61 }
 0x2ca   : > { %v1817_v20 = vmul.f32 %v5474_v62, %v1796_v57  ;;  %v1818_v14 = vmul.f32 %v5479_v25, %v1802_v31  ;;  %3389 = vmatmul.mubr.msk.f32.vlgmr.msra.gmra.mrb[0].mxu1 %vm778_vm1, %v1681_v5 }
 0x2cb   : > { %3088 = vmatprep.mubr.f32.mxu1 %v3876_v46 }
 0x2cc   : > { %v3500_v17 = vpack.c.bf16 %v1817_v20, %v1815_v16  ;;  %v3102_v45 = vpop.permute.xlu0 %3101  ;;  %v3498_v47 = vpack.c.bf16 %v1818_v14, %v1816_v30 }
 0x2cd   : > { %v3112_v41 = vpop.permute.xlu1 %3111 }
 0x2ce   : > { %3499 = vmatprep.subr.bf16.mxu0 %v3498_v47  ;;  %3390 = vmatmul.mubr.msk.f32.gmra.mrb[2].mxu1 %vm778_vm1, %v1682_v8  ;;  %v3123_v39 = vsel %vm1794_vm8, %v3100_v26, %v3112_v41  ;;  %v3129_v33 = vsel %vm1794_vm8, %v3112_v41, %v3100_v26  ;;  %v1828_v47 = vld [vmem:[#allocation2 + $0x80] sm:$0xff] }
 0x2cf   : > { %3501 = vmatpush1.bf16.msra.mxu0 %v3500_v17  ;;  %3211 = vmatprep.mubr.f32.mxu1 %v3876_v46  ;;  %v3135_v35 = vmul.f32 %v5474_v62, %v3123_v39  ;;  %v3136_v53 = vmul.f32 %v5479_v25, %v3129_v33 }
 0x2d0   : > { %v3114_v43 = vpop.permute.xlu0 %3113 }
 0x2d1   : > { %v1775_v59 = vpop.permute.xlu1 %1774  ;;  %v3124_v9 = vsel %vm1794_vm8, %v3102_v45, %v3114_v43  ;;  %v3130_v42 = vsel %vm1794_vm8, %v3114_v43, %v3102_v45 }
 0x2d2   : > { %v3137_v21 = vmul.f32 %v5474_v62, %v3124_v9  ;;  %v3138_v55 = vmul.f32 %v5479_v25, %v3130_v42 }
 0x2d4   : > { %v3608_v23 = vpack.c.bf16 %v3137_v21, %v3135_v35  ;;  %v1777_v37 = vpop.permute.xlu0 %1776  ;;  %v3606_v0 = vpack.c.bf16 %v3138_v55, %v3136_v53  ;;  %v1829_v35 = vld [vmem:[#allocation2 + $0x88] sm:$0xf] }
 0x2d5   : > { %v1787_v40 = vpop.permute.xlu1 %1786 }
 0x2d6   : > { %3607 = vmatprep.subr.bf16.mxu1 %v3606_v0  ;;  %v1797_v58 = vsel %vm1794_vm8, %v1775_v59, %v1787_v40  ;;  %v1803_v54 = vsel %vm1794_vm8, %v1787_v40, %v1775_v59 }
 0x2d7   : > { %3609 = vmatpush1.bf16.msra.mxu1 %v3608_v23  ;;  %v1819_v51 = vmul.f32 %v5474_v62, %v1797_v58  ;;  %v1820_v52 = vmul.f32 %v5479_v25, %v1803_v54 }
 0x2d8   : > { %v1789_v15 = vpop.permute.xlu0 %1788 }
 0x2d9   : > { %v3104_v44 = vpop.permute.xlu1 %3103  ;;  %v1798_v1 = vsel %vm1794_vm8, %v1777_v37, %v1789_v15  ;;  %v1804_v38 = vsel %vm1794_vm8, %v1789_v15, %v1777_v37 }
 0x2da   : > { %v1821_v11 = vmul.f32 %v5474_v62, %v1798_v1  ;;  %v1822_v12 = vmul.f32 %v5479_v25, %v1804_v38  ;;  %v3769_v1 = vld [vmem:[%s4087_s13 + $0x8] sm:$0xff]  ;;  %s3401_s13 = sshll.u32 %s3946_s28, 10  ;;  %s5598_s28 = scalar_lea.sflag [#allocation4], %s287_s17 }
 0x2db   : > { %v3229_v38 = vcombine.high %v3769_v1, %v3769_v1  ;;  %s5591_s22 = scalar_lea.hbm %s5647_s7, %s3401_s13 }
 0x2dc   : > { %v3504_v56 = vpack.c.bf16 %v1821_v11, %v1819_v51  ;;  %v3106_v3 = vpop.permute.xlu0 %3105  ;;  %v3502_v60 = vpack.c.bf16 %v1822_v12, %v1820_v52 }
 0x2dd   : > { %v3116_v48 = vpop.permute.xlu1 %3115 }
 0x2de   : > { %3503 = vmatprep.subr.bf16.mxu0 %v3502_v60  ;;  %v3125_v2 = vsel %vm1794_vm8, %v3104_v44, %v3116_v48  ;;  %v3131_v10 = vsel %vm1794_vm8, %v3116_v48, %v3104_v44 }
 0x2df   : > { %3505 = vmatpush1.bf16.msra.mxu0 %v3504_v56  ;;  %v3139_v5 = vmul.f32 %v5474_v62, %v3125_v2  ;;  %v3140_v19 = vmul.f32 %v5479_v25, %v3131_v10 }
 0x2e0   : > { %v3118_v29 = vpop.permute.xlu0 %3117 }
 0x2e1   : > { %v1779_v63 = vpop.permute.xlu1 %1778  ;;  %v3126_v18 = vsel %vm1794_vm8, %v3106_v3, %v3118_v29  ;;  %v3132_v7 = vsel %vm1794_vm8, %v3118_v29, %v3106_v3 }
 0x2e2   : > { %v3141_v22 = vmul.f32 %v5474_v62, %v3126_v18  ;;  %v3142_v49 = vmul.f32 %v5479_v25, %v3132_v7 }
 0x2e4   : > { %v3612_v4 = vpack.c.bf16 %v3141_v22, %v3139_v5  ;;  %v1781_v27 = vpop.permute.xlu0 %1780  ;;  %v3610_v24 = vpack.c.bf16 %v3142_v49, %v3140_v19 }
 0x2e5   : > { %v1791_v8 = vpop.permute.xlu1 %1790 }
 0x2e6   : > { %3611 = vmatprep.subr.bf16.mxu1 %v3610_v24  ;;  %v1799_v32 = vsel %vm1794_vm8, %v1779_v63, %v1791_v8  ;;  %v1805_v61 = vsel %vm1794_vm8, %v1791_v8, %v1779_v63 }
 0x2e7   : > { %3613 = vmatpush1.bf16.msra.mxu1 %v3612_v4  ;;  %v1823_v36 = vmul.f32 %v5474_v62, %v1799_v32  ;;  %v1824_v26 = vmul.f32 %v5479_v25, %v1805_v61 }
 0x2e8   : > { %v1793_v6 = vpop.permute.xlu0 %1792 }
 0x2e9   : > { %v3108_v28 = vpop.permute.xlu1 %3107  ;;  %v1800_v34 = vsel %vm1794_vm8, %v1781_v27, %v1793_v6  ;;  %v1806_v50 = vsel %vm1794_vm8, %v1793_v6, %v1781_v27 }
 0x2ea   : > { %v1825_v57 = vmul.f32 %v5474_v62, %v1800_v34  ;;  %v1826_v31 = vmul.f32 %v5479_v25, %v1806_v50 }
 0x2ec   : > { %v3508_v16 = vpack.c.bf16 %v1825_v57, %v1823_v36  ;;  %v3110_v30 = vpop.permute.xlu0 %3109  ;;  %v3506_v20 = vpack.c.bf16 %v1826_v31, %v1824_v26 }
 0x2ed   : > { %v3120_v14 = vpop.permute.xlu1 %3119 }
 0x2ee   : > { %3507 = vmatprep.subr.bf16.mxu0 %v3506_v20  ;;  %v3127_v17 = vsel %vm1794_vm8, %v3108_v28, %v3120_v14  ;;  %v3133_v45 = vsel %vm1794_vm8, %v3120_v14, %v3108_v28 }
 0x2ef   : > { %3509 = vmatpush1.bf16.msra.mxu0 %v3508_v16  ;;  %v3143_v43 = vmul.f32 %v5474_v62, %v3127_v17  ;;  %v3144_v59 = vmul.f32 %v5479_v25, %v3133_v45 }
 0x2f0   : > { %v3122_v41 = vpop.permute.xlu0 %3121 }
 0x2f1   : > { %v3128_v39 = vsel %vm1794_vm8, %v3110_v30, %v3122_v41  ;;  %v3134_v33 = vsel %vm1794_vm8, %v3122_v41, %v3110_v30 }
 0x2f2   : > { %v3145_v9 = vmul.f32 %v5474_v62, %v3128_v39  ;;  %v3146_v42 = vmul.f32 %v5479_v25, %v3134_v33  ;;  %3372 = vmatmul.mubr.msk.f32.vlgmr.msra.gmra.mrb[0].mxu0 %vm778_vm1, %v1828_v47  ;;  %v1918_v62 = vcombine.high %v3768_v13, %v3768_v13 }
 0x2f3   : > { %1906 = vmatprep.mubr.f32.mxu0 %v3876_v46 }
 0x2f4   : > { %v3616_v53 = vpack.c.bf16 %v3145_v9, %v3143_v43  ;;  %v3614_v21 = vpack.c.bf16 %v3146_v42, %v3144_v59 }
 0x2f6   : > { %3373 = vmatmul.mubr.msk.f32.gmra.mrb[2].mxu0 %vm778_vm1, %v1829_v35  ;;  %3615 = vmatprep.subr.bf16.mxu1 %v3614_v21 }
 0x2f7   : > { %3617 = vmatpush1.bf16.msra.mxu1 %v3616_v53 }
 0x2fa   : > { %3391 = vmatmul.mubr.msk.f32.vlgmr.msra.gmra.mrb[0].mxu1 %vm778_vm1, %v1828_v47 }
 0x2fb   : > { %3217 = vmatprep.mubr.f32.mxu1 %v3876_v46 }
 0x2fe   : > { %3392 = vmatmul.mubr.msk.f32.gmra.mrb[2].mxu1 %vm778_vm1, %v1829_v35 }
 0x3c5   : > { %v1902_v25 = vpop.f32.mrb[0].mxu0 }
 0x3c6   : > { %v1925_v55 = vrot.slane %v1902_v25, 4  ;;  %v1904_v23 = vpop.f32.mrb[1].mxu0 }
 0x3c7   : > { %v1926_v37 = vrot.slane %v1904_v23, 4 }
 0x3c8   : > { %v1935_v0 = vsel %vm1924_vm9, %v3768_v13, %v1925_v55 }
 0x3c9   : > { %3247 = vst [vmem:[%s5569_s19] sm:$0xff] %v1935_v0  ;;  %v1936_v46 = vsel %vm1924_vm9, %v1918_v62, %v1926_v37  ;;  %v1908_v40 = vpop.f32.mrb[2].mxu0 }
 0x3ca   : > { %3248 = vst [vmem:[%s5569_s19 + $0x8] sm:$0xff] %v1936_v46  ;;  %v1927_v58 = vrot.slane %v1908_v40, 4  ;;  %v1910_v54 = vpop.f32.mrb[3].mxu0 }
 0x3cb   : > { %v1929_v15 = vrot.slane %v1910_v54, 4 }
 0x3cc   : > { %v1928_v44 = vsel %vm1924_vm9, %v1925_v55, %v1927_v58 }
 0x3cd   : > { %3249 = vst [vmem:[%s5569_s19 + $0x10] sm:$0xff] %v1928_v44  ;;  %v1930_v51 = vsel %vm1924_vm9, %v1926_v37, %v1929_v15  ;;  %v3213_v52 = vpop.f32.mrb[0].mxu1 }
 0x3ce   : > { %3250 = vst [vmem:[%s5569_s19 + $0x18] sm:$0xff] %v1930_v51  ;;  %v3235_v11 = vrot.slane %v3213_v52, 4  ;;  %v3215_v12 = vpop.f32.mrb[1].mxu1 }
 0x3cf   : > { %v3236_v56 = vrot.slane %v3215_v12, 4 }
 0x3d0   : > { %v3245_v3 = vsel %vm1924_vm9, %v3769_v1, %v3235_v11 }
 0x3d1   : > { %3251 = vst [vmem:[%s5569_s19 + $0x20] sm:$0xff] %v3245_v3  ;;  %v3246_v60 = vsel %vm1924_vm9, %v3229_v38, %v3236_v56  ;;  %v3219_v48 = vpop.f32.mrb[2].mxu1 }
 0x3d2   : > { %3252 = vst [vmem:[%s5569_s19 + $0x28] sm:$0xff] %v3246_v60  ;;  %v3237_v2 = vrot.slane %v3219_v48, 4  ;;  %v3221_v10 = vpop.f32.mrb[3].mxu1 }
 0x3d3   : > { %v3239_v29 = vrot.slane %v3221_v10, 4 }
 0x3d4   : > { %v3238_v63 = vsel %vm1924_vm9, %v3235_v11, %v3237_v2 }
 0x3d5   : > { %3253 = vst [vmem:[%s5569_s19 + $0x30] sm:$0xff] %v3238_v63  ;;  %v3240_v18 = vsel %vm1924_vm9, %v3236_v56, %v3239_v29 }
 0x3d6   : > { %3254 = vst [vmem:[%s5569_s19 + $0x38] sm:$0xff] %v3240_v18 }
 0x3d7   : > { %3811 = shalt.err (!%p3808_p7)
}
 0x3d8   : > { %s3812_s14 = scalar_lea.hbm %s5591_s22, 1024  ;;  %s3816_s19 = scalar_lea.hbm %s5647_s7, 2048 }
 0x3d9   : > { %p3813_p8 = scmp.ne.s32.totalorder %s5591_s22, %s3812_s14  ;;  %p3817_p1 = scmp.lt.u32.totalorder %s5591_s22, %s5647_s7 }
 0x3da   : > { %p3818_p0 = scmp.lt.u32.totalorder %s3816_s19, %s3812_s14  ;;  %p3820_p6 = scmp.lt.u32.totalorder %s3812_s14, %s5591_s22 }
 0x3db   : > { %p3814_p11 = pnand %p3813_p8, %p5684_p9 }
 0x3dc   : > { %p3819_p5 = por %p3818_p0, %p3817_p1 }
 0x3dd   : > { %p3815_p13 = pneg %p3814_p11 }
 0x3de   : > { %p3821_p10 = por %p3820_p6, %p3819_p5 }
 0x3e0   : > { %p3822_p12 = pnand %p3821_p10, %p3815_p13 }
 0x3e2   : > { %3825 = shalt.err (!%p3822_p12)
}
 0x3e3   : > { %s3884_s21 = smov 256  }
 0x3e4   : > { %3686 = dma.vmem_to_hbm [thread:$0]  (%p5684_p9), %s5585_s15, 1024, %s5591_s22, %s5598_s28, %s3884_s21, %s3884_s21, %s3874_s20  }
 0x3e5 PF: > { %p3698_p2 = scmp.ge.s32.totalorder %s3864_s27, 2  ;;  %s3285_s23 = sand.u32 1, %s3852_s24  }
 0x3e6   : > { %p5685_p3 = scmp.ne.s32.totalorder %s5665_s12, 0  ;;  %s3286_s29 = scalar_lea.sflag [#allocation4], %s3285_s23 }
 0x3e8   : > { %p3693_p4 = pnand %p3698_p2, %p5685_p3 }
 0x3ea   : > { %3847 = dma.done.wait (!%p3693_p4), %s3286_s29, 1024  }
 0x3eb   : > { %3849 = vsyncadd (!%p3693_p4), %s3286_s29, 4294966272  ;;  %p18_p7 = scmp.ge.s32.totalorder %s3950_s30, 4   ;;  %s5686_s24 = smov %s3856_s25 }
 0x3ec   : > { %s5687_s25 = smov %s3860_s26  ;;  %s5688_s26 = smov %s3961_s10 }
 0x3ed   : > { %s5689_s27 = smov %s3950_s30  ;;  %20 = sbr.rel (!%p18_p7) target bundleno = 4 (0x4), region = 97 }
 0x3f4   :  { %3291 = vsyncpa [#allocation3], 1 }
 0x3f5   :  { %3293 = vsyncpa [#allocation3 + $0x1], 1 }
 0x3f6   :  { %3294 = vsyncpa [#allocation4], 1 }
 0x3f7   :  { %3296 = vsyncpa [#allocation4 + $0x1], 1 }

</bundles_post_ra>
